<compile_context>
chip_gen: v7x
topology: tpu7x:2x2x1
jax: 0.10.0
libtpu: 0.0.40
codegen_flags: <defaults>
</compile_context>

<pallas_src>
import functools

import jax
import jax.numpy as jnp
from jax import lax
from jax.experimental import pallas as pl
from jax.experimental.pallas import tpu as pltpu

_EPS = 1e-5  # PyTorch InstanceNorm2d default eps
_TAPS = tuple((dy, dx) for dy in (-1, 0, 1) for dx in (-1, 0, 1))  # t = 3*(dy+1)+(dx+1)


# ------------------------------ Pallas kernel --------------------------------
def _make_cam_afu_kernel(C, H, W, OFF):
    HW = H * W

    def conv3x3(act, w_ref, pad_ref, rhs_ref, not_first, not_last):
        """3x3 same-conv (no bias) as a single stacked-tap MXU matmul.

        act: (C, HW) value; w_ref: (C, 9*C); returns (C, HW) f32.
        """
        # Fully overwrite the interior of the zero-halo buffer (aligned vst).
        pad_ref[:, OFF:OFF + HW] = act.astype(pad_ref.dtype)
        # Stack the 9 shifted windows into the contraction dim of the RHS.
        for t, (dy, dx) in enumerate(_TAPS):
            s = dy * W + dx
            win = pad_ref[:, OFF + s:OFF + s + HW]
            # Row-wrap masking for the +/-1 column shifts (bit-select only);
            # the H-boundary is handled by the zero halo of pad_ref.
            if dx == 1:
                win = jnp.where(not_last, win, jnp.zeros_like(win))
            elif dx == -1:
                win = jnp.where(not_first, win, jnp.zeros_like(win))
            rhs_ref[t * C:(t + 1) * C, :] = win
        return jnp.dot(w_ref[...], rhs_ref[...],
                       preferred_element_type=jnp.float32)

    def inorm_relu(y, g_ref, b_ref):
        """InstanceNorm2d(affine) + ReLU, one-pass stats, all in f32."""
        inv_hw = 1.0 / HW
        mean = jnp.sum(y, axis=1, keepdims=True) * inv_hw            # (C, 1)
        ex2 = jnp.sum(y * y, axis=1, keepdims=True) * inv_hw         # (C, 1)
        var = jnp.maximum(ex2 - mean * mean, 0.0)                    # biased var
        scale = g_ref[...] * lax.rsqrt(var + _EPS)                   # (C, 1)
        shift = b_ref[...] - mean * scale                            # (C, 1)
        return jnp.maximum(y * scale + shift, 0.0)

    def kernel(x_ref, w1a_ref, g1_ref, b1_ref, w1b_ref,
               w2a_ref, g2_ref, b2_ref, w2b_ref,
               feat2_ref, feat1_ref, pad_ref, rhs_ref):
        # Zero ONLY the halo strips; the interior is rewritten by every conv.
        pad_ref[:, :OFF] = jnp.zeros((C, OFF), pad_ref.dtype)
        pad_ref[:, OFF + HW:] = jnp.zeros((C, OFF), pad_ref.dtype)

        # Column-wrap masks: built once per step as (1, HW), broadcast once.
        col = lax.broadcasted_iota(jnp.int32, (1, HW), 1) % W
        not_first = jnp.broadcast_to(col != 0, (C, HW))
        not_last = jnp.broadcast_to(col != (W - 1), (C, HW))

        x = x_ref[0]                                                 # (C, HW)

        # ---- AFU1: conv -> InstanceNorm(affine) -> ReLU -> conv -> ReLU ----
        h1 = inorm_relu(
            conv3x3(x, w1a_ref, pad_ref, rhs_ref, not_first, not_last),
            g1_ref, b1_ref)
        f1 = jnp.maximum(
            conv3x3(h1, w1b_ref, pad_ref, rhs_ref, not_first, not_last), 0.0)
        feat1_ref[0] = f1.astype(feat1_ref.dtype)

        # ---- AFU2 (consumes feat1 straight from VMEM, no HBM round-trip) ----
        h2 = inorm_relu(
            conv3x3(f1, w2a_ref, pad_ref, rhs_ref, not_first, not_last),
            g2_ref, b2_ref)
        f2 = jnp.maximum(
            conv3x3(h2, w2b_ref, pad_ref, rhs_ref, not_first, not_last), 0.0)
        feat2_ref[0] = f2.astype(feat2_ref.dtype)

    return kernel


# ------------------------------- wrapper --------------------------------------
def _stack_weight(w):
    """(Cout, Cin, 3, 3) OIHW -> (Cout, 9*Cin); col index = (3*ky+kx)*Cin + cin."""
    Cout, Cin = w.shape[0], w.shape[1]
    return jnp.transpose(w, (0, 2, 3, 1)).reshape(Cout, 9 * Cin)


def cam_afu_forward(params, x, *, compute_dtype=jnp.bfloat16):
    """CAM_AFU forward.  x: (N, C, H, W) NCHW.  Returns (feat2, feat1)."""
    N, C, H, W = x.shape
    HW = H * W
    OFF = -(-(W + 1) // 128) * 128          # halo width: >= W+1 and 128-aligned
    PADW = HW + 2 * OFF

    x3 = x.reshape(N, C, HW).astype(compute_dtype)   # channel-major, no transpose
    w1a = _stack_weight(params["w1a"]).astype(compute_dtype)
    w1b = _stack_weight(params["w1b"]).astype(compute_dtype)
    w2a = _stack_weight(params["w2a"]).astype(compute_dtype)
    w2b = _stack_weight(params["w2b"]).astype(compute_dtype)
    g1 = params["g1"].reshape(C, 1).astype(jnp.float32)
    b1 = params["b1"].reshape(C, 1).astype(jnp.float32)
    g2 = params["g2"].reshape(C, 1).astype(jnp.float32)
    b2 = params["b2"].reshape(C, 1).astype(jnp.float32)

    kernel = _make_cam_afu_kernel(C, H, W, OFF)

    act_spec = pl.BlockSpec((1, C, HW), lambda b: (b, 0, 0))
    w_spec = pl.BlockSpec((C, 9 * C), lambda b: (0, 0))   # weight-resident
    v_spec = pl.BlockSpec((C, 1), lambda b: (0, 0))

    # Explicit VMEM budget (review: v7x has only 64 MiB physical): double-
    # buffered in/out, resident weights, scratches, live f32 temporaries,
    # with 2x headroom, floored at the 32 MiB default scoped limit.
    cbytes = jnp.dtype(compute_dtype).itemsize
    obytes = jnp.dtype(x.dtype).itemsize
    est = (2 * C * HW * cbytes                  # input double buffer
           + 2 * 2 * C * HW * obytes            # two outputs, double buffered
           + 2 * 4 * C * 9 * C * cbytes         # four stacked weights
           + (C * PADW + 9 * C * HW) * cbytes   # pad + RHS scratch
           + 6 * C * HW * 4)                    # live f32 temporaries
    vmem_limit = int(min(max(2 * est, 32 << 20), 100 << 20))

    feat2, feat1 = pl.pallas_call(
        kernel,
        out_shape=(jax.ShapeDtypeStruct((N, C, HW), x.dtype),
                   jax.ShapeDtypeStruct((N, C, HW), x.dtype)),
        grid=(N,),
        in_specs=[act_spec, w_spec, v_spec, v_spec, w_spec,
                  w_spec, v_spec, v_spec, w_spec],
        out_specs=(act_spec, act_spec),
        scratch_shapes=[pltpu.VMEM((C, PADW), compute_dtype),
                        pltpu.VMEM((9 * C, HW), compute_dtype)],
        compiler_params=pltpu.CompilerParams(
            dimension_semantics=("parallel",),
            vmem_limit_bytes=vmem_limit),
    )(x3, w1a, g1, b1, w1b, w2a, g2, b2, w2b)

    return feat2.reshape(N, C, H, W), feat1.reshape(N, C, H, W)


# --------------------------------- params --------------------------------------
def init_cam_afu_params(channels, key):
    C = channels
    bound = 1.0 / jnp.sqrt(jnp.float32(C * 9))
    params = {}
    for name in ("w1a", "w1b", "w2a", "w2b"):
        key, k = jax.random.split(key)
        params[name] = jax.random.uniform(k, (C, C, 3, 3), jnp.float32, -bound, bound)
    for i in (1, 2):
        key, kg, kb = jax.random.split(key, 3)
        params[f"g{i}"] = 1.0 + 0.1 * jax.random.normal(kg, (C,), jnp.float32)
        params[f"b{i}"] = 0.1 * jax.random.normal(kb, (C,), jnp.float32)
    return params


# ------------------------------- pure-XLA reference ----------------------------
def _ref_conv3x3(x, w):
    return lax.conv_general_dilated(
        x, w, window_strides=(1, 1), padding=((1, 1), (1, 1)),
        dimension_numbers=("NCHW", "OIHW", "NCHW"))


def _ref_afu(x, wa, g, b, wb):
    y = _ref_conv3x3(x, wa)
    mean = jnp.mean(y, axis=(2, 3), keepdims=True)
    var = jnp.mean(jnp.square(y - mean), axis=(2, 3), keepdims=True)
    y = (y - mean) * lax.rsqrt(var + _EPS)
    y = jnp.maximum(y * g[None, :, None, None] + b[None, :, None, None], 0.0)
    return jnp.maximum(_ref_conv3x3(y, wb), 0.0)


def _ref_cam_afu(params, x):
    f1 = _ref_afu(x, params["w1a"], params["g1"], params["b1"], params["w1b"])
    f2 = _ref_afu(f1, params["w2a"], params["g2"], params["b2"], params["w2b"])
    return f2, f1


# ---------------------------------- demo ----------------------------------------
if __name__ == "__main__":
    channels, N, H, W = 32, 2, 16, 16
    key = jax.random.PRNGKey(0)
    key, kx = jax.random.split(key)
    x = jax.random.normal(kx, (N, channels, H, W), jnp.float32)
    params = init_cam_afu_params(channels, key)

    ref2, ref1 = _ref_cam_afu(params, x)

    # f32 MXU-operand path: tight check against the XLA reference.
    feat2, feat1 = jax.jit(
        functools.partial(cam_afu_forward, compute_dtype=jnp.float32))(params, x)
    feat2 = jax.block_until_ready(feat2)
    feat1 = jax.block_until_ready(feat1)
    assert feat1.shape == (N, channels, H, W)
    assert feat2.shape == (N, channels, H, W)
    assert jnp.allclose(feat1, ref1, atol=5e-4, rtol=5e-4), \
        float(jnp.max(jnp.abs(feat1 - ref1)))
    assert jnp.allclose(feat2, ref2, atol=5e-4, rtol=5e-4), \
        float(jnp.max(jnp.abs(feat2 - ref2)))

    # Default bf16 MXU-operand path (f32 accumulation + f32 epilogue), loose check.
    f2_bf, f1_bf = jax.jit(cam_afu_forward)(params, x)
    f2_bf = jax.block_until_ready(f2_bf)
    f1_bf = jax.block_until_ready(f1_bf)
    rel1 = float(jnp.linalg.norm(f1_bf - ref1) / (jnp.linalg.norm(ref1) + 1e-8))
    rel2 = float(jnp.linalg.norm(f2_bf - ref2) / (jnp.linalg.norm(ref2) + 1e-8))
    assert rel1 < 3e-2 and rel2 < 3e-2, (rel1, rel2)

    print("KERNEL_OK")
</pallas_src>

<mosaic_0001>
module attributes {stable_mosaic.version = 11 : i64} {
  func.func @kernel(%arg0: i32, %arg1: memref<1x32x256xf32, #tpu.memory_space<vmem>>, %arg2: memref<32x288xf32, #tpu.memory_space<vmem>>, %arg3: memref<32x1xf32, #tpu.memory_space<vmem>>, %arg4: memref<32x1xf32, #tpu.memory_space<vmem>>, %arg5: memref<32x288xf32, #tpu.memory_space<vmem>>, %arg6: memref<32x288xf32, #tpu.memory_space<vmem>>, %arg7: memref<32x1xf32, #tpu.memory_space<vmem>>, %arg8: memref<32x1xf32, #tpu.memory_space<vmem>>, %arg9: memref<32x288xf32, #tpu.memory_space<vmem>>, %arg10: memref<1x32x256xf32, #tpu.memory_space<vmem>>, %arg11: memref<1x32x256xf32, #tpu.memory_space<vmem>>, %arg12: memref<32x512xf32, #tpu.memory_space<vmem>>, %arg13: memref<288x256xf32, #tpu.memory_space<vmem>>) attributes {dimension_semantics = [#tpu.dimension_semantics<parallel>], iteration_bounds = array<i64: 2>, scalar_prefetch = 0 : i64, scratch_operands = 2 : i64, tpu.core_type = #tpu.core_type<tc>, window_params = [{transform_indices = @transform_0, window_bounds = array<i64: 1, 32, 256>}, {pipeline_mode = #tpu.pipeline_mode<synchronous>, transform_indices = @transform_1, window_bounds = array<i64: 32, 288>}, {pipeline_mode = #tpu.pipeline_mode<synchronous>, transform_indices = @transform_2, window_bounds = array<i64: 32, 1>}, {pipeline_mode = #tpu.pipeline_mode<synchronous>, transform_indices = @transform_3, window_bounds = array<i64: 32, 1>}, {pipeline_mode = #tpu.pipeline_mode<synchronous>, transform_indices = @transform_4, window_bounds = array<i64: 32, 288>}, {pipeline_mode = #tpu.pipeline_mode<synchronous>, transform_indices = @transform_5, window_bounds = array<i64: 32, 288>}, {pipeline_mode = #tpu.pipeline_mode<synchronous>, transform_indices = @transform_6, window_bounds = array<i64: 32, 1>}, {pipeline_mode = #tpu.pipeline_mode<synchronous>, transform_indices = @transform_7, window_bounds = array<i64: 32, 1>}, {pipeline_mode = #tpu.pipeline_mode<synchronous>, transform_indices = @transform_8, window_bounds = array<i64: 32, 288>}, {transform_indices = @transform_9, window_bounds = array<i64: 1, 32, 256>}, {transform_indices = @transform_10, window_bounds = array<i64: 1, 32, 256>}]} {
    %cst = arith.constant 0.000000e+00 : f32
    %0 = vector.broadcast %cst : f32 to vector<32x128xf32>
    %c0 = arith.constant 0 : index
    %c0_0 = arith.constant 0 : index
    %1 = vector.load %arg12[%c0, %c0_0] : memref<32x512xf32, #tpu.memory_space<vmem>>, vector<32x128xf32>
    tpu.vector_store %arg12[%c0, %c0_0], %0 {strides = array<i32>} : memref<32x512xf32, #tpu.memory_space<vmem>>, vector<32x128xf32>,
    %cst_1 = arith.constant 0.000000e+00 : f32
    %2 = vector.broadcast %cst_1 : f32 to vector<32x128xf32>
    %c0_2 = arith.constant 0 : index
    %c384 = arith.constant 384 : index
    %3 = vector.load %arg12[%c0_2, %c384] : memref<32x512xf32, #tpu.memory_space<vmem>>, vector<32x128xf32>
    tpu.vector_store %arg12[%c0_2, %c384], %2 {strides = array<i32>} : memref<32x512xf32, #tpu.memory_space<vmem>>, vector<32x128xf32>,
    %4 = tpu.iota {dimensions = array<i32: 1>} : vector<1x256xi32>
    %c16_i32 = arith.constant 16 : i32
    %c0_i32 = arith.constant 0 : i32
    %5 = arith.cmpi eq, %c16_i32, %c0_i32 : i32
    %c1_i32 = arith.constant 1 : i32
    %6 = arith.select %5, %c1_i32, %c16_i32 : i32
    %7 = vector.broadcast %6 : i32 to vector<1x256xi32>
    %8 = arith.remsi %4, %7 : vector<1x256xi32>
    %c0_i32_3 = arith.constant 0 : i32
    %9 = vector.broadcast %c0_i32_3 : i32 to vector<1x256xi32>
    %10 = arith.cmpi ne, %8, %9 : vector<1x256xi32>
    %c0_i32_4 = arith.constant 0 : i32
    %11 = vector.broadcast %c0_i32_4 : i32 to vector<1x256xi32>
    %12 = arith.cmpi slt, %8, %11 : vector<1x256xi32>
    %c0_i32_5 = arith.constant 0 : i32
    %13 = arith.cmpi slt, %6, %c0_i32_5 : i32
    %14 = vector.broadcast %13 : i1 to vector<1x256xi1>
    %15 = vector.broadcast %14 : vector<1x256xi1> to vector<1x256xi1>
    %16 = arith.xori %12, %15 : vector<1x256xi1>
    %17 = arith.andi %16, %10 : vector<1x256xi1>
    %18 = vector.broadcast %6 : i32 to vector<1x256xi32>
    %19 = arith.addi %8, %18 : vector<1x256xi32>
    %20 = arith.select %17, %19, %8 : vector<1x256xi1>, vector<1x256xi32>
    %c0_i32_6 = arith.constant 0 : i32
    %21 = vector.broadcast %c0_i32_6 : i32 to vector<1x256xi32>
    %22 = arith.cmpi ne, %20, %21 : vector<1x256xi32>
    %23 = vector.shape_cast %22 : vector<1x256xi1> to vector<1x256xi1>
    %24 = vector.broadcast %23 : vector<1x256xi1> to vector<32x256xi1>
    %c15_i32 = arith.constant 15 : i32
    %25 = vector.broadcast %c15_i32 : i32 to vector<1x256xi32>
    %26 = arith.cmpi ne, %20, %25 : vector<1x256xi32>
    %27 = vector.shape_cast %26 : vector<1x256xi1> to vector<1x256xi1>
    %28 = vector.broadcast %27 : vector<1x256xi1> to vector<32x256xi1>
    %c0_7 = arith.constant 0 : index
    %c0_8 = arith.constant 0 : index
    %c0_9 = arith.constant 0 : index
    %29 = vector.load %arg1[%c0_7, %c0_8, %c0_9] : memref<1x32x256xf32, #tpu.memory_space<vmem>>, vector<1x32x256xf32>
    %30 = vector.shape_cast %29 : vector<1x32x256xf32> to vector<32x256xf32>
    %c0_10 = arith.constant 0 : index
    %c128 = arith.constant 128 : index
    %31 = vector.load %arg12[%c0_10, %c128] : memref<32x512xf32, #tpu.memory_space<vmem>>, vector<32x256xf32>
    tpu.vector_store %arg12[%c0_10, %c128], %30 {strides = array<i32>} : memref<32x512xf32, #tpu.memory_space<vmem>>, vector<32x256xf32>,
    %c0_11 = arith.constant 0 : index
    %c111 = arith.constant 111 : index
    %32 = vector.load %arg12[%c0_11, %c111] : memref<32x512xf32, #tpu.memory_space<vmem>>, vector<32x256xf32>
    %cst_12 = arith.constant 0.000000e+00 : f32
    %33 = vector.broadcast %cst_12 : f32 to vector<32x256xf32>
    %34 = arith.select %24, %32, %33 : vector<32x256xi1>, vector<32x256xf32>
    %c0_13 = arith.constant 0 : index
    %c0_14 = arith.constant 0 : index
    %35 = vector.load %arg13[%c0_13, %c0_14] : memref<288x256xf32, #tpu.memory_space<vmem>>, vector<32x256xf32>
    tpu.vector_store %arg13[%c0_13, %c0_14], %34 {strides = array<i32>} : memref<288x256xf32, #tpu.memory_space<vmem>>, vector<32x256xf32>,
    %c0_15 = arith.constant 0 : index
    %c112 = arith.constant 112 : index
    %36 = vector.load %arg12[%c0_15, %c112] : memref<32x512xf32, #tpu.memory_space<vmem>>, vector<32x256xf32>
    %c32 = arith.constant 32 : index
    %c0_16 = arith.constant 0 : index
    %37 = vector.load %arg13[%c32, %c0_16] : memref<288x256xf32, #tpu.memory_space<vmem>>, vector<32x256xf32>
    tpu.vector_store %arg13[%c32, %c0_16], %36 {strides = array<i32>} : memref<288x256xf32, #tpu.memory_space<vmem>>, vector<32x256xf32>,
    %c0_17 = arith.constant 0 : index
    %c113 = arith.constant 113 : index
    %38 = vector.load %arg12[%c0_17, %c113] : memref<32x512xf32, #tpu.memory_space<vmem>>, vector<32x256xf32>
    %cst_18 = arith.constant 0.000000e+00 : f32
    %39 = vector.broadcast %cst_18 : f32 to vector<32x256xf32>
    %40 = arith.select %28, %38, %39 : vector<32x256xi1>, vector<32x256xf32>
    %c64 = arith.constant 64 : index
    %c0_19 = arith.constant 0 : index
    %41 = vector.load %arg13[%c64, %c0_19] : memref<288x256xf32, #tpu.memory_space<vmem>>, vector<32x256xf32>
    tpu.vector_store %arg13[%c64, %c0_19], %40 {strides = array<i32>} : memref<288x256xf32, #tpu.memory_space<vmem>>, vector<32x256xf32>,
    %c0_20 = arith.constant 0 : index
    %c127 = arith.constant 127 : index
    %42 = vector.load %arg12[%c0_20, %c127] : memref<32x512xf32, #tpu.memory_space<vmem>>, vector<32x256xf32>
    %cst_21 = arith.constant 0.000000e+00 : f32
    %43 = vector.broadcast %cst_21 : f32 to vector<32x256xf32>
    %44 = arith.select %24, %42, %43 : vector<32x256xi1>, vector<32x256xf32>
    %c96 = arith.constant 96 : index
    %c0_22 = arith.constant 0 : index
    %45 = vector.load %arg13[%c96, %c0_22] : memref<288x256xf32, #tpu.memory_space<vmem>>, vector<32x256xf32>
    tpu.vector_store %arg13[%c96, %c0_22], %44 {strides = array<i32>} : memref<288x256xf32, #tpu.memory_space<vmem>>, vector<32x256xf32>,
    %c0_23 = arith.constant 0 : index
    %c128_24 = arith.constant 128 : index
    %46 = vector.load %arg12[%c0_23, %c128_24] : memref<32x512xf32, #tpu.memory_space<vmem>>, vector<32x256xf32>
    %c128_25 = arith.constant 128 : index
    %c0_26 = arith.constant 0 : index
    %47 = vector.load %arg13[%c128_25, %c0_26] : memref<288x256xf32, #tpu.memory_space<vmem>>, vector<32x256xf32>
    tpu.vector_store %arg13[%c128_25, %c0_26], %46 {strides = array<i32>} : memref<288x256xf32, #tpu.memory_space<vmem>>, vector<32x256xf32>,
    %c0_27 = arith.constant 0 : index
    %c129 = arith.constant 129 : index
    %48 = vector.load %arg12[%c0_27, %c129] : memref<32x512xf32, #tpu.memory_space<vmem>>, vector<32x256xf32>
    %cst_28 = arith.constant 0.000000e+00 : f32
    %49 = vector.broadcast %cst_28 : f32 to vector<32x256xf32>
    %50 = arith.select %28, %48, %49 : vector<32x256xi1>, vector<32x256xf32>
    %c160 = arith.constant 160 : index
    %c0_29 = arith.constant 0 : index
    %51 = vector.load %arg13[%c160, %c0_29] : memref<288x256xf32, #tpu.memory_space<vmem>>, vector<32x256xf32>
    tpu.vector_store %arg13[%c160, %c0_29], %50 {strides = array<i32>} : memref<288x256xf32, #tpu.memory_space<vmem>>, vector<32x256xf32>,
    %c0_30 = arith.constant 0 : index
    %c143 = arith.constant 143 : index
    %52 = vector.load %arg12[%c0_30, %c143] : memref<32x512xf32, #tpu.memory_space<vmem>>, vector<32x256xf32>
    %cst_31 = arith.constant 0.000000e+00 : f32
    %53 = vector.broadcast %cst_31 : f32 to vector<32x256xf32>
    %54 = arith.select %24, %52, %53 : vector<32x256xi1>, vector<32x256xf32>
    %c192 = arith.constant 192 : index
    %c0_32 = arith.constant 0 : index
    %55 = vector.load %arg13[%c192, %c0_32] : memref<288x256xf32, #tpu.memory_space<vmem>>, vector<32x256xf32>
    tpu.vector_store %arg13[%c192, %c0_32], %54 {strides = array<i32>} : memref<288x256xf32, #tpu.memory_space<vmem>>, vector<32x256xf32>,
    %c0_33 = arith.constant 0 : index
    %c144 = arith.constant 144 : index
    %56 = vector.load %arg12[%c0_33, %c144] : memref<32x512xf32, #tpu.memory_space<vmem>>, vector<32x256xf32>
    %c224 = arith.constant 224 : index
    %c0_34 = arith.constant 0 : index
    %57 = vector.load %arg13[%c224, %c0_34] : memref<288x256xf32, #tpu.memory_space<vmem>>, vector<32x256xf32>
    tpu.vector_store %arg13[%c224, %c0_34], %56 {strides = array<i32>} : memref<288x256xf32, #tpu.memory_space<vmem>>, vector<32x256xf32>,
    %c0_35 = arith.constant 0 : index
    %c145 = arith.constant 145 : index
    %58 = vector.load %arg12[%c0_35, %c145] : memref<32x512xf32, #tpu.memory_space<vmem>>, vector<32x256xf32>
    %cst_36 = arith.constant 0.000000e+00 : f32
    %59 = vector.broadcast %cst_36 : f32 to vector<32x256xf32>
    %60 = arith.select %28, %58, %59 : vector<32x256xi1>, vector<32x256xf32>
    %c256 = arith.constant 256 : index
    %c0_37 = arith.constant 0 : index
    %61 = vector.load %arg13[%c256, %c0_37] : memref<288x256xf32, #tpu.memory_space<vmem>>, vector<32x256xf32>
    tpu.vector_store %arg13[%c256, %c0_37], %60 {strides = array<i32>} : memref<288x256xf32, #tpu.memory_space<vmem>>, vector<32x256xf32>,
    %c0_38 = arith.constant 0 : index
    %c0_39 = arith.constant 0 : index
    %62 = vector.load %arg2[%c0_38, %c0_39] : memref<32x288xf32, #tpu.memory_space<vmem>>, vector<32x288xf32>
    %c0_40 = arith.constant 0 : index
    %c0_41 = arith.constant 0 : index
    %63 = vector.load %arg13[%c0_40, %c0_41] : memref<288x256xf32, #tpu.memory_space<vmem>>, vector<288x256xf32>
    %cst_42 = arith.constant dense<0.000000e+00> : vector<32x256xf32>
    %64 = tpu.matmul %62, %63, %cst_42 {dimension_numbers = #tpu.dot_dimension_numbers<[1], [0], [0], [1], [0, 0, 1, 1], [], []>} : vector<32x288xf32>, vector<288x256xf32>, vector<32x256xf32> -> vector<32x256xf32>
    %cst_43 = arith.constant dense<0.000000e+00> : vector<32xf32>
    %65 = vector.multi_reduction <add>, %64, %cst_43 [1] : vector<32x256xf32> to vector<32xf32>
    %66 = vector.shape_cast %65 : vector<32xf32> to vector<32x1xf32>
    %cst_44 = arith.constant 3.906250e-03 : f32
    %67 = vector.broadcast %cst_44 : f32 to vector<32x1xf32>
    %68 = arith.mulf %66, %67 : vector<32x1xf32>
    %69 = arith.mulf %64, %64 : vector<32x256xf32>
    %cst_45 = arith.constant dense<0.000000e+00> : vector<32xf32>
    %70 = vector.multi_reduction <add>, %69, %cst_45 [1] : vector<32x256xf32> to vector<32xf32>
    %71 = vector.shape_cast %70 : vector<32xf32> to vector<32x1xf32>
    %cst_46 = arith.constant 3.906250e-03 : f32
    %72 = vector.broadcast %cst_46 : f32 to vector<32x1xf32>
    %73 = arith.mulf %71, %72 : vector<32x1xf32>
    %74 = arith.mulf %68, %68 : vector<32x1xf32>
    %75 = arith.subf %73, %74 : vector<32x1xf32>
    %cst_47 = arith.constant 0.000000e+00 : f32
    %76 = vector.broadcast %cst_47 : f32 to vector<32x1xf32>
    %77 = arith.maximumf %75, %76 : vector<32x1xf32>
    %c0_48 = arith.constant 0 : index
    %c0_49 = arith.constant 0 : index
    %78 = vector.load %arg3[%c0_48, %c0_49] : memref<32x1xf32, #tpu.memory_space<vmem>>, vector<32x1xf32>
    %cst_50 = arith.constant 9.99999974E-6 : f32
    %79 = vector.broadcast %cst_50 : f32 to vector<32x1xf32>
    %80 = arith.addf %77, %79 : vector<32x1xf32>
    %81 = math.rsqrt %80 : vector<32x1xf32>
    %82 = arith.mulf %78, %81 : vector<32x1xf32>
    %c0_51 = arith.constant 0 : index
    %c0_52 = arith.constant 0 : index
    %83 = vector.load %arg4[%c0_51, %c0_52] : memref<32x1xf32, #tpu.memory_space<vmem>>, vector<32x1xf32>
    %84 = arith.mulf %68, %82 : vector<32x1xf32>
    %85 = arith.subf %83, %84 : vector<32x1xf32>
    %86 = vector.broadcast %82 : vector<32x1xf32> to vector<32x256xf32>
    %87 = arith.mulf %64, %86 : vector<32x256xf32>
    %88 = vector.broadcast %85 : vector<32x1xf32> to vector<32x256xf32>
    %89 = arith.addf %87, %88 : vector<32x256xf32>
    %cst_53 = arith.constant 0.000000e+00 : f32
    %90 = vector.broadcast %cst_53 : f32 to vector<32x256xf32>
    %91 = arith.maximumf %89, %90 : vector<32x256xf32>
    %c0_54 = arith.constant 0 : index
    %c128_55 = arith.constant 128 : index
    %92 = vector.load %arg12[%c0_54, %c128_55] : memref<32x512xf32, #tpu.memory_space<vmem>>, vector<32x256xf32>
    tpu.vector_store %arg12[%c0_54, %c128_55], %91 {strides = array<i32>} : memref<32x512xf32, #tpu.memory_space<vmem>>, vector<32x256xf32>,
    %c0_56 = arith.constant 0 : index
    %c111_57 = arith.constant 111 : index
    %93 = vector.load %arg12[%c0_56, %c111_57] : memref<32x512xf32, #tpu.memory_space<vmem>>, vector<32x256xf32>
    %cst_58 = arith.constant 0.000000e+00 : f32
    %94 = vector.broadcast %cst_58 : f32 to vector<32x256xf32>
    %95 = arith.select %24, %93, %94 : vector<32x256xi1>, vector<32x256xf32>
    %c0_59 = arith.constant 0 : index
    %c0_60 = arith.constant 0 : index
    %96 = vector.load %arg13[%c0_59, %c0_60] : memref<288x256xf32, #tpu.memory_space<vmem>>, vector<32x256xf32>
    tpu.vector_store %arg13[%c0_59, %c0_60], %95 {strides = array<i32>} : memref<288x256xf32, #tpu.memory_space<vmem>>, vector<32x256xf32>,
    %c0_61 = arith.constant 0 : index
    %c112_62 = arith.constant 112 : index
    %97 = vector.load %arg12[%c0_61, %c112_62] : memref<32x512xf32, #tpu.memory_space<vmem>>, vector<32x256xf32>
    %c32_63 = arith.constant 32 : index
    %c0_64 = arith.constant 0 : index
    %98 = vector.load %arg13[%c32_63, %c0_64] : memref<288x256xf32, #tpu.memory_space<vmem>>, vector<32x256xf32>
    tpu.vector_store %arg13[%c32_63, %c0_64], %97 {strides = array<i32>} : memref<288x256xf32, #tpu.memory_space<vmem>>, vector<32x256xf32>,
    %c0_65 = arith.constant 0 : index
    %c113_66 = arith.constant 113 : index
    %99 = vector.load %arg12[%c0_65, %c113_66] : memref<32x512xf32, #tpu.memory_space<vmem>>, vector<32x256xf32>
    %cst_67 = arith.constant 0.000000e+00 : f32
    %100 = vector.broadcast %cst_67 : f32 to vector<32x256xf32>
    %101 = arith.select %28, %99, %100 : vector<32x256xi1>, vector<32x256xf32>
    %c64_68 = arith.constant 64 : index
    %c0_69 = arith.constant 0 : index
    %102 = vector.load %arg13[%c64_68, %c0_69] : memref<288x256xf32, #tpu.memory_space<vmem>>, vector<32x256xf32>
    tpu.vector_store %arg13[%c64_68, %c0_69], %101 {strides = array<i32>} : memref<288x256xf32, #tpu.memory_space<vmem>>, vector<32x256xf32>,
    %c0_70 = arith.constant 0 : index
    %c127_71 = arith.constant 127 : index
    %103 = vector.load %arg12[%c0_70, %c127_71] : memref<32x512xf32, #tpu.memory_space<vmem>>, vector<32x256xf32>
    %cst_72 = arith.constant 0.000000e+00 : f32
    %104 = vector.broadcast %cst_72 : f32 to vector<32x256xf32>
    %105 = arith.select %24, %103, %104 : vector<32x256xi1>, vector<32x256xf32>
    %c96_73 = arith.constant 96 : index
    %c0_74 = arith.constant 0 : index
    %106 = vector.load %arg13[%c96_73, %c0_74] : memref<288x256xf32, #tpu.memory_space<vmem>>, vector<32x256xf32>
    tpu.vector_store %arg13[%c96_73, %c0_74], %105 {strides = array<i32>} : memref<288x256xf32, #tpu.memory_space<vmem>>, vector<32x256xf32>,
    %c0_75 = arith.constant 0 : index
    %c128_76 = arith.constant 128 : index
    %107 = vector.load %arg12[%c0_75, %c128_76] : memref<32x512xf32, #tpu.memory_space<vmem>>, vector<32x256xf32>
    %c128_77 = arith.constant 128 : index
    %c0_78 = arith.constant 0 : index
    %108 = vector.load %arg13[%c128_77, %c0_78] : memref<288x256xf32, #tpu.memory_space<vmem>>, vector<32x256xf32>
    tpu.vector_store %arg13[%c128_77, %c0_78], %107 {strides = array<i32>} : memref<288x256xf32, #tpu.memory_space<vmem>>, vector<32x256xf32>,
    %c0_79 = arith.constant 0 : index
    %c129_80 = arith.constant 129 : index
    %109 = vector.load %arg12[%c0_79, %c129_80] : memref<32x512xf32, #tpu.memory_space<vmem>>, vector<32x256xf32>
    %cst_81 = arith.constant 0.000000e+00 : f32
    %110 = vector.broadcast %cst_81 : f32 to vector<32x256xf32>
    %111 = arith.select %28, %109, %110 : vector<32x256xi1>, vector<32x256xf32>
    %c160_82 = arith.constant 160 : index
    %c0_83 = arith.constant 0 : index
    %112 = vector.load %arg13[%c160_82, %c0_83] : memref<288x256xf32, #tpu.memory_space<vmem>>, vector<32x256xf32>
    tpu.vector_store %arg13[%c160_82, %c0_83], %111 {strides = array<i32>} : memref<288x256xf32, #tpu.memory_space<vmem>>, vector<32x256xf32>,
    %c0_84 = arith.constant 0 : index
    %c143_85 = arith.constant 143 : index
    %113 = vector.load %arg12[%c0_84, %c143_85] : memref<32x512xf32, #tpu.memory_space<vmem>>, vector<32x256xf32>
    %cst_86 = arith.constant 0.000000e+00 : f32
    %114 = vector.broadcast %cst_86 : f32 to vector<32x256xf32>
    %115 = arith.select %24, %113, %114 : vector<32x256xi1>, vector<32x256xf32>
    %c192_87 = arith.constant 192 : index
    %c0_88 = arith.constant 0 : index
    %116 = vector.load %arg13[%c192_87, %c0_88] : memref<288x256xf32, #tpu.memory_space<vmem>>, vector<32x256xf32>
    tpu.vector_store %arg13[%c192_87, %c0_88], %115 {strides = array<i32>} : memref<288x256xf32, #tpu.memory_space<vmem>>, vector<32x256xf32>,
    %c0_89 = arith.constant 0 : index
    %c144_90 = arith.constant 144 : index
    %117 = vector.load %arg12[%c0_89, %c144_90] : memref<32x512xf32, #tpu.memory_space<vmem>>, vector<32x256xf32>
    %c224_91 = arith.constant 224 : index
    %c0_92 = arith.constant 0 : index
    %118 = vector.load %arg13[%c224_91, %c0_92] : memref<288x256xf32, #tpu.memory_space<vmem>>, vector<32x256xf32>
    tpu.vector_store %arg13[%c224_91, %c0_92], %117 {strides = array<i32>} : memref<288x256xf32, #tpu.memory_space<vmem>>, vector<32x256xf32>,
    %c0_93 = arith.constant 0 : index
    %c145_94 = arith.constant 145 : index
    %119 = vector.load %arg12[%c0_93, %c145_94] : memref<32x512xf32, #tpu.memory_space<vmem>>, vector<32x256xf32>
    %cst_95 = arith.constant 0.000000e+00 : f32
    %120 = vector.broadcast %cst_95 : f32 to vector<32x256xf32>
    %121 = arith.select %28, %119, %120 : vector<32x256xi1>, vector<32x256xf32>
    %c256_96 = arith.constant 256 : index
    %c0_97 = arith.constant 0 : index
    %122 = vector.load %arg13[%c256_96, %c0_97] : memref<288x256xf32, #tpu.memory_space<vmem>>, vector<32x256xf32>
    tpu.vector_store %arg13[%c256_96, %c0_97], %121 {strides = array<i32>} : memref<288x256xf32, #tpu.memory_space<vmem>>, vector<32x256xf32>,
    %c0_98 = arith.constant 0 : index
    %c0_99 = arith.constant 0 : index
    %123 = vector.load %arg5[%c0_98, %c0_99] : memref<32x288xf32, #tpu.memory_space<vmem>>, vector<32x288xf32>
    %c0_100 = arith.constant 0 : index
    %c0_101 = arith.constant 0 : index
    %124 = vector.load %arg13[%c0_100, %c0_101] : memref<288x256xf32, #tpu.memory_space<vmem>>, vector<288x256xf32>
    %cst_102 = arith.constant dense<0.000000e+00> : vector<32x256xf32>
    %125 = tpu.matmul %123, %124, %cst_102 {dimension_numbers = #tpu.dot_dimension_numbers<[1], [0], [0], [1], [0, 0, 1, 1], [], []>} : vector<32x288xf32>, vector<288x256xf32>, vector<32x256xf32> -> vector<32x256xf32>
    %cst_103 = arith.constant 0.000000e+00 : f32
    %126 = vector.broadcast %cst_103 : f32 to vector<32x256xf32>
    %127 = arith.maximumf %125, %126 : vector<32x256xf32>
    %c0_104 = arith.constant 0 : index
    %c0_105 = arith.constant 0 : index
    %c0_106 = arith.constant 0 : index
    %128 = vector.load %arg11[%c0_104, %c0_105, %c0_106] : memref<1x32x256xf32, #tpu.memory_space<vmem>>, vector<1x32x256xf32>
    %129 = vector.shape_cast %128 : vector<1x32x256xf32> to vector<32x256xf32>
    %130 = vector.shape_cast %127 : vector<32x256xf32> to vector<1x32x256xf32>
    tpu.vector_store %arg11[%c0_104, %c0_105, %c0_106], %130 {strides = array<i32>} : memref<1x32x256xf32, #tpu.memory_space<vmem>>, vector<1x32x256xf32>,
    %c0_107 = arith.constant 0 : index
    %c128_108 = arith.constant 128 : index
    %131 = vector.load %arg12[%c0_107, %c128_108] : memref<32x512xf32, #tpu.memory_space<vmem>>, vector<32x256xf32>
    tpu.vector_store %arg12[%c0_107, %c128_108], %127 {strides = array<i32>} : memref<32x512xf32, #tpu.memory_space<vmem>>, vector<32x256xf32>,
    %c0_109 = arith.constant 0 : index
    %c111_110 = arith.constant 111 : index
    %132 = vector.load %arg12[%c0_109, %c111_110] : memref<32x512xf32, #tpu.memory_space<vmem>>, vector<32x256xf32>
    %cst_111 = arith.constant 0.000000e+00 : f32
    %133 = vector.broadcast %cst_111 : f32 to vector<32x256xf32>
    %134 = arith.select %24, %132, %133 : vector<32x256xi1>, vector<32x256xf32>
    %c0_112 = arith.constant 0 : index
    %c0_113 = arith.constant 0 : index
    %135 = vector.load %arg13[%c0_112, %c0_113] : memref<288x256xf32, #tpu.memory_space<vmem>>, vector<32x256xf32>
    tpu.vector_store %arg13[%c0_112, %c0_113], %134 {strides = array<i32>} : memref<288x256xf32, #tpu.memory_space<vmem>>, vector<32x256xf32>,
    %c0_114 = arith.constant 0 : index
    %c112_115 = arith.constant 112 : index
    %136 = vector.load %arg12[%c0_114, %c112_115] : memref<32x512xf32, #tpu.memory_space<vmem>>, vector<32x256xf32>
    %c32_116 = arith.constant 32 : index
    %c0_117 = arith.constant 0 : index
    %137 = vector.load %arg13[%c32_116, %c0_117] : memref<288x256xf32, #tpu.memory_space<vmem>>, vector<32x256xf32>
    tpu.vector_store %arg13[%c32_116, %c0_117], %136 {strides = array<i32>} : memref<288x256xf32, #tpu.memory_space<vmem>>, vector<32x256xf32>,
    %c0_118 = arith.constant 0 : index
    %c113_119 = arith.constant 113 : index
    %138 = vector.load %arg12[%c0_118, %c113_119] : memref<32x512xf32, #tpu.memory_space<vmem>>, vector<32x256xf32>
    %cst_120 = arith.constant 0.000000e+00 : f32
    %139 = vector.broadcast %cst_120 : f32 to vector<32x256xf32>
    %140 = arith.select %28, %138, %139 : vector<32x256xi1>, vector<32x256xf32>
    %c64_121 = arith.constant 64 : index
    %c0_122 = arith.constant 0 : index
    %141 = vector.load %arg13[%c64_121, %c0_122] : memref<288x256xf32, #tpu.memory_space<vmem>>, vector<32x256xf32>
    tpu.vector_store %arg13[%c64_121, %c0_122], %140 {strides = array<i32>} : memref<288x256xf32, #tpu.memory_space<vmem>>, vector<32x256xf32>,
    %c0_123 = arith.constant 0 : index
    %c127_124 = arith.constant 127 : index
    %142 = vector.load %arg12[%c0_123, %c127_124] : memref<32x512xf32, #tpu.memory_space<vmem>>, vector<32x256xf32>
    %cst_125 = arith.constant 0.000000e+00 : f32
    %143 = vector.broadcast %cst_125 : f32 to vector<32x256xf32>
    %144 = arith.select %24, %142, %143 : vector<32x256xi1>, vector<32x256xf32>
    %c96_126 = arith.constant 96 : index
    %c0_127 = arith.constant 0 : index
    %145 = vector.load %arg13[%c96_126, %c0_127] : memref<288x256xf32, #tpu.memory_space<vmem>>, vector<32x256xf32>
    tpu.vector_store %arg13[%c96_126, %c0_127], %144 {strides = array<i32>} : memref<288x256xf32, #tpu.memory_space<vmem>>, vector<32x256xf32>,
    %c0_128 = arith.constant 0 : index
    %c128_129 = arith.constant 128 : index
    %146 = vector.load %arg12[%c0_128, %c128_129] : memref<32x512xf32, #tpu.memory_space<vmem>>, vector<32x256xf32>
    %c128_130 = arith.constant 128 : index
    %c0_131 = arith.constant 0 : index
    %147 = vector.load %arg13[%c128_130, %c0_131] : memref<288x256xf32, #tpu.memory_space<vmem>>, vector<32x256xf32>
    tpu.vector_store %arg13[%c128_130, %c0_131], %146 {strides = array<i32>} : memref<288x256xf32, #tpu.memory_space<vmem>>, vector<32x256xf32>,
    %c0_132 = arith.constant 0 : index
    %c129_133 = arith.constant 129 : index
    %148 = vector.load %arg12[%c0_132, %c129_133] : memref<32x512xf32, #tpu.memory_space<vmem>>, vector<32x256xf32>
    %cst_134 = arith.constant 0.000000e+00 : f32
    %149 = vector.broadcast %cst_134 : f32 to vector<32x256xf32>
    %150 = arith.select %28, %148, %149 : vector<32x256xi1>, vector<32x256xf32>
    %c160_135 = arith.constant 160 : index
    %c0_136 = arith.constant 0 : index
    %151 = vector.load %arg13[%c160_135, %c0_136] : memref<288x256xf32, #tpu.memory_space<vmem>>, vector<32x256xf32>
    tpu.vector_store %arg13[%c160_135, %c0_136], %150 {strides = array<i32>} : memref<288x256xf32, #tpu.memory_space<vmem>>, vector<32x256xf32>,
    %c0_137 = arith.constant 0 : index
    %c143_138 = arith.constant 143 : index
    %152 = vector.load %arg12[%c0_137, %c143_138] : memref<32x512xf32, #tpu.memory_space<vmem>>, vector<32x256xf32>
    %cst_139 = arith.constant 0.000000e+00 : f32
    %153 = vector.broadcast %cst_139 : f32 to vector<32x256xf32>
    %154 = arith.select %24, %152, %153 : vector<32x256xi1>, vector<32x256xf32>
    %c192_140 = arith.constant 192 : index
    %c0_141 = arith.constant 0 : index
    %155 = vector.load %arg13[%c192_140, %c0_141] : memref<288x256xf32, #tpu.memory_space<vmem>>, vector<32x256xf32>
    tpu.vector_store %arg13[%c192_140, %c0_141], %154 {strides = array<i32>} : memref<288x256xf32, #tpu.memory_space<vmem>>, vector<32x256xf32>,
    %c0_142 = arith.constant 0 : index
    %c144_143 = arith.constant 144 : index
    %156 = vector.load %arg12[%c0_142, %c144_143] : memref<32x512xf32, #tpu.memory_space<vmem>>, vector<32x256xf32>
    %c224_144 = arith.constant 224 : index
    %c0_145 = arith.constant 0 : index
    %157 = vector.load %arg13[%c224_144, %c0_145] : memref<288x256xf32, #tpu.memory_space<vmem>>, vector<32x256xf32>
    tpu.vector_store %arg13[%c224_144, %c0_145], %156 {strides = array<i32>} : memref<288x256xf32, #tpu.memory_space<vmem>>, vector<32x256xf32>,
    %c0_146 = arith.constant 0 : index
    %c145_147 = arith.constant 145 : index
    %158 = vector.load %arg12[%c0_146, %c145_147] : memref<32x512xf32, #tpu.memory_space<vmem>>, vector<32x256xf32>
    %cst_148 = arith.constant 0.000000e+00 : f32
    %159 = vector.broadcast %cst_148 : f32 to vector<32x256xf32>
    %160 = arith.select %28, %158, %159 : vector<32x256xi1>, vector<32x256xf32>
    %c256_149 = arith.constant 256 : index
    %c0_150 = arith.constant 0 : index
    %161 = vector.load %arg13[%c256_149, %c0_150] : memref<288x256xf32, #tpu.memory_space<vmem>>, vector<32x256xf32>
    tpu.vector_store %arg13[%c256_149, %c0_150], %160 {strides = array<i32>} : memref<288x256xf32, #tpu.memory_space<vmem>>, vector<32x256xf32>,
    %c0_151 = arith.constant 0 : index
    %c0_152 = arith.constant 0 : index
    %162 = vector.load %arg6[%c0_151, %c0_152] : memref<32x288xf32, #tpu.memory_space<vmem>>, vector<32x288xf32>
    %c0_153 = arith.constant 0 : index
    %c0_154 = arith.constant 0 : index
    %163 = vector.load %arg13[%c0_153, %c0_154] : memref<288x256xf32, #tpu.memory_space<vmem>>, vector<288x256xf32>
    %cst_155 = arith.constant dense<0.000000e+00> : vector<32x256xf32>
    %164 = tpu.matmul %162, %163, %cst_155 {dimension_numbers = #tpu.dot_dimension_numbers<[1], [0], [0], [1], [0, 0, 1, 1], [], []>} : vector<32x288xf32>, vector<288x256xf32>, vector<32x256xf32> -> vector<32x256xf32>
    %cst_156 = arith.constant dense<0.000000e+00> : vector<32xf32>
    %165 = vector.multi_reduction <add>, %164, %cst_156 [1] : vector<32x256xf32> to vector<32xf32>
    %166 = vector.shape_cast %165 : vector<32xf32> to vector<32x1xf32>
    %cst_157 = arith.constant 3.906250e-03 : f32
    %167 = vector.broadcast %cst_157 : f32 to vector<32x1xf32>
    %168 = arith.mulf %166, %167 : vector<32x1xf32>
    %169 = arith.mulf %164, %164 : vector<32x256xf32>
    %cst_158 = arith.constant dense<0.000000e+00> : vector<32xf32>
    %170 = vector.multi_reduction <add>, %169, %cst_158 [1] : vector<32x256xf32> to vector<32xf32>
    %171 = vector.shape_cast %170 : vector<32xf32> to vector<32x1xf32>
    %cst_159 = arith.constant 3.906250e-03 : f32
    %172 = vector.broadcast %cst_159 : f32 to vector<32x1xf32>
    %173 = arith.mulf %171, %172 : vector<32x1xf32>
    %174 = arith.mulf %168, %168 : vector<32x1xf32>
    %175 = arith.subf %173, %174 : vector<32x1xf32>
    %cst_160 = arith.constant 0.000000e+00 : f32
    %176 = vector.broadcast %cst_160 : f32 to vector<32x1xf32>
    %177 = arith.maximumf %175, %176 : vector<32x1xf32>
    %c0_161 = arith.constant 0 : index
    %c0_162 = arith.constant 0 : index
    %178 = vector.load %arg7[%c0_161, %c0_162] : memref<32x1xf32, #tpu.memory_space<vmem>>, vector<32x1xf32>
    %cst_163 = arith.constant 9.99999974E-6 : f32
    %179 = vector.broadcast %cst_163 : f32 to vector<32x1xf32>
    %180 = arith.addf %177, %179 : vector<32x1xf32>
    %181 = math.rsqrt %180 : vector<32x1xf32>
    %182 = arith.mulf %178, %181 : vector<32x1xf32>
    %c0_164 = arith.constant 0 : index
    %c0_165 = arith.constant 0 : index
    %183 = vector.load %arg8[%c0_164, %c0_165] : memref<32x1xf32, #tpu.memory_space<vmem>>, vector<32x1xf32>
    %184 = arith.mulf %168, %182 : vector<32x1xf32>
    %185 = arith.subf %183, %184 : vector<32x1xf32>
    %186 = vector.broadcast %182 : vector<32x1xf32> to vector<32x256xf32>
    %187 = arith.mulf %164, %186 : vector<32x256xf32>
    %188 = vector.broadcast %185 : vector<32x1xf32> to vector<32x256xf32>
    %189 = arith.addf %187, %188 : vector<32x256xf32>
    %cst_166 = arith.constant 0.000000e+00 : f32
    %190 = vector.broadcast %cst_166 : f32 to vector<32x256xf32>
    %191 = arith.maximumf %189, %190 : vector<32x256xf32>
    %c0_167 = arith.constant 0 : index
    %c128_168 = arith.constant 128 : index
    %192 = vector.load %arg12[%c0_167, %c128_168] : memref<32x512xf32, #tpu.memory_space<vmem>>, vector<32x256xf32>
    tpu.vector_store %arg12[%c0_167, %c128_168], %191 {strides = array<i32>} : memref<32x512xf32, #tpu.memory_space<vmem>>, vector<32x256xf32>,
    %c0_169 = arith.constant 0 : index
    %c111_170 = arith.constant 111 : index
    %193 = vector.load %arg12[%c0_169, %c111_170] : memref<32x512xf32, #tpu.memory_space<vmem>>, vector<32x256xf32>
    %cst_171 = arith.constant 0.000000e+00 : f32
    %194 = vector.broadcast %cst_171 : f32 to vector<32x256xf32>
    %195 = arith.select %24, %193, %194 : vector<32x256xi1>, vector<32x256xf32>
    %c0_172 = arith.constant 0 : index
    %c0_173 = arith.constant 0 : index
    %196 = vector.load %arg13[%c0_172, %c0_173] : memref<288x256xf32, #tpu.memory_space<vmem>>, vector<32x256xf32>
    tpu.vector_store %arg13[%c0_172, %c0_173], %195 {strides = array<i32>} : memref<288x256xf32, #tpu.memory_space<vmem>>, vector<32x256xf32>,
    %c0_174 = arith.constant 0 : index
    %c112_175 = arith.constant 112 : index
    %197 = vector.load %arg12[%c0_174, %c112_175] : memref<32x512xf32, #tpu.memory_space<vmem>>, vector<32x256xf32>
    %c32_176 = arith.constant 32 : index
    %c0_177 = arith.constant 0 : index
    %198 = vector.load %arg13[%c32_176, %c0_177] : memref<288x256xf32, #tpu.memory_space<vmem>>, vector<32x256xf32>
    tpu.vector_store %arg13[%c32_176, %c0_177], %197 {strides = array<i32>} : memref<288x256xf32, #tpu.memory_space<vmem>>, vector<32x256xf32>,
    %c0_178 = arith.constant 0 : index
    %c113_179 = arith.constant 113 : index
    %199 = vector.load %arg12[%c0_178, %c113_179] : memref<32x512xf32, #tpu.memory_space<vmem>>, vector<32x256xf32>
    %cst_180 = arith.constant 0.000000e+00 : f32
    %200 = vector.broadcast %cst_180 : f32 to vector<32x256xf32>
    %201 = arith.select %28, %199, %200 : vector<32x256xi1>, vector<32x256xf32>
    %c64_181 = arith.constant 64 : index
    %c0_182 = arith.constant 0 : index
    %202 = vector.load %arg13[%c64_181, %c0_182] : memref<288x256xf32, #tpu.memory_space<vmem>>, vector<32x256xf32>
    tpu.vector_store %arg13[%c64_181, %c0_182], %201 {strides = array<i32>} : memref<288x256xf32, #tpu.memory_space<vmem>>, vector<32x256xf32>,
    %c0_183 = arith.constant 0 : index
    %c127_184 = arith.constant 127 : index
    %203 = vector.load %arg12[%c0_183, %c127_184] : memref<32x512xf32, #tpu.memory_space<vmem>>, vector<32x256xf32>
    %cst_185 = arith.constant 0.000000e+00 : f32
    %204 = vector.broadcast %cst_185 : f32 to vector<32x256xf32>
    %205 = arith.select %24, %203, %204 : vector<32x256xi1>, vector<32x256xf32>
    %c96_186 = arith.constant 96 : index
    %c0_187 = arith.constant 0 : index
    %206 = vector.load %arg13[%c96_186, %c0_187] : memref<288x256xf32, #tpu.memory_space<vmem>>, vector<32x256xf32>
    tpu.vector_store %arg13[%c96_186, %c0_187], %205 {strides = array<i32>} : memref<288x256xf32, #tpu.memory_space<vmem>>, vector<32x256xf32>,
    %c0_188 = arith.constant 0 : index
    %c128_189 = arith.constant 128 : index
    %207 = vector.load %arg12[%c0_188, %c128_189] : memref<32x512xf32, #tpu.memory_space<vmem>>, vector<32x256xf32>
    %c128_190 = arith.constant 128 : index
    %c0_191 = arith.constant 0 : index
    %208 = vector.load %arg13[%c128_190, %c0_191] : memref<288x256xf32, #tpu.memory_space<vmem>>, vector<32x256xf32>
    tpu.vector_store %arg13[%c128_190, %c0_191], %207 {strides = array<i32>} : memref<288x256xf32, #tpu.memory_space<vmem>>, vector<32x256xf32>,
    %c0_192 = arith.constant 0 : index
    %c129_193 = arith.constant 129 : index
    %209 = vector.load %arg12[%c0_192, %c129_193] : memref<32x512xf32, #tpu.memory_space<vmem>>, vector<32x256xf32>
    %cst_194 = arith.constant 0.000000e+00 : f32
    %210 = vector.broadcast %cst_194 : f32 to vector<32x256xf32>
    %211 = arith.select %28, %209, %210 : vector<32x256xi1>, vector<32x256xf32>
    %c160_195 = arith.constant 160 : index
    %c0_196 = arith.constant 0 : index
    %212 = vector.load %arg13[%c160_195, %c0_196] : memref<288x256xf32, #tpu.memory_space<vmem>>, vector<32x256xf32>
    tpu.vector_store %arg13[%c160_195, %c0_196], %211 {strides = array<i32>} : memref<288x256xf32, #tpu.memory_space<vmem>>, vector<32x256xf32>,
    %c0_197 = arith.constant 0 : index
    %c143_198 = arith.constant 143 : index
    %213 = vector.load %arg12[%c0_197, %c143_198] : memref<32x512xf32, #tpu.memory_space<vmem>>, vector<32x256xf32>
    %cst_199 = arith.constant 0.000000e+00 : f32
    %214 = vector.broadcast %cst_199 : f32 to vector<32x256xf32>
    %215 = arith.select %24, %213, %214 : vector<32x256xi1>, vector<32x256xf32>
    %c192_200 = arith.constant 192 : index
    %c0_201 = arith.constant 0 : index
    %216 = vector.load %arg13[%c192_200, %c0_201] : memref<288x256xf32, #tpu.memory_space<vmem>>, vector<32x256xf32>
    tpu.vector_store %arg13[%c192_200, %c0_201], %215 {strides = array<i32>} : memref<288x256xf32, #tpu.memory_space<vmem>>, vector<32x256xf32>,
    %c0_202 = arith.constant 0 : index
    %c144_203 = arith.constant 144 : index
    %217 = vector.load %arg12[%c0_202, %c144_203] : memref<32x512xf32, #tpu.memory_space<vmem>>, vector<32x256xf32>
    %c224_204 = arith.constant 224 : index
    %c0_205 = arith.constant 0 : index
    %218 = vector.load %arg13[%c224_204, %c0_205] : memref<288x256xf32, #tpu.memory_space<vmem>>, vector<32x256xf32>
    tpu.vector_store %arg13[%c224_204, %c0_205], %217 {strides = array<i32>} : memref<288x256xf32, #tpu.memory_space<vmem>>, vector<32x256xf32>,
    %c0_206 = arith.constant 0 : index
    %c145_207 = arith.constant 145 : index
    %219 = vector.load %arg12[%c0_206, %c145_207] : memref<32x512xf32, #tpu.memory_space<vmem>>, vector<32x256xf32>
    %cst_208 = arith.constant 0.000000e+00 : f32
    %220 = vector.broadcast %cst_208 : f32 to vector<32x256xf32>
    %221 = arith.select %28, %219, %220 : vector<32x256xi1>, vector<32x256xf32>
    %c256_209 = arith.constant 256 : index
    %c0_210 = arith.constant 0 : index
    %222 = vector.load %arg13[%c256_209, %c0_210] : memref<288x256xf32, #tpu.memory_space<vmem>>, vector<32x256xf32>
    tpu.vector_store %arg13[%c256_209, %c0_210], %221 {strides = array<i32>} : memref<288x256xf32, #tpu.memory_space<vmem>>, vector<32x256xf32>,
    %c0_211 = arith.constant 0 : index
    %c0_212 = arith.constant 0 : index
    %223 = vector.load %arg9[%c0_211, %c0_212] : memref<32x288xf32, #tpu.memory_space<vmem>>, vector<32x288xf32>
    %c0_213 = arith.constant 0 : index
    %c0_214 = arith.constant 0 : index
    %224 = vector.load %arg13[%c0_213, %c0_214] : memref<288x256xf32, #tpu.memory_space<vmem>>, vector<288x256xf32>
    %cst_215 = arith.constant dense<0.000000e+00> : vector<32x256xf32>
    %225 = tpu.matmul %223, %224, %cst_215 {dimension_numbers = #tpu.dot_dimension_numbers<[1], [0], [0], [1], [0, 0, 1, 1], [], []>} : vector<32x288xf32>, vector<288x256xf32>, vector<32x256xf32> -> vector<32x256xf32>
    %cst_216 = arith.constant 0.000000e+00 : f32
    %226 = vector.broadcast %cst_216 : f32 to vector<32x256xf32>
    %227 = arith.maximumf %225, %226 : vector<32x256xf32>
    %c0_217 = arith.constant 0 : index
    %c0_218 = arith.constant 0 : index
    %c0_219 = arith.constant 0 : index
    %228 = vector.load %arg10[%c0_217, %c0_218, %c0_219] : memref<1x32x256xf32, #tpu.memory_space<vmem>>, vector<1x32x256xf32>
    %229 = vector.shape_cast %228 : vector<1x32x256xf32> to vector<32x256xf32>
    %230 = vector.shape_cast %227 : vector<32x256xf32> to vector<1x32x256xf32>
    tpu.vector_store %arg10[%c0_217, %c0_218, %c0_219], %230 {strides = array<i32>} : memref<1x32x256xf32, #tpu.memory_space<vmem>>, vector<1x32x256xf32>,
    return
  }
  func.func @transform_0(%arg0: i32) -> (i32, i32, i32) {
    %c0_i32 = arith.constant 0 : i32
    %c0_i32_0 = arith.constant 0 : i32
    %c0_i32_1 = arith.constant 0 : i32
    return %arg0, %c0_i32, %c0_i32_0 : i32, i32, i32
  }
  func.func @transform_1(%arg0: i32) -> (i32, i32) {
    %c0_i32 = arith.constant 0 : i32
    %c0_i32_0 = arith.constant 0 : i32
    %c0_i32_1 = arith.constant 0 : i32
    return %c0_i32, %c0_i32_0 : i32, i32
  }
  func.func @transform_2(%arg0: i32) -> (i32, i32) {
    %c0_i32 = arith.constant 0 : i32
    %c0_i32_0 = arith.constant 0 : i32
    %c0_i32_1 = arith.constant 0 : i32
    return %c0_i32, %c0_i32_0 : i32, i32
  }
  func.func @transform_3(%arg0: i32) -> (i32, i32) {
    %c0_i32 = arith.constant 0 : i32
    %c0_i32_0 = arith.constant 0 : i32
    %c0_i32_1 = arith.constant 0 : i32
    return %c0_i32, %c0_i32_0 : i32, i32
  }
  func.func @transform_4(%arg0: i32) -> (i32, i32) {
    %c0_i32 = arith.constant 0 : i32
    %c0_i32_0 = arith.constant 0 : i32
    %c0_i32_1 = arith.constant 0 : i32
    return %c0_i32, %c0_i32_0 : i32, i32
  }
  func.func @transform_5(%arg0: i32) -> (i32, i32) {
    %c0_i32 = arith.constant 0 : i32
    %c0_i32_0 = arith.constant 0 : i32
    %c0_i32_1 = arith.constant 0 : i32
    return %c0_i32, %c0_i32_0 : i32, i32
  }
  func.func @transform_6(%arg0: i32) -> (i32, i32) {
    %c0_i32 = arith.constant 0 : i32
    %c0_i32_0 = arith.constant 0 : i32
    %c0_i32_1 = arith.constant 0 : i32
    return %c0_i32, %c0_i32_0 : i32, i32
  }
  func.func @transform_7(%arg0: i32) -> (i32, i32) {
    %c0_i32 = arith.constant 0 : i32
    %c0_i32_0 = arith.constant 0 : i32
    %c0_i32_1 = arith.constant 0 : i32
    return %c0_i32, %c0_i32_0 : i32, i32
  }
  func.func @transform_8(%arg0: i32) -> (i32, i32) {
    %c0_i32 = arith.constant 0 : i32
    %c0_i32_0 = arith.constant 0 : i32
    %c0_i32_1 = arith.constant 0 : i32
    return %c0_i32, %c0_i32_0 : i32, i32
  }
  func.func @transform_9(%arg0: i32) -> (i32, i32, i32) {
    %c0_i32 = arith.constant 0 : i32
    %c0_i32_0 = arith.constant 0 : i32
    %c0_i32_1 = arith.constant 0 : i32
    return %arg0, %c0_i32, %c0_i32_0 : i32, i32, i32
  }
  func.func @transform_10(%arg0: i32) -> (i32, i32, i32) {
    %c0_i32 = arith.constant 0 : i32
    %c0_i32_0 = arith.constant 0 : i32
    %c0_i32_1 = arith.constant 0 : i32
    return %arg0, %c0_i32, %c0_i32_0 : i32, i32, i32
  }
}

</mosaic_0001>

<bundles_post_ra>
// kernel: cam_afu_forward.1
= control target key start
LH: loop header
LB: loop body
LE: loop exit
PB: predicated region body
PF: predicated region fallthrough
CT: control target
= control target key end

     0   :  { %s6242_s13 = smov 0   ;;  %s7616_s0 = inlined_call_operand.vmem [shape: f32[2,32,256], index: 0, kind: input, shape index: {}]   ;;  %s7617_s1 = inlined_call_operand.vmem [shape: f32[32,288], index: 1, kind: input, shape index: {}]   ;;  %s7618_s2 = inlined_call_operand.vmem [shape: f32[32,1], index: 2, kind: input, shape index: {}]   ;;  %s7619_s3 = inlined_call_operand.vmem [shape: f32[32,1], index: 3, kind: input, shape index: {}]   ;;  %s7620_s4 = inlined_call_operand.vmem [shape: f32[32,288], index: 4, kind: input, shape index: {}]   ;;  %s7621_s5 = inlined_call_operand.vmem [shape: f32[32,288], index: 5, kind: input, shape index: {}]   ;;  %s7622_s6 = inlined_call_operand.vmem [shape: f32[32,1], index: 6, kind: input, shape index: {}]   ;;  %s7623_s7 = inlined_call_operand.vmem [shape: f32[32,1], index: 7, kind: input, shape index: {}]   ;;  %s7624_s8 = inlined_call_operand.vmem [shape: f32[32,288], index: 8, kind: input, shape index: {}]   ;;  %s7625_s9 = inlined_call_operand.vmem [shape: f32[2,32,256], index: 9, kind: output, shape index: {0}]   ;;  %s7626_s10 = inlined_call_operand.vmem [shape: f32[2,32,256], index: 10, kind: output, shape index: {1}]  }
   0x1 LB: > { %s4533_s14 = sadd.s32 4294967295, %s6175_s13   ;;  %p4537_p0 = scmp.ge.s32.totalorder %s6175_s13, 1  ;;  %s6175_s13 = sphi %s6242_s13, %s21_s13  }
   0x2   : > { %p315_p1 = scmp.lt.s32.totalorder %s6175_s13, 3 }
   0x4   : > { %p316_p2 = pnand %p4537_p0, %p315_p1 }
   0x5   : > { %p358_p3 = scmp.lt.s32.totalorder (!%p316_p2), %s4533_s14, 1  ;;  %v6177_v0 = vmov (!%p316_p2), 0.0   ;;  %s6178_s15 = smov (!%p316_p2), 17   ;;  %v1085_v23 = vld [vmem:[%s7617_s1 + $0x8] sm:$0xff] (!%p316_p2)  ;;  %v381_v24 = vlaneseq (!%p316_p2)  ;;  %vm484_vm0 = vcmask (!%p316_p2), 138240   ;;  %vm565_vm5 = vcmask (!%p316_p2), 130048  }
   0x6   : > { %319 = sbr.rel (%p316_p2) target bundleno = 2370 (0x942), region = 56  ;;  %5192 = vrot.lane.b32.xlu1 (!%p316_p2), %v6177_v0, %s6178_s15  ;;  %s6179_s20 = smov (!%p316_p2), 16   ;;  %1245 = vmatprep.mubr.f32.mxu0 (!%p316_p2), %v1085_v23  ;;  %vm638_vm6 = vcmask (!%p316_p2), 121856   ;;  %vm719_vm11 = vcmask (!%p316_p2), 7168   ;;  %vm816_vm12 = vcmask (!%p316_p2), 1039360   ;;  %vm897_vm13 = vcmask (!%p316_p2), 924672  }
   0x7   : > { %s6180_s21 = smov (!%p316_p2), 15   ;;  %s6181_s22 = smov (!%p316_p2), 1   ;;  %v6359_v25 = vand.u32 (!%p316_p2), 127, %v381_v24  ;;  %vm978_vm14 = vcmask (!%p316_p2), 916480   ;;  %vm1051_vm15 = vcmask (!%p316_p2), 908288  }
   0x8   : > { %s6182_s23 = smov (!%p316_p2), 127   ;;  %s6183_s24 = smov (!%p316_p2), 113  }
   0x9   : > { %s6184_s25 = smov (!%p316_p2), 112   ;;  %s6185_s28 = smov (!%p316_p2), 111   ;;  %v6362_v27 = vadd.s32 (!%p316_p2), 128, %v6359_v25  ;;  %v388_v31 = vand.u32 (!%p316_p2), 15, %v6359_v25 }
   0xb   : > { %v395_v29 = vand.u32 (!%p316_p2), 15, %v6362_v27  ;;  %vm408_vm2 = vcmp.ne.s32.totalorder (!%p316_p2), %v388_v31, 0  ;;  %vm414_vm9 = vcmp.ne.s32.totalorder (!%p316_p2), %v388_v31, 15 }
   0xc   : > { %vm6378_vm4 = vmpackc.low (!%p316_p2), %vm408_vm2, %vm408_vm2 }
   0xd   : > { %s7636_s14 = smov (!%p358_p3, %s4533_s14), 1  ;;  %vm409_vm1 = vcmp.ne.s32.totalorder %v395_v29, 0  ;;  %vm415_vm7 = vcmp.ne.s32.totalorder %v395_v29, 15  ;;  %vm6416_vm10 = vmpackc.low %vm414_vm9, %vm414_vm9 }
   0xe   : > { %s6252_s16 = sshll.u32 %s7636_s14, 6  ;;  %vm6373_vm3 = vmpackc.low %vm409_vm1, %vm409_vm1  ;;  %vm1168_vm1 = vcmask 261120  }
   0xf   : > { %s362_s19 = scalar_lea.vmem %s7616_s0, %s6252_s16  ;;  %vm6406_vm8 = vmpackc.low %vm415_vm7, %vm415_vm7  ;;  %s6939_s14 = scalar_lea.vmem %s7626_s10, %s6252_s16 }
  0x10   : > { %v6258_v1 = vld [vmem:[%s362_s19] sm:$0xff]  ;;  %v6260_v2 = vld [vmem:[%s362_s19 + $0x8] sm:$0xff]  ;;  %v6268_v6 = vld [vmem:[%s362_s19 + $0x10] sm:$0xff]  ;;  %s367_s17 = scalar_lea.vmem %s7625_s9, %s6252_s16 }
  0x11   : > { %v6262_v3 = vld [vmem:[%s362_s19 + $0x20] sm:$0xff]  ;;  %v5196_v4 = vpack.i.bf16 %v6260_v2, %v6258_v1  ;;  %v6266_v5 = vld [vmem:[%s362_s19 + $0x28] sm:$0xff]  ;;  %v6270_v7 = vld [vmem:[%s362_s19 + $0x18] sm:$0xff]  ;;  %v5381_v13 = vpack.i.bf16 %v6268_v6, %v6258_v1  ;;  %v4803_v16 = vpack.c.bf16 %v6268_v6, %v6258_v1  ;;  %v5311_v20 = vpack.i.bf16 %v6177_v0, %v6260_v2 }
  0x12   : > { %v5206_v8 = vpack.i.bf16 %v6266_v5, %v6262_v3  ;;  %v5201_v9 = vpack.i.bf16 %v6270_v7, %v6268_v6  ;;  %v6278_v10 = vld [vmem:[%s362_s19 + $0x30] sm:$0xff]  ;;  %v6280_v11 = vld [vmem:[%s362_s19 + $0x38] sm:$0xff]  ;;  %v4801_v15 = vpack.c.bf16 %v6270_v7, %v6260_v2  ;;  %v5316_v17 = vpack.i.bf16 %v6177_v0, %v6270_v7 }
  0x13   : > { %5197 = vrot.lane.b32.xlu0 %v5196_v4, %s6178_s15  ;;  %v5211_v12 = vpack.i.bf16 %v6280_v11, %v6278_v10  ;;  %v5396_v14 = vpack.i.bf16 %v6278_v10, %v6262_v3  ;;  %v4805_v18 = vpack.c.bf16 %v6280_v11, %v6266_v5  ;;  %v4807_v19 = vpack.c.bf16 %v6278_v10, %v6262_v3 }
  0x14   : > { %5207 = vrot.lane.b32.xlu1 %v5206_v8, %s6178_s15  ;;  %v5326_v21 = vpack.i.bf16 %v6177_v0, %v6266_v5  ;;  %v5331_v22 = vpack.i.bf16 %v6177_v0, %v6280_v11 }
  0x17   : > { %5202 = vrot.lane.b32.xlu0 %v5201_v9, %s6178_s15 }
  0x18   : > { %5217 = vrot.lane.b32.xlu1 %v6177_v0, %s6178_s15 }
  0x1b   : > { %5212 = vrot.lane.b32.xlu0 %v5211_v12, %s6178_s15 }
  0x1c   : > { %5227 = vrot.lane.b32.xlu1 %v5201_v9, %s6179_s20 }
  0x1f   : > { %5222 = vrot.lane.b32.xlu0 %v5196_v4, %s6179_s20 }
  0x20   : > { %5237 = vrot.lane.b32.xlu1 %v5206_v8, %s6179_s20 }
  0x23   : > { %5232 = vrot.lane.b32.xlu0 %v6177_v0, %s6179_s20 }
  0x24   : > { %5247 = vrot.lane.b32.xlu1 %v6177_v0, %s6179_s20 }
  0x27   : > { %5242 = vrot.lane.b32.xlu0 %v5211_v12, %s6179_s20 }
  0x28   : > { %5257 = vrot.lane.b32.xlu1 %v5201_v9, %s6180_s21 }
  0x2b   : > { %5252 = vrot.lane.b32.xlu0 %v5196_v4, %s6180_s21 }
  0x2c   : > { %5267 = vrot.lane.b32.xlu1 %v5206_v8, %s6180_s21 }
  0x2f   : > { %5262 = vrot.lane.b32.xlu0 %v6177_v0, %s6180_s21 }
  0x30   : > { %5277 = vrot.lane.b32.xlu1 %v6177_v0, %s6180_s21 }
  0x33   : > { %5272 = vrot.lane.b32.xlu0 %v5211_v12, %s6180_s21 }
  0x34   : > { %5287 = vrot.lane.b32.xlu1 %v5201_v9, %s6181_s22 }
  0x37   : > { %5282 = vrot.lane.b32.xlu0 %v5196_v4, %s6181_s22 }
  0x38   : > { %5297 = vrot.lane.b32.xlu1 %v5206_v8, %s6181_s22 }
  0x3b   : > { %5292 = vrot.lane.b32.xlu0 %v6177_v0, %s6181_s22 }
  0x3c   : > { %5307 = vrot.lane.b32.xlu1 %v6177_v0, %s6181_s22 }
  0x3f   : > { %5302 = vrot.lane.b32.xlu0 %v5211_v12, %s6181_s22 }
  0x40   : > { %5317 = vrot.lane.b32.xlu1 %v5316_v17, %s6182_s23 }
  0x43   : > { %5312 = vrot.lane.b32.xlu0 %v5311_v20, %s6182_s23 }
  0x44   : > { %5327 = vrot.lane.b32.xlu1 %v5326_v21, %s6182_s23 }
  0x47   : > { %5322 = vrot.lane.b32.xlu0 %v5381_v13, %s6182_s23 }
  0x48   : > { %5337 = vrot.lane.b32.xlu1 %v5396_v14, %s6182_s23 }
  0x4b   : > { %5332 = vrot.lane.b32.xlu0 %v5331_v22, %s6182_s23 }
  0x4c   : > { %5347 = vrot.lane.b32.xlu1 %v5316_v17, %s6183_s24 }
  0x4f   : > { %5342 = vrot.lane.b32.xlu0 %v5311_v20, %s6183_s24 }
  0x50   : > { %5357 = vrot.lane.b32.xlu1 %v5326_v21, %s6183_s24 }
  0x53   : > { %5352 = vrot.lane.b32.xlu0 %v5381_v13, %s6183_s24 }
  0x54   : > { %5367 = vrot.lane.b32.xlu1 %v5396_v14, %s6183_s24 }
  0x57   : > { %5362 = vrot.lane.b32.xlu0 %v5331_v22, %s6183_s24 }
  0x58   : > { %5377 = vrot.lane.b32.xlu1 %v5316_v17, %s6184_s25 }
  0x5b   : > { %5372 = vrot.lane.b32.xlu0 %v5311_v20, %s6184_s25 }
  0x5c   : > { %5387 = vrot.lane.b32.xlu1 %v5326_v21, %s6184_s25 }
  0x5f   : > { %5382 = vrot.lane.b32.xlu0 %v5381_v13, %s6184_s25 }
  0x60   : > { %5397 = vrot.lane.b32.xlu1 %v5396_v14, %s6184_s25 }
  0x63   : > { %5392 = vrot.lane.b32.xlu0 %v5331_v22, %s6184_s25 }
  0x64   : > { %5407 = vrot.lane.b32.xlu1 %v5316_v17, %s6185_s28 }
  0x67   : > { %5402 = vrot.lane.b32.xlu0 %v5311_v20, %s6185_s28 }
  0x68   : > { %5417 = vrot.lane.b32.xlu1 %v5326_v21, %s6185_s28 }
  0x6b   : > { %5412 = vrot.lane.b32.xlu0 %v5381_v13, %s6185_s28 }
  0x6c   : > { %5427 = vrot.lane.b32.xlu1 %v5396_v14, %s6185_s28 }
  0x6f   : > { %5422 = vrot.lane.b32.xlu0 %v5331_v22, %s6185_s28 }
  0x78   : > { %v5193_v26 = vpop.permute.xlu1 %5192 }
  0x79   : > { %v5194_v32 = vunpack.i.l.bf16 %v5193_v26  ;;  %v5195_v36 = vunpack.i.h.bf16 %v5193_v26 }
  0x85   : > { %v5198_v28 = vpop.permute.xlu0 %5197 }
  0x86   : > { %v5208_v30 = vpop.permute.xlu1 %5207  ;;  %v5200_v33 = vunpack.i.h.bf16 %v5198_v28  ;;  %v5199_v34 = vunpack.i.l.bf16 %v5198_v28 }
  0x87   : > { %v5210_v40 = vunpack.i.h.bf16 %v5208_v30  ;;  %v5209_v41 = vunpack.i.l.bf16 %v5208_v30 }
  0x88   : > { %v486_v42 = vsel %vm484_vm0, %v5199_v34, %v5200_v33  ;;  %v485_v43 = vsel %vm484_vm0, %v5194_v32, %v5199_v34 }
  0x89   : > { %v5203_v35 = vpop.permute.xlu0 %5202  ;;  %v490_v58 = vsel %vm484_vm0, %v5209_v41, %v5210_v40 }
  0x8a   : > { %v5205_v37 = vunpack.i.h.bf16 %v5203_v35  ;;  %v5204_v38 = vunpack.i.l.bf16 %v5203_v35  ;;  %v5218_v39 = vpop.permute.xlu1 %5217 }
  0x8b   : > { %v5220_v44 = vunpack.i.h.bf16 %v5218_v39  ;;  %v5219_v45 = vunpack.i.l.bf16 %v5218_v39 }
  0x8c   : > { %v488_v46 = vsel %vm484_vm0, %v5204_v38, %v5205_v37  ;;  %v487_v48 = vsel %vm484_vm0, %v5195_v36, %v5204_v38 }
  0x8d   : > { %v5213_v49 = vpop.permute.xlu0 %5212  ;;  %v4757_v50 = vpack.c.bf16 %v488_v46, %v486_v42  ;;  %v4760_v51 = vpack.c.bf16 %v487_v48, %v485_v43  ;;  %v489_v59 = vsel %vm484_vm0, %v5219_v45, %v5209_v41 }
  0x8e   : > { %v5215_v53 = vunpack.i.h.bf16 %v5213_v49  ;;  %v5214_v54 = vunpack.i.l.bf16 %v5213_v49  ;;  %v5228_v55 = vpop.permute.xlu1 %5227 }
  0x8f   : > { %v5230_v56 = vunpack.i.h.bf16 %v5228_v55  ;;  %v5229_v57 = vunpack.i.l.bf16 %v5228_v55  ;;  %4759 = vmatprep.subr.msk.bf16.mxu0 %vm6373_vm3, %v4757_v50  ;;  %v4164_v55 = vld [vmem:[%s7624_s8 + $0x48] sm:$0xff] }
  0x90   : > { %v491_v60 = vsel %vm484_vm0, %v5220_v44, %v5214_v54  ;;  %v492_v61 = vsel %vm484_vm0, %v5214_v54, %v5215_v53  ;;  %4762 = vmatpush1.bf16.msk.msra.mxu0 %vm6378_vm4, %v4760_v51 }
  0x91   : > { %v5223_v62 = vpop.permute.xlu0 %5222  ;;  %v4763_v63 = vpack.c.bf16 %v492_v61, %v490_v58  ;;  %v4766_v4 = vpack.c.bf16 %v491_v60, %v489_v59  ;;  %v569_v13 = vsel %vm565_vm5, %v5229_v57, %v5230_v56 }
  0x92   : > { %v5225_v8 = vunpack.i.h.bf16 %v5223_v62  ;;  %v5224_v9 = vunpack.i.l.bf16 %v5223_v62  ;;  %v5238_v12 = vpop.permute.xlu1 %5237 }
  0x93   : > { %4765 = vmatprep.subr.msk.bf16.mxu0 %vm6373_vm3, %v4763_v63  ;;  %v5240_v24 = vunpack.i.h.bf16 %v5238_v12  ;;  %v5239_v26 = vunpack.i.l.bf16 %v5238_v12 }
  0x94   : > { %4768 = vmatpush1.bf16.msk.msra.mxu0 %vm6378_vm4, %v4766_v4  ;;  %v567_v14 = vsel %vm565_vm5, %v5224_v9, %v5225_v8  ;;  %v4160_v8 = vld [vmem:[%s7624_s8 + $0x28] sm:$0xff] }
  0x95   : > { %v5233_v17 = vpop.permute.xlu0 %5232  ;;  %v4769_v20 = vpack.c.bf16 %v569_v13, %v567_v14  ;;  %v571_v41 = vsel %vm565_vm5, %v5239_v26, %v5240_v24 }
  0x96   : > { %v5235_v21 = vunpack.i.h.bf16 %v5233_v17  ;;  %v5234_v22 = vunpack.i.l.bf16 %v5233_v17  ;;  %v5248_v23 = vpop.permute.xlu1 %5247 }
  0x97   : > { %4770 = vmatprep.subr.bf16.mxu0 %v4769_v20  ;;  %v5250_v28 = vunpack.i.h.bf16 %v5248_v23  ;;  %v5249_v30 = vunpack.i.l.bf16 %v5248_v23 }
  0x98   : > { %v566_v32 = vsel %vm565_vm5, %v5234_v22, %v5224_v9  ;;  %v568_v33 = vsel %vm565_vm5, %v5235_v21, %v5229_v57 }
  0x99   : > { %v5243_v34 = vpop.permute.xlu0 %5242  ;;  %v4771_v35 = vpack.c.bf16 %v568_v33, %v566_v32  ;;  %v570_v43 = vsel %vm565_vm5, %v5249_v30, %v5239_v26 }
  0x9a   : > { %v5245_v36 = vunpack.i.h.bf16 %v5243_v34  ;;  %v5244_v37 = vunpack.i.l.bf16 %v5243_v34  ;;  %v5258_v38 = vpop.permute.xlu1 %5257 }
  0x9b   : > { %v5260_v39 = vunpack.i.h.bf16 %v5258_v38  ;;  %v5259_v40 = vunpack.i.l.bf16 %v5258_v38  ;;  %4772 = vmatpush1.bf16.msra.mxu0 %v4771_v35 }
  0x9c   : > { %v573_v42 = vsel %vm565_vm5, %v5244_v37, %v5245_v36  ;;  %v572_v44 = vsel %vm565_vm5, %v5250_v28, %v5244_v37 }
  0x9d   : > { %v5253_v45 = vpop.permute.xlu0 %5252  ;;  %v4773_v46 = vpack.c.bf16 %v573_v42, %v571_v41  ;;  %v4775_v48 = vpack.c.bf16 %v572_v44, %v570_v43  ;;  %v642_v49 = vsel %vm638_vm6, %v5259_v40, %v5260_v39 }
  0x9e   : > { %v5255_v50 = vunpack.i.h.bf16 %v5253_v45  ;;  %v5254_v51 = vunpack.i.l.bf16 %v5253_v45  ;;  %v5268_v53 = vpop.permute.xlu1 %5267 }
  0x9f   : > { %4774 = vmatprep.subr.bf16.mxu0 %v4773_v46  ;;  %v5270_v59 = vunpack.i.h.bf16 %v5268_v53  ;;  %v5269_v60 = vunpack.i.l.bf16 %v5268_v53 }
  0xa0   : > { %v640_v54 = vsel %vm638_vm6, %v5254_v51, %v5255_v50  ;;  %4776 = vmatpush1.bf16.msra.mxu0 %v4775_v48 }
  0xa1   : > { %v5263_v56 = vpop.permute.xlu0 %5262  ;;  %v4777_v57 = vpack.c.bf16 %v642_v49, %v640_v54  ;;  %v644_v20 = vsel %vm638_vm6, %v5269_v60, %v5270_v59 }
  0xa2   : > { %v5265_v27 = vunpack.i.h.bf16 %v5263_v56  ;;  %v5264_v29 = vunpack.i.l.bf16 %v5263_v56  ;;  %v5278_v58 = vpop.permute.xlu1 %5277 }
  0xa3   : > { %4779 = vmatprep.subr.msk.bf16.mxu0 %vm6406_vm8, %v4777_v57  ;;  %v5280_v63 = vunpack.i.h.bf16 %v5278_v58  ;;  %v5279_v4 = vunpack.i.l.bf16 %v5278_v58 }
  0xa4   : > { %v641_v61 = vsel %vm638_vm6, %v5265_v27, %v5259_v40  ;;  %v639_v62 = vsel %vm638_vm6, %v5264_v29, %v5254_v51 }
  0xa5   : > { %v5273_v25 = vpop.permute.xlu0 %5272  ;;  %v4780_v31 = vpack.c.bf16 %v641_v61, %v639_v62  ;;  %v643_v21 = vsel %vm638_vm6, %v5279_v4, %v5269_v60 }
  0xa6   : > { %v5275_v9 = vunpack.i.h.bf16 %v5273_v25  ;;  %v5274_v12 = vunpack.i.l.bf16 %v5273_v25  ;;  %v5288_v13 = vpop.permute.xlu1 %5287 }
  0xa7   : > { %v5290_v14 = vunpack.i.h.bf16 %v5288_v13  ;;  %v5289_v17 = vunpack.i.l.bf16 %v5288_v13  ;;  %4782 = vmatpush1.bf16.msk.msra.mxu0 %vm6416_vm10, %v4780_v31 }
  0xa8   : > { %v645_v22 = vsel %vm638_vm6, %v5280_v63, %v5274_v12  ;;  %v646_v23 = vsel %vm638_vm6, %v5274_v12, %v5275_v9 }
  0xa9   : > { %v5283_v24 = vpop.permute.xlu0 %5282  ;;  %v4783_v26 = vpack.c.bf16 %v646_v23, %v644_v20  ;;  %v4786_v28 = vpack.c.bf16 %v645_v22, %v643_v21  ;;  %v723_v30 = vsel %vm719_vm11, %v5289_v17, %v5290_v14 }
  0xaa   : > { %v5285_v32 = vunpack.i.h.bf16 %v5283_v24  ;;  %v5284_v33 = vunpack.i.l.bf16 %v5283_v24  ;;  %v5298_v34 = vpop.permute.xlu1 %5297 }
  0xab   : > { %4785 = vmatprep.subr.msk.bf16.mxu0 %vm6406_vm8, %v4783_v26  ;;  %v5300_v41 = vunpack.i.h.bf16 %v5298_v34  ;;  %v5299_v42 = vunpack.i.l.bf16 %v5298_v34 }
  0xac   : > { %v721_v35 = vsel %vm719_vm11, %v5284_v33, %v5285_v32  ;;  %4788 = vmatpush1.bf16.msk.msra.mxu0 %vm6416_vm10, %v4786_v28 }
  0xad   : > { %v5293_v36 = vpop.permute.xlu0 %5292  ;;  %v4789_v37 = vpack.c.bf16 %v723_v30, %v721_v35  ;;  %v725_v54 = vsel %vm719_vm11, %v5299_v42, %v5300_v41 }
  0xae   : > { %v5295_v38 = vunpack.i.h.bf16 %v5293_v36  ;;  %v5294_v39 = vunpack.i.l.bf16 %v5293_v36  ;;  %v5308_v40 = vpop.permute.xlu1 %5307 }
  0xaf   : > { %4791 = vmatprep.subr.msk.bf16.mxu0 %vm6373_vm3, %v4789_v37  ;;  %v5310_v45 = vunpack.i.h.bf16 %v5308_v40  ;;  %v5309_v46 = vunpack.i.l.bf16 %v5308_v40 }
  0xb0   : > { %v722_v43 = vsel %vm719_vm11, %v5295_v38, %v5289_v17  ;;  %v720_v44 = vsel %vm719_vm11, %v5294_v39, %v5284_v33 }
  0xb1   : > { %v5303_v48 = vpop.permute.xlu0 %5302  ;;  %v4792_v49 = vpack.c.bf16 %v722_v43, %v720_v44  ;;  %v724_v56 = vsel %vm719_vm11, %v5309_v46, %v5299_v42 }
  0xb2   : > { %v5305_v50 = vunpack.i.h.bf16 %v5303_v48  ;;  %v5304_v51 = vunpack.i.l.bf16 %v5303_v48  ;;  %v5318_v53 = vpop.permute.xlu1 %5317 }
  0xb3   : > { %4794 = vmatpush1.bf16.msk.msra.mxu0 %vm6378_vm4, %v4792_v49  ;;  %v5320_v61 = vunpack.i.h.bf16 %v5318_v53  ;;  %v5319_v62 = vunpack.i.l.bf16 %v5318_v53 }
  0xb4   : > { %v726_v57 = vsel %vm719_vm11, %v5310_v45, %v5304_v51  ;;  %v727_v27 = vsel %vm719_vm11, %v5304_v51, %v5305_v50 }
  0xb5   : > { %v5313_v29 = vpop.permute.xlu0 %5312  ;;  %v4795_v58 = vpack.c.bf16 %v727_v27, %v725_v54  ;;  %v4798_v59 = vpack.c.bf16 %v726_v57, %v724_v56  ;;  %v820_v13 = vsel %vm816_vm12, %v5319_v62, %v5320_v61 }
  0xb6   : > { %v5328_v60 = vpop.permute.xlu1 %5327  ;;  %v5315_v63 = vunpack.i.h.bf16 %v5313_v29  ;;  %v5314_v4 = vunpack.i.l.bf16 %v5313_v29 }
  0xb7   : > { %4797 = vmatprep.subr.msk.bf16.mxu0 %vm6373_vm3, %v4795_v58  ;;  %v5330_v20 = vunpack.i.h.bf16 %v5328_v60  ;;  %v5329_v21 = vunpack.i.l.bf16 %v5328_v60 }
  0xb8   : > { %4800 = vmatpush1.bf16.msk.msra.mxu0 %vm6378_vm4, %v4798_v59  ;;  %v818_v14 = vsel %vm816_vm12, %v5314_v4, %v5315_v63 }
  0xb9   : > { %v5323_v25 = vpop.permute.xlu0 %5322  ;;  %4802 = vmatprep.subr.bf16.mxu0 %v4801_v15  ;;  %v4809_v26 = vpack.c.bf16 %v820_v13, %v818_v14 }
  0xba   : > { %v5338_v31 = vpop.permute.xlu1 %5337  ;;  %v5325_v9 = vunpack.i.h.bf16 %v5323_v25  ;;  %v5324_v12 = vunpack.i.l.bf16 %v5323_v25 }
  0xbb   : > { %v5340_v24 = vunpack.i.h.bf16 %v5338_v31  ;;  %v5339_v5 = vunpack.i.l.bf16 %v5338_v31 }
  0xbc   : > { %4804 = vmatpush1.bf16.msra.mxu0 %v4803_v16  ;;  %v819_v22 = vsel %vm816_vm12, %v5325_v9, %v5319_v62  ;;  %v817_v23 = vsel %vm816_vm12, %v5324_v12, %v5314_v4  ;;  %v822_v16 = vsel %vm816_vm12, %v5329_v21, %v5330_v20 }
  0xbd   : > { %v5333_v17 = vpop.permute.xlu0 %5332  ;;  %4806 = vmatprep.subr.bf16.mxu0 %v4805_v18  ;;  %v4812_v33 = vpack.c.bf16 %v819_v22, %v817_v23  ;;  %v821_v10 = vsel %vm816_vm12, %v5339_v5, %v5329_v21 }
  0xbe   : > { %v5335_v2 = vunpack.i.h.bf16 %v5333_v17  ;;  %v5334_v7 = vunpack.i.l.bf16 %v5333_v17  ;;  %v5348_v15 = vpop.permute.xlu1 %5347 }
  0xbf   : > { %v5350_v1 = vunpack.i.h.bf16 %v5348_v15  ;;  %v5349_v6 = vunpack.i.l.bf16 %v5348_v15 }
  0xc0   : > { %v824_v28 = vsel %vm816_vm12, %v5334_v7, %v5335_v2  ;;  %4808 = vmatpush1.bf16.msra.mxu0 %v4807_v19  ;;  %v823_v34 = vsel %vm816_vm12, %v5340_v24, %v5334_v7 }
  0xc1   : > { %v5343_v11 = vpop.permute.xlu0 %5342  ;;  %4811 = vmatprep.subr.msk.bf16.mxu0 %vm6406_vm8, %v4809_v26  ;;  %v4815_v35 = vpack.c.bf16 %v824_v28, %v822_v16  ;;  %v901_v36 = vsel %vm897_vm13, %v5349_v6, %v5350_v1  ;;  %v4818_v40 = vpack.c.bf16 %v823_v34, %v821_v10 }
  0xc2   : > { %v5345_v18 = vunpack.i.h.bf16 %v5343_v11  ;;  %v5344_v30 = vunpack.i.l.bf16 %v5343_v11  ;;  %v5358_v32 = vpop.permute.xlu1 %5357 }
  0xc3   : > { %v5360_v41 = vunpack.i.h.bf16 %v5358_v32  ;;  %v5359_v42 = vunpack.i.l.bf16 %v5358_v32 }
  0xc4   : > { %v899_v3 = vsel %vm897_vm13, %v5344_v30, %v5345_v18  ;;  %4814 = vmatpush1.bf16.msk.msra.mxu0 %vm6416_vm10, %v4812_v33 }
  0xc5   : > { %v5353_v19 = vpop.permute.xlu0 %5352  ;;  %4817 = vmatprep.subr.msk.bf16.mxu0 %vm6406_vm8, %v4815_v35  ;;  %v4821_v43 = vpack.c.bf16 %v901_v36, %v899_v3  ;;  %v903_v27 = vsel %vm897_vm13, %v5359_v42, %v5360_v41  ;;  %v1088_v41 = vld [vmem:[%s7617_s1 + $0x20] sm:$0xff] }
  0xc6   : > { %v5355_v37 = vunpack.i.h.bf16 %v5353_v19  ;;  %v5354_v38 = vunpack.i.l.bf16 %v5353_v19  ;;  %v5368_v39 = vpop.permute.xlu1 %5367 }
  0xc7   : > { %v5370_v46 = vunpack.i.h.bf16 %v5368_v39  ;;  %v5369_v48 = vunpack.i.l.bf16 %v5368_v39 }
  0xc8   : > { %v900_v44 = vsel %vm897_vm13, %v5355_v37, %v5349_v6  ;;  %v898_v45 = vsel %vm897_vm13, %v5354_v38, %v5344_v30  ;;  %4820 = vmatpush1.bf16.msk.msra.mxu0 %vm6416_vm10, %v4818_v40  ;;  %v1084_v38 = vld [vmem:[%s7617_s1] sm:$0xff] }
  0xc9   : > { %v5363_v49 = vpop.permute.xlu0 %5362  ;;  %4823 = vmatprep.subr.msk.bf16.mxu0 %vm6373_vm3, %v4821_v43  ;;  %v4824_v50 = vpack.c.bf16 %v900_v44, %v898_v45  ;;  %v902_v29 = vsel %vm897_vm13, %v5369_v48, %v5359_v42 }
  0xca   : > { %v5365_v51 = vunpack.i.h.bf16 %v5363_v49  ;;  %v5364_v53 = vunpack.i.l.bf16 %v5363_v49  ;;  %v5378_v54 = vpop.permute.xlu1 %5377 }
  0xcb   : > { %v5380_v56 = vunpack.i.h.bf16 %v5378_v54  ;;  %v5379_v57 = vunpack.i.l.bf16 %v5378_v54 }
  0xcc   : > { %v904_v58 = vsel %vm897_vm13, %v5370_v46, %v5364_v53  ;;  %v905_v59 = vsel %vm897_vm13, %v5364_v53, %v5365_v51  ;;  %4826 = vmatpush1.bf16.msk.msra.mxu0 %vm6378_vm4, %v4824_v50  ;;  %v1087_v53 = vld [vmem:[%s7617_s1 + $0x18] sm:$0xff] }
  0xcd   : > { %v5373_v60 = vpop.permute.xlu0 %5372  ;;  %v4827_v61 = vpack.c.bf16 %v905_v59, %v903_v27  ;;  %v4830_v62 = vpack.c.bf16 %v904_v58, %v902_v29  ;;  %v982_v31 = vsel %vm978_vm14, %v5379_v57, %v5380_v56 }
  0xce   : > { %v5375_v63 = vunpack.i.h.bf16 %v5373_v60  ;;  %v5374_v4 = vunpack.i.l.bf16 %v5373_v60  ;;  %v5388_v25 = vpop.permute.xlu1 %5387 }
  0xcf   : > { %4829 = vmatprep.subr.msk.bf16.mxu0 %vm6373_vm3, %v4827_v61  ;;  %v5390_v21 = vunpack.i.h.bf16 %v5388_v25  ;;  %v5389_v2 = vunpack.i.l.bf16 %v5388_v25  ;;  %v1094_v25 = vld [vmem:[%s7617_s1 + $0x50] sm:$0xff] }
  0xd0   : > { %4832 = vmatpush1.bf16.msk.msra.mxu0 %vm6378_vm4, %v4830_v62  ;;  %v980_v9 = vsel %vm978_vm14, %v5374_v4, %v5375_v63  ;;  %v1090_v62 = vld [vmem:[%s7617_s1 + $0x30] sm:$0xff] }
  0xd1   : > { %v5383_v12 = vpop.permute.xlu0 %5382  ;;  %v4833_v13 = vpack.c.bf16 %v982_v31, %v980_v9  ;;  %v984_v16 = vsel %vm978_vm14, %v5389_v2, %v5390_v21  ;;  %v1093_v31 = vld [vmem:[%s7617_s1 + $0x48] sm:$0xff]  ;;  %v1086_v9 = vld [vmem:[%s7617_s1 + $0x10] sm:$0xff] }
  0xd2   : > { %v5385_v14 = vunpack.i.h.bf16 %v5383_v12  ;;  %v5384_v17 = vunpack.i.l.bf16 %v5383_v12  ;;  %v5398_v20 = vpop.permute.xlu1 %5397  ;;  %v1089_v12 = vld [vmem:[%s7617_s1 + $0x28] sm:$0xff] }
  0xd3   : > { %4834 = vmatprep.subr.bf16.mxu0 %v4833_v13  ;;  %v5400_v7 = vunpack.i.h.bf16 %v5398_v20  ;;  %v5399_v15 = vunpack.i.l.bf16 %v5398_v20  ;;  %v1092_v13 = vld [vmem:[%s7617_s1 + $0x40] sm:$0xff] }
  0xd4   : > { %v979_v22 = vsel %vm978_vm14, %v5384_v17, %v5374_v4  ;;  %v981_v23 = vsel %vm978_vm14, %v5385_v14, %v5379_v57  ;;  %v1091_v57 = vld [vmem:[%s7617_s1 + $0x38] sm:$0xff] }
  0xd5   : > { %v5393_v24 = vpop.permute.xlu0 %5392  ;;  %v4835_v26 = vpack.c.bf16 %v981_v23, %v979_v22  ;;  %v983_v30 = vsel %vm978_vm14, %v5399_v15, %v5389_v2  ;;  %v1095_v14 = vld [vmem:[%s7617_s1 + $0x58] sm:$0xff] }
  0xd6   : > { %v5395_v28 = vunpack.i.h.bf16 %v5393_v24  ;;  %v5394_v1 = vunpack.i.l.bf16 %v5393_v24  ;;  %v5408_v6 = vpop.permute.xlu1 %5407 }
  0xd7   : > { %4836 = vmatpush1.bf16.msra.mxu0 %v4835_v26  ;;  %v5410_v5 = vunpack.i.h.bf16 %v5408_v6  ;;  %v5409_v11 = vunpack.i.l.bf16 %v5408_v6 }
  0xd8   : > { %v986_v18 = vsel %vm978_vm14, %v5394_v1, %v5395_v28  ;;  %v985_v32 = vsel %vm978_vm14, %v5400_v7, %v5394_v1 }
  0xd9   : > { %v5403_v33 = vpop.permute.xlu0 %5402  ;;  %v4837_v34 = vpack.c.bf16 %v986_v18, %v984_v16  ;;  %v4839_v35 = vpack.c.bf16 %v985_v32, %v983_v30  ;;  %v1055_v36 = vsel %vm1051_vm15, %v5409_v11, %v5410_v5 }
  0xda   : > { %v5405_v3 = vunpack.i.h.bf16 %v5403_v33  ;;  %v5404_v10 = vunpack.i.l.bf16 %v5403_v33  ;;  %v5418_v19 = vpop.permute.xlu1 %5417 }
  0xdb   : > { %4838 = vmatprep.subr.bf16.mxu0 %v4837_v34  ;;  %v5420_v42 = vunpack.i.h.bf16 %v5418_v19  ;;  %v5419_v43 = vunpack.i.l.bf16 %v5418_v19 }
  0xdc   : > { %v1053_v37 = vsel %vm1051_vm15, %v5404_v10, %v5405_v3  ;;  %4840 = vmatpush1.bf16.msra.mxu0 %v4839_v35 }
  0xdd   : > { %v5413_v39 = vpop.permute.xlu0 %5412  ;;  %v4841_v40 = vpack.c.bf16 %v1055_v36, %v1053_v37  ;;  %v1057_v27 = vsel %vm1051_vm15, %v5419_v43, %v5420_v42 }
  0xde   : > { %v5415_v44 = vunpack.i.h.bf16 %v5413_v39  ;;  %v5414_v45 = vunpack.i.l.bf16 %v5413_v39  ;;  %v5428_v46 = vpop.permute.xlu1 %5427 }
  0xdf   : > { %1246 = vmatmul.mubr.f32.vlgmr.msra.gmra.mrb[0].mxu0 %v1084_v38  ;;  %4843 = vmatprep.subr.msk.bf16.mxu0 %vm6406_vm8, %v4841_v40  ;;  %v5429_v48 = vunpack.i.l.bf16 %v5428_v46  ;;  %v5430_v51 = vunpack.i.h.bf16 %v5428_v46 }
  0xe0   : > { %v1054_v49 = vsel %vm1051_vm15, %v5415_v44, %v5409_v11  ;;  %v1052_v50 = vsel %vm1051_vm15, %v5414_v45, %v5404_v10  ;;  %1251 = vmatprep.mubr.f32.mxu0 %v1088_v41  ;;  %v6186_v10 = vmov 0  }
  0xe1   : > { %v4844_v54 = vpack.c.bf16 %v1054_v49, %v1052_v50  ;;  %v5423_v56 = vpop.permute.xlu0 %5422  ;;  %v1056_v29 = vsel %vm1051_vm15, %v5429_v48, %v5419_v43  ;;  %5431 = vset.pattern.permute.xlu1 %v6186_v10  ;;  %5432 = vset.pattern.permute.xlu0 %v6186_v10 }
  0xe2   : > { %v5425_v58 = vunpack.i.h.bf16 %v5423_v56  ;;  %v5424_v59 = vunpack.i.l.bf16 %v5423_v56 }
  0xe3   : > { %1252 = vmatmul.mubr.f32.gmra.mrb[2].mxu0 %v1087_v53 }
  0xe4   : > { %v1058_v60 = vsel %vm1051_vm15, %v5430_v51, %v5424_v59  ;;  %v1059_v61 = vsel %vm1051_vm15, %v5424_v59, %v5425_v58  ;;  %4846 = vmatpush1.bf16.msk.msra.mxu0 %vm6416_vm10, %v4844_v54  ;;  %1257 = vmatprep.mubr.f32.mxu0 %v1091_v57 }
  0xe5   : > { %v4850_v63 = vpack.c.bf16 %v1058_v60, %v1056_v29  ;;  %v4847_v4 = vpack.c.bf16 %v1059_v61, %v1057_v27 }
  0xe7   : > { %1258 = vmatmul.mubr.f32.gmra.mrb[4].mxu0 %v1090_v62  ;;  %4849 = vmatprep.subr.msk.bf16.mxu0 %vm6406_vm8, %v4847_v4 }
  0xe8   : > { %4852 = vmatpush1.bf16.msk.msra.mxu0 %vm6416_vm10, %v4850_v63  ;;  %1263 = vmatprep.mubr.f32.mxu0 %v1094_v25 }
  0xeb   : > { %1264 = vmatmul.mubr.f32.gmra.mrb[6].mxu0 %v1093_v31 }
  0xec   : > { %1334 = vmatprep.mubr.f32.mxu0 %v6177_v0 }
  0xef   : > { %4544 = vmatmul.mubr.msk.f32.vlgmr.msra.gmra.mrb[0].mxu0 %vm1168_vm1, %v1086_v9 }
  0xf0   : > { %1340 = vmatprep.mubr.f32.mxu0 %v6177_v0 }
  0xf3   : > { %4545 = vmatmul.mubr.msk.f32.gmra.mrb[2].mxu0 %vm1168_vm1, %v1089_v12  ;;  %v1411_v12 = vld [vmem:[%s7618_s2] sm:$0xff] }
  0xf4   : > { %1346 = vmatprep.mubr.f32.mxu0 %v6177_v0 }
  0xf7   : > { %4546 = vmatmul.mubr.msk.f32.gmra.mrb[4].mxu0 %vm1168_vm1, %v1092_v13 }
  0xf8   : > { %1352 = vmatprep.mubr.f32.mxu0 %v6177_v0 }
  0xfb   : > { %4547 = vmatmul.mubr.msk.f32.gmra.mrb[6].mxu0 %vm1168_vm1, %v1095_v14 }
 0x1c2   : > { %v6555_v17 = vpop.f32.mrb[0].mxu0 }
 0x1c3   : > { %v6557_v20 = vpop.f32.mrb[1].mxu0  ;;  %v1375_v21 = vmul.f32 %v6555_v17, %v6555_v17 }
 0x1c4   : > { %v1359_v2 = vadd.f32 %v6557_v20, %v6555_v17  ;;  %v1376_v7 = vmul.f32 %v6557_v20, %v6557_v20 }
 0x1c6   : > { %1360 = vadd.xlane.f32.xlu0 %v1359_v2  ;;  %v6565_v15 = vpop.f32.mrb[2].mxu0  ;;  %v1383_v22 = vadd.f32 %v1376_v7, %v1375_v21  ;;  %v1427_v2 = vld [vmem:[%s7619_s3] sm:$0xff]  ;;  %v1412_v7 = vld [vmem:[%s7618_s2 + $0x8] sm:$0xff] }
 0x1c7   : > { %v6567_v23 = vpop.f32.mrb[3].mxu0  ;;  %v1377_v24 = vmul.f32 %v6565_v15, %v6565_v15 }
 0x1c8   : > { %v1362_v26 = vadd.f32 %v6567_v23, %v6565_v15  ;;  %v1378_v28 = vmul.f32 %v6567_v23, %v6567_v23 }
 0x1ca   : > { %1384 = vadd.xlane.f32.xlu0 %v1383_v22  ;;  %1363 = vadd.xlane.f32.xlu1 %v1362_v26  ;;  %v6575_v1 = vpop.f32.mrb[4].mxu0  ;;  %v1386_v6 = vadd.f32 %v1378_v28, %v1377_v24 }
 0x1cb   : > { %v6577_v5 = vpop.f32.mrb[5].mxu0  ;;  %v1379_v11 = vmul.f32 %v6575_v1, %v6575_v1 }
 0x1cc   : > { %v1365_v16 = vadd.f32 %v6577_v5, %v6575_v1  ;;  %v1380_v18 = vmul.f32 %v6577_v5, %v6577_v5 }
 0x1ce   : > { %1387 = vadd.xlane.f32.xlu0 %v1386_v6  ;;  %1366 = vadd.xlane.f32.xlu1 %v1365_v16  ;;  %v6585_v30 = vpop.f32.mrb[6].mxu0  ;;  %v1389_v32 = vadd.f32 %v1380_v18, %v1379_v11  ;;  %v1428_v6 = vld [vmem:[%s7619_s3 + $0x8] sm:$0xff] }
 0x1cf   : > { %v6587_v33 = vpop.f32.mrb[7].mxu0  ;;  %v1381_v34 = vmul.f32 %v6585_v30, %v6585_v30 }
 0x1d0   : > { %v1368_v35 = vadd.f32 %v6587_v33, %v6585_v30  ;;  %v1382_v36 = vmul.f32 %v6587_v33, %v6587_v33 }
 0x1d2   : > { %1390 = vadd.xlane.f32.xlu1 %v1389_v32  ;;  %1369 = vadd.xlane.f32.xlu0 %v1368_v35  ;;  %v1392_v3 = vadd.f32 %v1382_v36, %v1381_v34  ;;  %v1413_v32 = vld [vmem:[%s7618_s2 + $0x10] sm:$0xff]  ;;  %v1414_v36 = vld [vmem:[%s7618_s2 + $0x18] sm:$0xff] }
 0x1d6   : > { %1393 = vadd.xlane.f32.xlu0 %v1392_v3 }
 0x253   : > { %v1361_v19 = vpop.xlane.xlu0 %1360 }
 0x254   : > { %v1371_v37 = vmul.f32 0.00390625, %v1361_v19  ;;  %v1429_v19 = vld [vmem:[%s7619_s3 + $0x10] sm:$0xff] }
 0x256   : > { %v1399_v40 = vmul.f32 %v1371_v37, %v1371_v37 }
 0x257   : > { %v1385_v38 = vpop.xlane.xlu0 %1384  ;;  %v1364_v39 = vpop.xlane.xlu1 %1363 }
 0x258   : > { %v1395_v41 = vmul.f32 0.00390625, %v1385_v38  ;;  %v1372_v42 = vmul.f32 0.00390625, %v1364_v39  ;;  %v1430_v39 = vld [vmem:[%s7619_s3 + $0x18] sm:$0xff] }
 0x25a   : > { %v1403_v43 = vsub.f32 %v1395_v41, %v1399_v40  ;;  %v1400_v48 = vmul.f32 %v1372_v42, %v1372_v42 }
 0x25b   : > { %v1388_v44 = vpop.xlane.xlu0 %1387  ;;  %v1367_v45 = vpop.xlane.xlu1 %1366 }
 0x25c   : > { %v1407_v46 = vmax.f32 %v1403_v43, 0.0  ;;  %v1396_v49 = vmul.f32 0.00390625, %v1388_v44  ;;  %v1373_v50 = vmul.f32 0.00390625, %v1367_v45 }
 0x25e   : > { %v1415_v51 = vadd.f32 1e-05, %v1407_v46  ;;  %v1404_v53 = vsub.f32 %v1396_v49, %v1400_v48  ;;  %v1401_v54 = vmul.f32 %v1373_v50, %v1373_v50 }
 0x25f   : > { %v1391_v56 = vpop.xlane.xlu1 %1390  ;;  %v1370_v57 = vpop.xlane.xlu0 %1369 }
 0x260   : > { %6153 = vrsqrt.f32 %v1415_v51  ;;  %v1408_v27 = vmax.f32 %v1404_v53, 0.0  ;;  %v1397_v29 = vmul.f32 0.00390625, %v1391_v56  ;;  %v1374_v58 = vmul.f32 0.00390625, %v1370_v57 }
 0x262   : > { %v1416_v59 = vadd.f32 1e-05, %v1408_v27  ;;  %v1405_v60 = vsub.f32 %v1397_v29, %v1401_v54  ;;  %v1402_v63 = vmul.f32 %v1374_v58, %v1374_v58 }
 0x263   : > { %v1394_v61 = vpop.xlane.xlu0 %1393 }
 0x264   : > { %6155 = vrsqrt.f32 %v1416_v59  ;;  %v1409_v62 = vmax.f32 %v1405_v60, 0.0  ;;  %v1398_v4 = vmul.f32 0.00390625, %v1394_v61 }
 0x266   : > { %v1417_v25 = vadd.f32 1e-05, %v1409_v62  ;;  %v1406_v31 = vsub.f32 %v1398_v4, %v1402_v63 }
 0x268   : > { %v1410_v9 = vmax.f32 %v1406_v31, 0.0  ;;  %6157 = vrsqrt.f32 %v1417_v25 }
 0x26a   : > { %v6154_v13 = vpop.eup %6153  ;;  %v1418_v14 = vadd.f32 1e-05, %v1410_v9 }
 0x26b   : > { %v1423_v21 = vmul.f32 %v6154_v13, %v1411_v12 }
 0x26c   : > { %6159 = vrsqrt.f32 %v1418_v14 }
 0x26d   : > { %1441 = vperm.xlu1 %5431, %v1423_v21   ;;  %v1431_v22 = vmul.f32 %v1423_v21, %v1371_v37 }
 0x26e   : > { %v6156_v24 = vpop.eup %6155 }
 0x26f   : > { %v1435_v26 = vsub.f32 %v1427_v2, %v1431_v22  ;;  %v1424_v28 = vmul.f32 %v6156_v24, %v1412_v7 }
 0x271   : > { %1469 = vperm.xlu1 %5431, %v1435_v26   ;;  %1446 = vperm.xlu0 %5432, %v1424_v28   ;;  %v1432_v11 = vmul.f32 %v1424_v28, %v1372_v42 }
 0x272   : > { %v6158_v18 = vpop.eup %6157 }
 0x273   : > { %v1436_v16 = vsub.f32 %v1428_v6, %v1432_v11  ;;  %v1425_v34 = vmul.f32 %v6158_v18, %v1413_v32 }
 0x275   : > { %1474 = vperm.xlu1 %5431, %v1436_v16   ;;  %5434 = vrot.lane.b32.xlu0 %v6177_v0, %s6178_s15  ;;  %v1433_v10 = vmul.f32 %v1425_v34, %v1373_v50  ;;  %v2152_v16 = vld [vmem:[%s7620_s4 + $0x8] sm:$0xff] }
 0x276   : > { %v6160_v35 = vpop.eup %6159  ;;  %2311 = vmatprep.mubr.f32.mxu1 %v2152_v16 }
 0x277   : > { %v1426_v3 = vmul.f32 %v6160_v35, %v1414_v36  ;;  %v1437_v37 = vsub.f32 %v1429_v19, %v1433_v10 }
 0x279   : > { %1451 = vperm.xlu1 %5431, %v1425_v34   ;;  %5444 = vrot.lane.b32.xlu0 %v6177_v0, %s6179_s20  ;;  %v1434_v38 = vmul.f32 %v1426_v3, %v1374_v58 }
 0x27b   : > { %v1438_v40 = vsub.f32 %v1430_v39, %v1434_v38 }
 0x27d   : > { %1456 = vperm.xlu1 %5431, %v1426_v3   ;;  %5454 = vrot.lane.b32.xlu0 %v6177_v0, %s6180_s21 }
 0x281   : > { %1479 = vperm.xlu1 %5431, %v1437_v37  }
 0x285   : > { %1484 = vperm.xlu1 %5431, %v1438_v40  }
 0x289   : > { %5439 = vrot.lane.b32.xlu1 %v6177_v0, %s6178_s15 }
 0x28d   : > { %5449 = vrot.lane.b32.xlu1 %v6177_v0, %s6179_s20 }
 0x2ec   : > { %v1442_v41 = vpop.permute.xlu1 %1441 }
 0x2ed   : > { %v1459_v42 = vmul.f32 %v1442_v41, %v6555_v17  ;;  %v1460_v43 = vmul.f32 %v1442_v41, %v6557_v20 }
 0x2f0   : > { %v1470_v44 = vpop.permute.xlu1 %1469  ;;  %v1447_v45 = vpop.permute.xlu0 %1446 }
 0x2f1   : > { %v1487_v46 = vadd.f32 %v1470_v44, %v1459_v42  ;;  %v1488_v48 = vadd.f32 %v1470_v44, %v1460_v43  ;;  %v1461_v51 = vmul.f32 %v1447_v45, %v6565_v15  ;;  %v1462_v53 = vmul.f32 %v1447_v45, %v6567_v23 }
 0x2f3   : > { %v6631_v49 = vmax.f32 %v1487_v46, 0.0  ;;  %v6633_v50 = vmax.f32 %v1488_v48, 0.0 }
 0x2f4   : > { %v1475_v54 = vpop.permute.xlu1 %1474  ;;  %v5435_v32 = vpop.permute.xlu0 %5434 }
 0x2f5   : > { %v1489_v56 = vadd.f32 %v1475_v54, %v1461_v51  ;;  %v1490_v57 = vadd.f32 %v1475_v54, %v1462_v53  ;;  %v5463_v17 = vpack.i.bf16 %v6633_v50, %v6631_v49  ;;  %v5548_v26 = vpack.i.bf16 %v6177_v0, %v6633_v50 }
 0x2f6   : > { %v5436_v3 = vunpack.i.l.bf16 %v5435_v32  ;;  %v5437_v39 = vunpack.i.h.bf16 %v5435_v32 }
 0x2f7   : > { %v6639_v27 = vmax.f32 %v1489_v56, 0.0  ;;  %v6641_v20 = vmax.f32 %v1490_v57, 0.0  ;;  %5464 = vrot.lane.b32.xlu0 %v5463_v17, %s6179_s20  ;;  %5459 = vrot.lane.b32.xlu1 %v5463_v17, %s6178_s15 }
 0x2f8   : > { %v1452_v29 = vpop.permute.xlu1 %1451  ;;  %v6742_v35 = vpop.permute.xlu0 %5444 }
 0x2f9   : > { %v5473_v15 = vpack.i.bf16 %v6641_v20, %v6639_v27  ;;  %v6649_v23 = vpack.i.bf16 %v6639_v27, %v6631_v49  ;;  %v4897_v59 = vpack.c.bf16 %v6641_v20, %v6633_v50  ;;  %v4899_v60 = vpack.c.bf16 %v6639_v27, %v6631_v49 }
 0x2fa   : > { %v1463_v61 = vmul.f32 %v1452_v29, %v6575_v1  ;;  %v1464_v62 = vmul.f32 %v1452_v29, %v6577_v5  ;;  %v5553_v28 = vpack.i.bf16 %v6177_v0, %v6641_v20 }
 0x2fb   : > { %5469 = vrot.lane.b32.xlu0 %v5463_v17, %s6180_s21  ;;  %5474 = vrot.lane.b32.xlu1 %v5473_v15, %s6178_s15 }
 0x2fc   : > { %v1457_v58 = vpop.permute.xlu1 %1456  ;;  %v6744_v37 = vpop.permute.xlu0 %5454 }
 0x2fd   : > { %v1465_v31 = vmul.f32 %v1457_v58, %v6585_v30  ;;  %v1466_v9 = vmul.f32 %v1457_v58, %v6587_v33 }
 0x2ff   : > { %5479 = vrot.lane.b32.xlu1 %v5473_v15, %s6179_s20 }
 0x300   : > { %v1480_v63 = vpop.permute.xlu1 %1479 }
 0x301   : > { %v1491_v4 = vadd.f32 %v1480_v63, %v1463_v61  ;;  %v1492_v25 = vadd.f32 %v1480_v63, %v1464_v62 }
 0x303   : > { %v6662_v12 = vmax.f32 %v1491_v4, 0.0  ;;  %v6664_v13 = vmax.f32 %v1492_v25, 0.0  ;;  %5484 = vrot.lane.b32.xlu1 %v5473_v15, %s6180_s21 }
 0x304   : > { %v1485_v14 = vpop.permute.xlu1 %1484 }
 0x305   : > { %v1493_v21 = vadd.f32 %v1485_v14, %v1465_v31  ;;  %v1494_v1 = vadd.f32 %v1485_v14, %v1466_v9  ;;  %v5488_v5 = vpack.i.bf16 %v6664_v13, %v6662_v12  ;;  %v5568_v6 = vpack.i.bf16 %v6177_v0, %v6664_v13 }
 0x307   : > { %v6669_v2 = vmax.f32 %v1493_v21, 0.0  ;;  %v6671_v7 = vmax.f32 %v1494_v1, 0.0  ;;  %5489 = vrot.lane.b32.xlu1 %v5488_v5, %s6178_s15 }
 0x308   : > { %v5440_v18 = vpop.permute.xlu1 %5439 }
 0x309   : > { %v5508_v30 = vpack.i.bf16 %v6671_v7, %v6669_v2  ;;  %v5603_v33 = vpack.i.bf16 %v6669_v2, %v6662_v12  ;;  %v4901_v22 = vpack.c.bf16 %v6671_v7, %v6664_v13  ;;  %v4903_v24 = vpack.c.bf16 %v6669_v2, %v6662_v12 }
 0x30a   : > { %v5593_v11 = vpack.i.bf16 %v6177_v0, %v6671_v7  ;;  %v5442_v58 = vunpack.i.h.bf16 %v5440_v18  ;;  %v5441_v61 = vunpack.i.l.bf16 %v5440_v18 }
 0x30b   : > { %5509 = vrot.lane.b32.xlu0 %v5508_v30, %s6178_s15  ;;  %5494 = vrot.lane.b32.xlu1 %v6177_v0, %s6180_s21 }
 0x30c   : > { %v6740_v34 = vpop.permute.xlu1 %5449 }
 0x30f   : > { %5514 = vrot.lane.b32.xlu0 %v5463_v17, %s6181_s22  ;;  %5499 = vrot.lane.b32.xlu1 %v5488_v5, %s6179_s20 }
 0x313   : > { %5524 = vrot.lane.b32.xlu0 %v5508_v30, %s6179_s20  ;;  %5504 = vrot.lane.b32.xlu1 %v5488_v5, %s6180_s21 }
 0x317   : > { %5529 = vrot.lane.b32.xlu0 %v6177_v0, %s6181_s22  ;;  %5519 = vrot.lane.b32.xlu1 %v5473_v15, %s6181_s22 }
 0x31b   : > { %5544 = vrot.lane.b32.xlu0 %v5508_v30, %s6180_s21  ;;  %5534 = vrot.lane.b32.xlu1 %v5488_v5, %s6181_s22 }
 0x31f   : > { %5549 = vrot.lane.b32.xlu0 %v5548_v26, %s6182_s23  ;;  %5539 = vrot.lane.b32.xlu1 %v6177_v0, %s6181_s22 }
 0x323   : > { %5559 = vrot.lane.b32.xlu0 %v5508_v30, %s6181_s22  ;;  %5554 = vrot.lane.b32.xlu1 %v5553_v28, %s6182_s23 }
 0x327   : > { %5564 = vrot.lane.b32.xlu0 %v6649_v23, %s6182_s23  ;;  %5569 = vrot.lane.b32.xlu1 %v5568_v6, %s6182_s23 }
 0x32b   : > { %5574 = vrot.lane.b32.xlu0 %v5548_v26, %s6183_s24  ;;  %5579 = vrot.lane.b32.xlu1 %v5553_v28, %s6183_s24 }
 0x32f   : > { %5584 = vrot.lane.b32.xlu0 %v6649_v23, %s6183_s24  ;;  %5589 = vrot.lane.b32.xlu1 %v5568_v6, %s6183_s24 }
 0x333   : > { %5594 = vrot.lane.b32.xlu0 %v5593_v11, %s6182_s23  ;;  %5604 = vrot.lane.b32.xlu1 %v5603_v33, %s6182_s23 }
 0x337   : > { %5599 = vrot.lane.b32.xlu0 %v5548_v26, %s6184_s25  ;;  %5609 = vrot.lane.b32.xlu1 %v5553_v28, %s6184_s25 }
 0x33b   : > { %5614 = vrot.lane.b32.xlu0 %v5593_v11, %s6183_s24  ;;  %5624 = vrot.lane.b32.xlu1 %v5603_v33, %s6183_s24 }
 0x33f   : > { %5619 = vrot.lane.b32.xlu0 %v6649_v23, %s6184_s25  ;;  %5629 = vrot.lane.b32.xlu1 %v5568_v6, %s6184_s25 }
 0x343   : > { %5634 = vrot.lane.b32.xlu0 %v5593_v11, %s6184_s25  ;;  %5639 = vrot.lane.b32.xlu1 %v5603_v33, %s6184_s25 }
 0x347   : > { %5644 = vrot.lane.b32.xlu0 %v5548_v26, %s6185_s28  ;;  %5649 = vrot.lane.b32.xlu1 %v5553_v28, %s6185_s28  ;;  %v5446_v26 = vunpack.i.l.bf16 %v6742_v35 }
 0x34b   : > { %5654 = vrot.lane.b32.xlu0 %v6649_v23, %s6185_s28  ;;  %5659 = vrot.lane.b32.xlu1 %v5568_v6, %s6185_s28 }
 0x34f   : > { %5664 = vrot.lane.b32.xlu0 %v5593_v11, %s6185_s28  ;;  %5669 = vrot.lane.b32.xlu1 %v5603_v33, %s6185_s28  ;;  %v5447_v33 = vunpack.i.h.bf16 %v6742_v35  ;;  %v5452_v35 = vunpack.i.h.bf16 %v6740_v34 }
 0x353   : > { %5674 = vrot.lane.b32.xlu0 %v6177_v0, %s6178_s15  ;;  %5679 = vrot.lane.b32.xlu1 %v6177_v0, %s6178_s15 }
 0x357   : > { %5684 = vrot.lane.b32.xlu0 %v6177_v0, %s6179_s20  ;;  %5689 = vrot.lane.b32.xlu1 %v6177_v0, %s6179_s20 }
 0x35b   : > { %5694 = vrot.lane.b32.xlu0 %v6177_v0, %s6180_s21 }
 0x369   : > { %v5460_v36 = vpop.permute.xlu1 %5459  ;;  %v5465_v53 = vpop.permute.xlu0 %5464 }
 0x36a   : > { %v5462_v10 = vunpack.i.h.bf16 %v5460_v36  ;;  %v5461_v19 = vunpack.i.l.bf16 %v5460_v36  ;;  %v5467_v4 = vunpack.i.h.bf16 %v5465_v53  ;;  %v5466_v25 = vunpack.i.l.bf16 %v5465_v53 }
 0x36b   : > { %v5456_v53 = vunpack.i.l.bf16 %v6744_v37 }
 0x36c   : > { %v1560_v42 = vsel %vm484_vm0, %v5461_v19, %v5462_v10  ;;  %v1559_v44 = vsel %vm484_vm0, %v5436_v3, %v5461_v19  ;;  %v1640_v18 = vsel %vm565_vm5, %v5466_v25, %v5467_v4 }
 0x36d   : > { %v5475_v38 = vpop.permute.xlu1 %5474  ;;  %v6754_v56 = vpop.permute.xlu0 %5469 }
 0x36e   : > { %v5477_v40 = vunpack.i.h.bf16 %v5475_v38  ;;  %v5476_v41 = vunpack.i.l.bf16 %v5475_v38 }
 0x370   : > { %v1562_v43 = vsel %vm484_vm0, %v5476_v41, %v5477_v40  ;;  %v1561_v45 = vsel %vm484_vm0, %v5437_v39, %v5476_v41  ;;  %v5451_v39 = vunpack.i.l.bf16 %v6740_v34  ;;  %v5472_v40 = vunpack.i.h.bf16 %v6754_v56 }
 0x371   : > { %v5480_v46 = vpop.permute.xlu1 %5479  ;;  %v4853_v48 = vpack.c.bf16 %v1562_v43, %v1560_v42  ;;  %v4856_v51 = vpack.c.bf16 %v1561_v45, %v1559_v44  ;;  %v1639_v43 = vsel %vm565_vm5, %v5446_v26, %v5466_v25  ;;  %v5471_v44 = vunpack.i.l.bf16 %v6754_v56 }
 0x372   : > { %v5482_v17 = vunpack.i.h.bf16 %v5480_v46  ;;  %v5481_v29 = vunpack.i.l.bf16 %v5480_v46 }
 0x373   : > { %4855 = vmatprep.subr.msk.bf16.mxu1 %vm6373_vm3, %v4853_v48  ;;  %v1711_v25 = vsel %vm638_vm6, %v5456_v53, %v5471_v44 }
 0x374   : > { %4858 = vmatpush1.bf16.msk.msra.mxu1 %vm6378_vm4, %v4856_v51  ;;  %v1642_v14 = vsel %vm565_vm5, %v5481_v29, %v5482_v17  ;;  %v1641_v10 = vsel %vm565_vm5, %v5447_v33, %v5481_v29  ;;  %v5457_v51 = vunpack.i.h.bf16 %v6744_v37 }
 0x375   : > { %v5485_v54 = vpop.permute.xlu1 %5484  ;;  %v4865_v3 = vpack.c.bf16 %v1642_v14, %v1640_v18  ;;  %v4867_v48 = vpack.c.bf16 %v1641_v10, %v1639_v43 }
 0x376   : > { %v5487_v32 = vunpack.i.h.bf16 %v5485_v54  ;;  %v5486_v36 = vunpack.i.l.bf16 %v5485_v54 }
 0x378   : > { %v1714_v54 = vsel %vm638_vm6, %v5486_v36, %v5487_v32 }
 0x379   : > { %v5490_v57 = vpop.permute.xlu1 %5489 }
 0x37a   : > { %v5492_v15 = vunpack.i.h.bf16 %v5490_v57  ;;  %v5491_v23 = vunpack.i.l.bf16 %v5490_v57 }
 0x37c   : > { %v1563_v21 = vsel %vm484_vm0, %v5441_v61, %v5491_v23  ;;  %v1564_v1 = vsel %vm484_vm0, %v5491_v23, %v5492_v15  ;;  %v1712_v61 = vsel %vm638_vm6, %v5471_v44, %v5472_v40 }
 0x37d   : > { %v6756_v62 = vpop.permute.xlu1 %5494  ;;  %v5510_v63 = vpop.permute.xlu0 %5509  ;;  %v4873_v4 = vpack.c.bf16 %v1714_v54, %v1712_v61 }
 0x37e   : > { %v5512_v31 = vunpack.i.h.bf16 %v5510_v63  ;;  %v5511_v9 = vunpack.i.l.bf16 %v5510_v63  ;;  %v1713_v63 = vsel %vm638_vm6, %v5457_v51, %v5486_v36 }
 0x37f   : > { %v4876_v33 = vpack.c.bf16 %v1713_v63, %v1711_v25 }
 0x380   : > { %v1565_v5 = vsel %vm484_vm0, %v5442_v58, %v5511_v9  ;;  %v1566_v30 = vsel %vm484_vm0, %v5511_v9, %v5512_v31 }
 0x381   : > { %v5500_v28 = vpop.permute.xlu1 %5499  ;;  %v6765_v6 = vpop.permute.xlu0 %5514  ;;  %v4859_v11 = vpack.c.bf16 %v1566_v30, %v1564_v1  ;;  %v4862_v16 = vpack.c.bf16 %v1565_v5, %v1563_v21  ;;  %v5497_v21 = vunpack.i.h.bf16 %v6756_v62  ;;  %v5496_v1 = vunpack.i.l.bf16 %v6756_v62 }
 0x382   : > { %v5502_v19 = vunpack.i.h.bf16 %v5500_v28  ;;  %v5501_v38 = vunpack.i.l.bf16 %v5500_v28  ;;  %v5517_v26 = vunpack.i.h.bf16 %v6765_v6  ;;  %v5516_v28 = vunpack.i.l.bf16 %v6765_v6 }
 0x383   : > { %4861 = vmatprep.subr.msk.bf16.mxu1 %vm6373_vm3, %v4859_v11 }
 0x384   : > { %4864 = vmatpush1.bf16.msk.msra.mxu1 %vm6378_vm4, %v4862_v16  ;;  %v1644_v34 = vsel %vm565_vm5, %v5501_v38, %v5502_v19  ;;  %v1643_v17 = vsel %vm565_vm5, %v5451_v39, %v5501_v38  ;;  %v1792_v40 = vsel %vm719_vm11, %v5516_v28, %v5517_v26 }
 0x385   : > { %v5505_v41 = vpop.permute.xlu1 %5504  ;;  %v5525_v42 = vpop.permute.xlu0 %5524  ;;  %4866 = vmatprep.subr.bf16.mxu1 %v4865_v3 }
 0x386   : > { %v5527_v45 = vunpack.i.h.bf16 %v5525_v42  ;;  %v5526_v46 = vunpack.i.l.bf16 %v5525_v42  ;;  %v5506_v37 = vunpack.i.l.bf16 %v5505_v41  ;;  %v5507_v31 = vunpack.i.h.bf16 %v5505_v41 }
 0x388   : > { %4868 = vmatpush1.bf16.msra.mxu1 %v4867_v48  ;;  %v1646_v57 = vsel %vm565_vm5, %v5526_v46, %v5527_v45  ;;  %v1645_v29 = vsel %vm565_vm5, %v5452_v35, %v5526_v46  ;;  %v1715_v18 = vsel %vm638_vm6, %v5496_v1, %v5506_v37  ;;  %v1716_v3 = vsel %vm638_vm6, %v5506_v37, %v5507_v31 }
 0x389   : > { %v5520_v15 = vpop.permute.xlu1 %5519  ;;  %v5530_v56 = vpop.permute.xlu0 %5529  ;;  %v4869_v23 = vpack.c.bf16 %v1646_v57, %v1644_v34  ;;  %v4871_v58 = vpack.c.bf16 %v1645_v29, %v1643_v17 }
 0x38a   : > { %v5522_v9 = vunpack.i.h.bf16 %v5520_v15  ;;  %v5521_v14 = vunpack.i.l.bf16 %v5520_v15  ;;  %v5532_v32 = vunpack.i.h.bf16 %v5530_v56  ;;  %v5531_v36 = vunpack.i.l.bf16 %v5530_v56 }
 0x38b   : > { %4870 = vmatprep.subr.bf16.mxu1 %v4869_v23 }
 0x38c   : > { %4872 = vmatpush1.bf16.msra.mxu1 %v4871_v58  ;;  %v1794_v62 = vsel %vm719_vm11, %v5521_v14, %v5522_v9  ;;  %v1793_v41 = vsel %vm719_vm11, %v5532_v32, %v5521_v14  ;;  %v1791_v42 = vsel %vm719_vm11, %v5531_v36, %v5516_v28 }
 0x38d   : > { %v5535_v5 = vpop.permute.xlu1 %5534  ;;  %v5545_v30 = vpop.permute.xlu0 %5544  ;;  %4875 = vmatprep.subr.msk.bf16.mxu1 %vm6406_vm8, %v4873_v4  ;;  %v4885_v43 = vpack.c.bf16 %v1794_v62, %v1792_v40  ;;  %v4888_v57 = vpack.c.bf16 %v1793_v41, %v1791_v42 }
 0x38e   : > { %v5547_v11 = vunpack.i.h.bf16 %v5545_v30  ;;  %v5546_v16 = vunpack.i.l.bf16 %v5545_v30  ;;  %v5537_v44 = vunpack.i.h.bf16 %v5535_v5  ;;  %v5536_v45 = vunpack.i.l.bf16 %v5535_v5 }
 0x390   : > { %v1717_v10 = vsel %vm638_vm6, %v5497_v21, %v5546_v16  ;;  %v1718_v19 = vsel %vm638_vm6, %v5546_v16, %v5547_v11  ;;  %4878 = vmatpush1.bf16.msk.msra.mxu1 %vm6416_vm10, %v4876_v33  ;;  %v1796_v17 = vsel %vm719_vm11, %v5536_v45, %v5537_v44 }
 0x391   : > { %v5540_v38 = vpop.permute.xlu1 %5539  ;;  %v5550_v35 = vpop.permute.xlu0 %5549  ;;  %v4879_v6 = vpack.c.bf16 %v1718_v19, %v1716_v3  ;;  %v4882_v39 = vpack.c.bf16 %v1717_v10, %v1715_v18 }
 0x392   : > { %v5541_v46 = vunpack.i.l.bf16 %v5540_v38  ;;  %v5542_v53 = vunpack.i.h.bf16 %v5540_v38  ;;  %v5552_v25 = vunpack.i.h.bf16 %v5550_v35  ;;  %v5551_v31 = vunpack.i.l.bf16 %v5550_v35 }
 0x393   : > { %4881 = vmatprep.subr.msk.bf16.mxu1 %vm6406_vm8, %v4879_v6 }
 0x394   : > { %4884 = vmatpush1.bf16.msk.msra.mxu1 %vm6416_vm10, %v4882_v39  ;;  %v1795_v29 = vsel %vm719_vm11, %v5541_v46, %v5536_v45  ;;  %v1888_v30 = vsel %vm816_vm12, %v5551_v31, %v5552_v25 }
 0x395   : > { %v5555_v48 = vpop.permute.xlu1 %5554  ;;  %v5560_v51 = vpop.permute.xlu0 %5559  ;;  %4887 = vmatprep.subr.msk.bf16.mxu1 %vm6373_vm3, %v4885_v43 }
 0x396   : > { %v5562_v54 = vunpack.i.h.bf16 %v5560_v51  ;;  %v5561_v34 = vunpack.i.l.bf16 %v5560_v51  ;;  %v5557_v37 = vunpack.i.h.bf16 %v5555_v48  ;;  %v5556_v4 = vunpack.i.l.bf16 %v5555_v48 }
 0x398   : > { %v1797_v15 = vsel %vm719_vm11, %v5542_v53, %v5561_v34  ;;  %v1798_v56 = vsel %vm719_vm11, %v5561_v34, %v5562_v54  ;;  %4890 = vmatpush1.bf16.msk.msra.mxu1 %vm6378_vm4, %v4888_v57  ;;  %v1890_v5 = vsel %vm816_vm12, %v5556_v4, %v5557_v37 }
 0x399   : > { %v5570_v23 = vpop.permute.xlu1 %5569  ;;  %v5565_v58 = vpop.permute.xlu0 %5564  ;;  %v4891_v61 = vpack.c.bf16 %v1798_v56, %v1796_v17  ;;  %v4894_v63 = vpack.c.bf16 %v1797_v15, %v1795_v29  ;;  %v4905_v20 = vpack.c.bf16 %v1890_v5, %v1888_v30 }
 0x39a   : > { %v5567_v21 = vunpack.i.h.bf16 %v5565_v58  ;;  %v5566_v1 = vunpack.i.l.bf16 %v5565_v58  ;;  %v5572_v32 = vunpack.i.h.bf16 %v5570_v23  ;;  %v5571_v49 = vunpack.i.l.bf16 %v5570_v23 }
 0x39b   : > { %4893 = vmatprep.subr.msk.bf16.mxu1 %vm6373_vm3, %v4891_v61 }
 0x39c   : > { %4896 = vmatpush1.bf16.msk.msra.mxu1 %vm6378_vm4, %v4894_v63  ;;  %v1889_v28 = vsel %vm816_vm12, %v5567_v21, %v5556_v4  ;;  %v1887_v50 = vsel %vm816_vm12, %v5566_v1, %v5551_v31  ;;  %v1892_v35 = vsel %vm816_vm12, %v5571_v49, %v5572_v32 }
 0x39d   : > { %v5580_v9 = vpop.permute.xlu1 %5579  ;;  %v5575_v14 = vpop.permute.xlu0 %5574  ;;  %4898 = vmatprep.subr.bf16.mxu1 %v4897_v59  ;;  %v4908_v7 = vpack.c.bf16 %v1889_v28, %v1887_v50 }
 0x39e   : > { %v5582_v59 = vunpack.i.h.bf16 %v5580_v9  ;;  %v5581_v11 = vunpack.i.l.bf16 %v5580_v9  ;;  %v5577_v16 = vunpack.i.h.bf16 %v5575_v14  ;;  %v5576_v18 = vunpack.i.l.bf16 %v5575_v14 }
 0x3a0   : > { %4900 = vmatpush1.bf16.msra.mxu1 %v4899_v60  ;;  %v1970_v19 = vsel %vm897_vm13, %v5581_v11, %v5582_v59  ;;  %v1968_v38 = vsel %vm897_vm13, %v5576_v18, %v5577_v16 }
 0x3a1   : > { %v5590_v33 = vpop.permute.xlu1 %5589  ;;  %v5585_v26 = vpop.permute.xlu0 %5584  ;;  %4902 = vmatprep.subr.bf16.mxu1 %v4901_v22  ;;  %v4917_v44 = vpack.c.bf16 %v1970_v19, %v1968_v38 }
 0x3a2   : > { %v5587_v27 = vunpack.i.h.bf16 %v5585_v26  ;;  %v5586_v60 = vunpack.i.l.bf16 %v5585_v26  ;;  %v5592_v45 = vunpack.i.h.bf16 %v5590_v33  ;;  %v5591_v46 = vunpack.i.l.bf16 %v5590_v33 }
 0x3a4   : > { %4904 = vmatpush1.bf16.msra.mxu1 %v4903_v24  ;;  %v1969_v42 = vsel %vm897_vm13, %v5587_v27, %v5581_v11  ;;  %v1967_v43 = vsel %vm897_vm13, %v5586_v60, %v5576_v18  ;;  %v1972_v58 = vsel %vm897_vm13, %v5591_v46, %v5592_v45 }
 0x3a5   : > { %v5605_v36 = vpop.permute.xlu1 %5604  ;;  %v5595_v13 = vpop.permute.xlu0 %5594  ;;  %4907 = vmatprep.subr.msk.bf16.mxu1 %vm6406_vm8, %v4905_v20  ;;  %v4920_v17 = vpack.c.bf16 %v1969_v42, %v1967_v43 }
 0x3a6   : > { %v5607_v22 = vunpack.i.h.bf16 %v5605_v36  ;;  %v5606_v3 = vunpack.i.l.bf16 %v5605_v36  ;;  %v5597_v62 = vunpack.i.h.bf16 %v5595_v13  ;;  %v5596_v10 = vunpack.i.l.bf16 %v5595_v13 }
 0x3a8   : > { %v1891_v12 = vsel %vm816_vm12, %v5606_v3, %v5571_v49  ;;  %v1893_v2 = vsel %vm816_vm12, %v5607_v22, %v5596_v10  ;;  %v1894_v24 = vsel %vm816_vm12, %v5596_v10, %v5597_v62  ;;  %4910 = vmatpush1.bf16.msk.msra.mxu1 %vm6416_vm10, %v4908_v7 }
 0x3a9   : > { %v5610_v6 = vpop.permute.xlu1 %5609  ;;  %v5600_v39 = vpop.permute.xlu0 %5599  ;;  %v4911_v40 = vpack.c.bf16 %v1894_v24, %v1892_v35  ;;  %v4914_v41 = vpack.c.bf16 %v1893_v2, %v1891_v12  ;;  %v2151_v24 = vld [vmem:[%s7620_s4] sm:$0xff] }
 0x3aa   : > { %v5602_v48 = vunpack.i.h.bf16 %v5600_v39  ;;  %v5601_v51 = vunpack.i.l.bf16 %v5600_v39  ;;  %v5612_v53 = vunpack.i.h.bf16 %v5610_v6  ;;  %v5611_v54 = vunpack.i.l.bf16 %v5610_v6 }
 0x3ab   : > { %4913 = vmatprep.subr.msk.bf16.mxu1 %vm6406_vm8, %v4911_v40 }
 0x3ac   : > { %4916 = vmatpush1.bf16.msk.msra.mxu1 %vm6416_vm10, %v4914_v41  ;;  %v2048_v61 = vsel %vm978_vm14, %v5601_v51, %v5602_v48  ;;  %v2050_v25 = vsel %vm978_vm14, %v5611_v54, %v5612_v53  ;;  %v2155_v41 = vld [vmem:[%s7620_s4 + $0x20] sm:$0xff] }
 0x3ad   : > { %v5625_v34 = vpop.permute.xlu1 %5624  ;;  %v5615_v57 = vpop.permute.xlu0 %5614  ;;  %4919 = vmatprep.subr.msk.bf16.mxu1 %vm6373_vm3, %v4917_v44  ;;  %v4929_v30 = vpack.c.bf16 %v2050_v25, %v2048_v61 }
 0x3ae   : > { %v5627_v29 = vunpack.i.h.bf16 %v5625_v34  ;;  %v5626_v15 = vunpack.i.l.bf16 %v5625_v34  ;;  %v5617_v56 = vunpack.i.h.bf16 %v5615_v57  ;;  %v5616_v23 = vunpack.i.l.bf16 %v5615_v57  ;;  %v2158_v57 = vld [vmem:[%s7620_s4 + $0x38] sm:$0xff] }
 0x3b0   : > { %v1971_v63 = vsel %vm897_vm13, %v5626_v15, %v5591_v46  ;;  %v1973_v37 = vsel %vm897_vm13, %v5627_v29, %v5616_v23  ;;  %v1974_v4 = vsel %vm897_vm13, %v5616_v23, %v5617_v56  ;;  %4922 = vmatpush1.bf16.msk.msra.mxu1 %vm6378_vm4, %v4920_v17 }
 0x3b1   : > { %v5630_v31 = vpop.permute.xlu1 %5629  ;;  %v5620_v9 = vpop.permute.xlu0 %5619  ;;  %v4923_v14 = vpack.c.bf16 %v1974_v4, %v1972_v58  ;;  %v4926_v21 = vpack.c.bf16 %v1973_v37, %v1971_v63  ;;  %v2157_v37 = vld [vmem:[%s7620_s4 + $0x30] sm:$0xff] }
 0x3b2   : > { %v5622_v1 = vunpack.i.h.bf16 %v5620_v9  ;;  %v5621_v5 = vunpack.i.l.bf16 %v5620_v9  ;;  %v5632_v33 = vunpack.i.h.bf16 %v5630_v31  ;;  %v5631_v26 = vunpack.i.l.bf16 %v5630_v31  ;;  %v2161_v31 = vld [vmem:[%s7620_s4 + $0x50] sm:$0xff]  ;;  %v2160_v9 = vld [vmem:[%s7620_s4 + $0x48] sm:$0xff] }
 0x3b3   : > { %4925 = vmatprep.subr.msk.bf16.mxu1 %vm6373_vm3, %v4923_v14  ;;  %v2153_v14 = vld [vmem:[%s7620_s4 + $0x10] sm:$0xff] }
 0x3b4   : > { %4928 = vmatpush1.bf16.msk.msra.mxu1 %vm6378_vm4, %v4926_v21  ;;  %v2047_v28 = vsel %vm978_vm14, %v5621_v5, %v5601_v51  ;;  %v2049_v50 = vsel %vm978_vm14, %v5622_v1, %v5611_v54  ;;  %v2052_v27 = vsel %vm978_vm14, %v5631_v26, %v5632_v33  ;;  %v2154_v51 = vld [vmem:[%s7620_s4 + $0x18] sm:$0xff]  ;;  %v2156_v21 = vld [vmem:[%s7620_s4 + $0x28] sm:$0xff]  ;;  %v2159_v1 = vld [vmem:[%s7620_s4 + $0x40] sm:$0xff] }
 0x3b5   : > { %v5640_v20 = vpop.permute.xlu1 %5639  ;;  %v5635_v59 = vpop.permute.xlu0 %5634  ;;  %4930 = vmatprep.subr.bf16.mxu1 %v4929_v30  ;;  %v4931_v11 = vpack.c.bf16 %v2049_v50, %v2047_v28  ;;  %v2162_v5 = vld [vmem:[%s7620_s4 + $0x58] sm:$0xff] }
 0x3b6   : > { %v5642_v16 = vunpack.i.h.bf16 %v5640_v20  ;;  %v5641_v18 = vunpack.i.l.bf16 %v5640_v20  ;;  %v5637_v32 = vunpack.i.h.bf16 %v5635_v59  ;;  %v5636_v49 = vunpack.i.l.bf16 %v5635_v59 }
 0x3b8   : > { %4932 = vmatpush1.bf16.msra.mxu1 %v4931_v11  ;;  %v2054_v60 = vsel %vm978_vm14, %v5636_v49, %v5637_v32  ;;  %v2051_v36 = vsel %vm978_vm14, %v5641_v18, %v5631_v26  ;;  %v2053_v13 = vsel %vm978_vm14, %v5642_v16, %v5636_v49 }
 0x3b9   : > { %v5650_v7 = vpop.permute.xlu1 %5649  ;;  %v5645_v22 = vpop.permute.xlu0 %5644  ;;  %v4933_v3 = vpack.c.bf16 %v2054_v60, %v2052_v27  ;;  %v4935_v62 = vpack.c.bf16 %v2053_v13, %v2051_v36 }
 0x3ba   : > { %v5652_v10 = vunpack.i.h.bf16 %v5650_v7  ;;  %v5651_v19 = vunpack.i.l.bf16 %v5650_v7  ;;  %v5647_v38 = vunpack.i.h.bf16 %v5645_v22  ;;  %v5646_v35 = vunpack.i.l.bf16 %v5645_v22 }
 0x3bb   : > { %4934 = vmatprep.subr.bf16.mxu1 %v4933_v3 }
 0x3bc   : > { %v2122_v12 = vsel %vm1051_vm15, %v5651_v19, %v5652_v10  ;;  %v2120_v2 = vsel %vm1051_vm15, %v5646_v35, %v5647_v38  ;;  %4936 = vmatpush1.bf16.msra.mxu1 %v4935_v62 }
 0x3bd   : > { %v5660_v6 = vpop.permute.xlu1 %5659  ;;  %v5655_v39 = vpop.permute.xlu0 %5654  ;;  %v4937_v40 = vpack.c.bf16 %v2122_v12, %v2120_v2 }
 0x3be   : > { %v5657_v42 = vunpack.i.h.bf16 %v5655_v39  ;;  %v5656_v43 = vunpack.i.l.bf16 %v5655_v39  ;;  %v5662_v44 = vunpack.i.h.bf16 %v5660_v6  ;;  %v5661_v45 = vunpack.i.l.bf16 %v5660_v6 }
 0x3bf   : > { %2312 = vmatmul.mubr.f32.vlgmr.msra.gmra.mrb[0].mxu1 %v2151_v24  ;;  %4939 = vmatprep.subr.msk.bf16.mxu1 %vm6406_vm8, %v4937_v40 }
 0x3c0   : > { %v2121_v46 = vsel %vm1051_vm15, %v5657_v42, %v5651_v19  ;;  %v2119_v48 = vsel %vm1051_vm15, %v5656_v43, %v5646_v35  ;;  %2317 = vmatprep.mubr.f32.mxu1 %v2155_v41  ;;  %v2124_v23 = vsel %vm1051_vm15, %v5661_v45, %v5662_v44  ;;  %v3090_v41 = vld [vmem:[%s7621_s5 + $0x8] sm:$0xff] }
 0x3c1   : > { %v4940_v53 = vpack.c.bf16 %v2121_v46, %v2119_v48  ;;  %v5670_v54 = vpop.permute.xlu1 %5669  ;;  %v5665_v34 = vpop.permute.xlu0 %5664  ;;  %3249 = vmatprep.mubr.f32.mxu0 %v3090_v41 }
 0x3c2   : > { %v5672_v17 = vunpack.i.h.bf16 %v5670_v54  ;;  %v5671_v29 = vunpack.i.l.bf16 %v5670_v54  ;;  %v5667_v15 = vunpack.i.h.bf16 %v5665_v34  ;;  %v5666_v56 = vunpack.i.l.bf16 %v5665_v34 }
 0x3c3   : > { %2318 = vmatmul.mubr.f32.gmra.mrb[2].mxu1 %v2154_v51 }
 0x3c4   : > { %v2123_v58 = vsel %vm1051_vm15, %v5671_v29, %v5661_v45  ;;  %v2125_v61 = vsel %vm1051_vm15, %v5672_v17, %v5666_v56  ;;  %v2126_v63 = vsel %vm1051_vm15, %v5666_v56, %v5667_v15  ;;  %4942 = vmatpush1.bf16.msk.msra.mxu1 %vm6416_vm10, %v4940_v53  ;;  %2323 = vmatprep.mubr.f32.mxu1 %v2158_v57 }
 0x3c5   : > { %v4946_v4 = vpack.c.bf16 %v2125_v61, %v2123_v58  ;;  %v4943_v25 = vpack.c.bf16 %v2126_v63, %v2124_v23  ;;  %v5675_v42 = vpop.permute.xlu0 %5674  ;;  %v5680_v44 = vpop.permute.xlu1 %5679 }
 0x3c6   : > { %v5677_v57 = vunpack.i.h.bf16 %v5675_v42  ;;  %v5676_v17 = vunpack.i.l.bf16 %v5675_v42 }
 0x3c7   : > { %2324 = vmatmul.mubr.f32.gmra.mrb[4].mxu1 %v2157_v37  ;;  %4945 = vmatprep.subr.msk.bf16.mxu1 %vm6406_vm8, %v4943_v25 }
 0x3c8   : > { %4948 = vmatpush1.bf16.msk.msra.mxu1 %vm6416_vm10, %v4946_v4  ;;  %2329 = vmatprep.mubr.f32.mxu1 %v2161_v31 }
 0x3c9   : > { %v5685_v43 = vpop.permute.xlu0 %5684  ;;  %v7058_v46 = vpop.permute.xlu1 %5689 }
 0x3ca   : > { %v5686_v41 = vunpack.i.l.bf16 %v5685_v43 }
 0x3cb   : > { %2330 = vmatmul.mubr.f32.gmra.mrb[6].mxu1 %v2160_v9 }
 0x3cc   : > { %2400 = vmatprep.mubr.f32.mxu1 %v6177_v0 }
 0x3cd   : > { %v7056_v45 = vpop.permute.xlu0 %5694 }
 0x3cf   : > { %4548 = vmatmul.mubr.msk.f32.vlgmr.msra.gmra.mrb[0].mxu1 %vm1168_vm1, %v2153_v14 }
 0x3d0   : > { %2406 = vmatprep.mubr.f32.mxu1 %v6177_v0 }
 0x3d3   : > { %4549 = vmatmul.mubr.msk.f32.gmra.mrb[2].mxu1 %vm1168_vm1, %v2156_v21 }
 0x3d4   : > { %2412 = vmatprep.mubr.f32.mxu1 %v6177_v0 }
 0x3d7   : > { %4550 = vmatmul.mubr.msk.f32.gmra.mrb[4].mxu1 %vm1168_vm1, %v2159_v1 }
 0x3d8   : > { %2418 = vmatprep.mubr.f32.mxu1 %v6177_v0 }
 0x3db   : > { %4551 = vmatmul.mubr.msk.f32.gmra.mrb[6].mxu1 %vm1168_vm1, %v2162_v5 }
 0x4a2   : > { %v2402_v30 = vpop.f32.mrb[0].mxu1 }
 0x4a3   : > { %v6941_v33 = vmax.f32 %v2402_v30, 0.0  ;;  %v2404_v26 = vpop.f32.mrb[1].mxu1  ;;  %v5682_v30 = vunpack.i.h.bf16 %v5680_v44 }
 0x4a4   : > { %v6943_v28 = vmax.f32 %v2404_v26, 0.0  ;;  %v5681_v26 = vunpack.i.l.bf16 %v5680_v44 }
 0x4a5   : > { %2433 = vst [vmem:[%s6939_s14] sm:$0xff] %v6941_v33 }
 0x4a6   : > { %2434 = vst [vmem:[%s6939_s14 + $0x8] sm:$0xff] %v6943_v28  ;;  %v2408_v50 = vpop.f32.mrb[2].mxu1  ;;  %v5698_v20 = vpack.i.bf16 %v6943_v28, %v6941_v33  ;;  %v5788_v24 = vpack.i.bf16 %v6177_v0, %v6943_v28 }
 0x4a7   : > { %v6951_v59 = vmax.f32 %v2408_v50, 0.0  ;;  %v2410_v11 = vpop.f32.mrb[3].mxu1 }
 0x4a8   : > { %v6953_v16 = vmax.f32 %v2410_v11, 0.0  ;;  %5699 = vrot.lane.b32.xlu0 %v5698_v20, %s6178_s15 }
 0x4a9   : > { %2435 = vst [vmem:[%s6939_s14 + $0x10] sm:$0xff] %v6951_v59  ;;  %v6960_v18 = vpack.i.bf16 %v6951_v59, %v6941_v33  ;;  %v4995_v7 = vpack.c.bf16 %v6951_v59, %v6941_v33 }
 0x4aa   : > { %2436 = vst [vmem:[%s6939_s14 + $0x18] sm:$0xff] %v6953_v16  ;;  %v2414_v32 = vpop.f32.mrb[4].mxu1  ;;  %v5713_v49 = vpack.i.bf16 %v6953_v16, %v6951_v59  ;;  %v4993_v13 = vpack.c.bf16 %v6953_v16, %v6943_v28  ;;  %v5793_v6 = vpack.i.bf16 %v6177_v0, %v6953_v16 }
 0x4ab   : > { %v6966_v27 = vmax.f32 %v2414_v32, 0.0  ;;  %v2416_v60 = vpop.f32.mrb[5].mxu1 }
 0x4ac   : > { %v6968_v36 = vmax.f32 %v2416_v60, 0.0  ;;  %5704 = vrot.lane.b32.xlu0 %v5698_v20, %s6179_s20  ;;  %5714 = vrot.lane.b32.xlu1 %v5713_v49, %s6178_s15 }
 0x4ad   : > { %2437 = vst [vmem:[%s6939_s14 + $0x20] sm:$0xff] %v6966_v27 }
 0x4ae   : > { %2438 = vst [vmem:[%s6939_s14 + $0x28] sm:$0xff] %v6968_v36  ;;  %v2420_v22 = vpop.f32.mrb[6].mxu1  ;;  %v5728_v3 = vpack.i.bf16 %v6968_v36, %v6966_v27  ;;  %v5808_v39 = vpack.i.bf16 %v6177_v0, %v6968_v36 }
 0x4af   : > { %v6982_v62 = vmax.f32 %v2420_v22, 0.0  ;;  %v2422_v10 = vpop.f32.mrb[7].mxu1 }
 0x4b0   : > { %v6984_v19 = vmax.f32 %v2422_v10, 0.0  ;;  %5709 = vrot.lane.b32.xlu0 %v5698_v20, %s6180_s21  ;;  %5719 = vrot.lane.b32.xlu1 %v5713_v49, %s6179_s20 }
 0x4b1   : > { %2439 = vst [vmem:[%s6939_s14 + $0x30] sm:$0xff] %v6982_v62  ;;  %v5813_v38 = vpack.i.bf16 %v6982_v62, %v6966_v27  ;;  %v4999_v2 = vpack.c.bf16 %v6982_v62, %v6966_v27 }
 0x4b2   : > { %2440 = vst [vmem:[%s6939_s14 + $0x38] sm:$0xff] %v6984_v19  ;;  %v5748_v35 = vpack.i.bf16 %v6984_v19, %v6982_v62  ;;  %v4997_v12 = vpack.c.bf16 %v6984_v19, %v6968_v36  ;;  %v5843_v40 = vpack.i.bf16 %v6177_v0, %v6984_v19 }
 0x4b4   : > { %5724 = vrot.lane.b32.xlu1 %v5713_v49, %s6180_s21  ;;  %5749 = vrot.lane.b32.xlu0 %v5748_v35, %s6178_s15 }
 0x4b8   : > { %5729 = vrot.lane.b32.xlu1 %v5728_v3, %s6178_s15  ;;  %5754 = vrot.lane.b32.xlu0 %v5698_v20, %s6181_s22 }
 0x4bc   : > { %5734 = vrot.lane.b32.xlu1 %v6177_v0, %s6180_s21  ;;  %5764 = vrot.lane.b32.xlu0 %v5748_v35, %s6179_s20 }
 0x4c0   : > { %5739 = vrot.lane.b32.xlu1 %v5728_v3, %s6179_s20  ;;  %5769 = vrot.lane.b32.xlu0 %v6177_v0, %s6181_s22 }
 0x4c4   : > { %5744 = vrot.lane.b32.xlu1 %v5728_v3, %s6180_s21  ;;  %5784 = vrot.lane.b32.xlu0 %v5748_v35, %s6180_s21 }
 0x4c8   : > { %5759 = vrot.lane.b32.xlu1 %v5713_v49, %s6181_s22  ;;  %5789 = vrot.lane.b32.xlu0 %v5788_v24, %s6182_s23 }
 0x4cc   : > { %5774 = vrot.lane.b32.xlu1 %v5728_v3, %s6181_s22  ;;  %5799 = vrot.lane.b32.xlu0 %v5748_v35, %s6181_s22  ;;  %v5687_v35 = vunpack.i.h.bf16 %v5685_v43 }
 0x4d0   : > { %5779 = vrot.lane.b32.xlu1 %v6177_v0, %s6181_s22  ;;  %5804 = vrot.lane.b32.xlu0 %v6960_v18, %s6182_s23 }
 0x4d4   : > { %5794 = vrot.lane.b32.xlu1 %v5793_v6, %s6182_s23  ;;  %5819 = vrot.lane.b32.xlu0 %v5788_v24, %s6183_s24 }
 0x4d8   : > { %5809 = vrot.lane.b32.xlu1 %v5808_v39, %s6182_s23  ;;  %5829 = vrot.lane.b32.xlu0 %v6960_v18, %s6183_s24 }
 0x4dc   : > { %5814 = vrot.lane.b32.xlu1 %v5813_v38, %s6182_s23  ;;  %5844 = vrot.lane.b32.xlu0 %v5843_v40, %s6182_s23 }
 0x4e0   : > { %5824 = vrot.lane.b32.xlu1 %v5793_v6, %s6183_s24  ;;  %5849 = vrot.lane.b32.xlu0 %v5788_v24, %s6184_s25 }
 0x4e4   : > { %5834 = vrot.lane.b32.xlu1 %v5808_v39, %s6183_s24  ;;  %5859 = vrot.lane.b32.xlu0 %v5843_v40, %s6183_s24 }
 0x4e8   : > { %5839 = vrot.lane.b32.xlu1 %v5813_v38, %s6183_s24  ;;  %5864 = vrot.lane.b32.xlu0 %v6960_v18, %s6184_s25 }
 0x4ec   : > { %5854 = vrot.lane.b32.xlu1 %v5793_v6, %s6184_s25  ;;  %5874 = vrot.lane.b32.xlu0 %v5843_v40, %s6184_s25 }
 0x4f0   : > { %5869 = vrot.lane.b32.xlu1 %v5808_v39, %s6184_s25  ;;  %5884 = vrot.lane.b32.xlu0 %v5788_v24, %s6185_s28 }
 0x4f4   : > { %5879 = vrot.lane.b32.xlu1 %v5813_v38, %s6184_s25  ;;  %5894 = vrot.lane.b32.xlu0 %v6960_v18, %s6185_s28 }
 0x4f8   : > { %5889 = vrot.lane.b32.xlu1 %v5793_v6, %s6185_s28  ;;  %5904 = vrot.lane.b32.xlu0 %v5843_v40, %s6185_s28 }
 0x4fc   : > { %5899 = vrot.lane.b32.xlu1 %v5808_v39, %s6185_s28 }
 0x500   : > { %5909 = vrot.lane.b32.xlu1 %v5813_v38, %s6185_s28 }
 0x51a   : > { %v5700_v48 = vpop.permute.xlu0 %5699 }
 0x51b   : > { %v5702_v51 = vunpack.i.h.bf16 %v5700_v48  ;;  %v5701_v53 = vunpack.i.l.bf16 %v5700_v48 }
 0x51d   : > { %v2497_v56 = vsel %vm484_vm0, %v5676_v17, %v5701_v53  ;;  %v2498_v23 = vsel %vm484_vm0, %v5701_v53, %v5702_v51 }
 0x51e   : > { %v5705_v54 = vpop.permute.xlu0 %5704  ;;  %v5715_v34 = vpop.permute.xlu1 %5714 }
 0x51f   : > { %v5717_v29 = vunpack.i.h.bf16 %v5715_v34  ;;  %v5716_v15 = vunpack.i.l.bf16 %v5715_v34  ;;  %v5707_v11 = vunpack.i.h.bf16 %v5705_v54  ;;  %v5706_v18 = vunpack.i.l.bf16 %v5705_v54 }
 0x521   : > { %v2499_v58 = vsel %vm484_vm0, %v5677_v57, %v5716_v15  ;;  %v2500_v61 = vsel %vm484_vm0, %v5716_v15, %v5717_v29  ;;  %v2578_v42 = vsel %vm565_vm5, %v5706_v18, %v5707_v11  ;;  %v5692_v57 = vunpack.i.h.bf16 %v7058_v46 }
 0x522   : > { %v4952_v63 = vpack.c.bf16 %v2499_v58, %v2497_v56  ;;  %v7064_v37 = vpop.permute.xlu0 %5709  ;;  %v5720_v4 = vpop.permute.xlu1 %5719  ;;  %v4949_v25 = vpack.c.bf16 %v2500_v61, %v2498_v23  ;;  %v2577_v17 = vsel %vm565_vm5, %v5686_v41, %v5706_v18  ;;  %v5691_v23 = vunpack.i.l.bf16 %v7058_v46 }
 0x523   : > { %v5722_v14 = vunpack.i.h.bf16 %v5720_v4  ;;  %v5721_v21 = vunpack.i.l.bf16 %v5720_v4  ;;  %v5712_v43 = vunpack.i.h.bf16 %v7064_v37  ;;  %v5711_v29 = vunpack.i.l.bf16 %v7064_v37 }
 0x524   : > { %4951 = vmatprep.subr.msk.bf16.mxu0 %vm6373_vm3, %v4949_v25  ;;  %v5697_v4 = vunpack.i.h.bf16 %v7056_v45  ;;  %v5696_v25 = vunpack.i.l.bf16 %v7056_v45 }
 0x525   : > { %4954 = vmatpush1.bf16.msk.msra.mxu0 %vm6378_vm4, %v4952_v63  ;;  %v2580_v60 = vsel %vm565_vm5, %v5721_v21, %v5722_v14  ;;  %v2579_v44 = vsel %vm565_vm5, %v5687_v35, %v5721_v21  ;;  %v2650_v46 = vsel %vm638_vm6, %v5711_v29, %v5712_v43 }
 0x526   : > { %v5725_v31 = vpop.permute.xlu1 %5724  ;;  %v5750_v9 = vpop.permute.xlu0 %5749  ;;  %v4961_v53 = vpack.c.bf16 %v2580_v60, %v2578_v42  ;;  %v4963_v63 = vpack.c.bf16 %v2579_v44, %v2577_v17 }
 0x527   : > { %v5752_v1 = vunpack.i.h.bf16 %v5750_v9  ;;  %v5751_v5 = vunpack.i.l.bf16 %v5750_v9  ;;  %v5727_v48 = vunpack.i.h.bf16 %v5725_v31  ;;  %v5726_v51 = vunpack.i.l.bf16 %v5725_v31 }
 0x529   : > { %v2503_v22 = vsel %vm484_vm0, %v5682_v30, %v5751_v5  ;;  %v2504_v3 = vsel %vm484_vm0, %v5751_v5, %v5752_v1  ;;  %v2652_v31 = vsel %vm638_vm6, %v5726_v51, %v5727_v48  ;;  %v2651_v1 = vsel %vm638_vm6, %v5697_v4, %v5726_v51 }
 0x52a   : > { %v5730_v50 = vpop.permute.xlu1 %5729  ;;  %v7070_v20 = vpop.permute.xlu0 %5754  ;;  %v4969_v60 = vpack.c.bf16 %v2652_v31, %v2650_v46 }
 0x52b   : > { %v5732_v32 = vunpack.i.h.bf16 %v5730_v50  ;;  %v5731_v49 = vunpack.i.l.bf16 %v5730_v50 }
 0x52d   : > { %v2501_v10 = vsel %vm484_vm0, %v5681_v26, %v5731_v49  ;;  %v2502_v38 = vsel %vm484_vm0, %v5731_v49, %v5732_v32  ;;  %v2649_v49 = vsel %vm638_vm6, %v5696_v25, %v5711_v29 }
 0x52e   : > { %v4958_v24 = vpack.c.bf16 %v2503_v22, %v2501_v10  ;;  %v5735_v6 = vpop.permute.xlu1 %5734  ;;  %v5765_v39 = vpop.permute.xlu0 %5764  ;;  %v4955_v40 = vpack.c.bf16 %v2504_v3, %v2502_v38  ;;  %v4972_v35 = vpack.c.bf16 %v2651_v1, %v2649_v49 }
 0x52f   : > { %v5767_v54 = vunpack.i.h.bf16 %v5765_v39  ;;  %v5766_v34 = vunpack.i.l.bf16 %v5765_v39  ;;  %v5737_v22 = vunpack.i.h.bf16 %v5735_v6  ;;  %v5736_v3 = vunpack.i.l.bf16 %v5735_v6 }
 0x530   : > { %4957 = vmatprep.subr.msk.bf16.mxu0 %vm6373_vm3, %v4955_v40  ;;  %v5756_v39 = vunpack.i.l.bf16 %v7070_v20 }
 0x531   : > { %4960 = vmatpush1.bf16.msk.msra.mxu0 %vm6378_vm4, %v4958_v24  ;;  %v2583_v9 = vsel %vm565_vm5, %v5692_v57, %v5766_v34  ;;  %v2584_v21 = vsel %vm565_vm5, %v5766_v34, %v5767_v54  ;;  %v5757_v24 = vunpack.i.h.bf16 %v7070_v20 }
 0x532   : > { %v5740_v15 = vpop.permute.xlu1 %5739  ;;  %v7087_v56 = vpop.permute.xlu0 %5769  ;;  %4962 = vmatprep.subr.bf16.mxu0 %v4961_v53 }
 0x533   : > { %v5742_v58 = vunpack.i.h.bf16 %v5740_v15  ;;  %v5741_v61 = vunpack.i.l.bf16 %v5740_v15  ;;  %v5772_v51 = vunpack.i.h.bf16 %v7087_v56  ;;  %v2730_v20 = vsel %vm719_vm11, %v5756_v39, %v5757_v24 }
 0x534   : > { %v5771_v34 = vunpack.i.l.bf16 %v7087_v56 }
 0x535   : > { %v2581_v14 = vsel %vm565_vm5, %v5691_v23, %v5741_v61  ;;  %4964 = vmatpush1.bf16.msra.mxu0 %v4963_v63  ;;  %v2582_v37 = vsel %vm565_vm5, %v5741_v61, %v5742_v58 }
 0x536   : > { %v4967_v5 = vpack.c.bf16 %v2583_v9, %v2581_v14  ;;  %v5745_v30 = vpop.permute.xlu1 %5744  ;;  %v5785_v26 = vpop.permute.xlu0 %5784  ;;  %v4965_v50 = vpack.c.bf16 %v2584_v21, %v2582_v37  ;;  %v2729_v56 = vsel %vm719_vm11, %v5771_v34, %v5756_v39 }
 0x537   : > { %v5747_v45 = vunpack.i.h.bf16 %v5745_v30  ;;  %v5746_v11 = vunpack.i.l.bf16 %v5745_v30  ;;  %v5787_v18 = vunpack.i.h.bf16 %v5785_v26  ;;  %v5786_v32 = vunpack.i.l.bf16 %v5785_v26 }
 0x538   : > { %4966 = vmatprep.subr.bf16.mxu0 %v4965_v50 }
 0x539   : > { %v2654_v10 = vsel %vm638_vm6, %v5746_v11, %v5747_v45  ;;  %v2656_v38 = vsel %vm638_vm6, %v5786_v32, %v5787_v18  ;;  %4968 = vmatpush1.bf16.msra.mxu0 %v4967_v5  ;;  %v2653_v42 = vsel %vm638_vm6, %v5736_v3, %v5746_v11  ;;  %v2655_v6 = vsel %vm638_vm6, %v5737_v22, %v5786_v32 }
 0x53a   : > { %v5760_v40 = vpop.permute.xlu1 %5759  ;;  %v7104_v41 = vpop.permute.xlu0 %5789  ;;  %4971 = vmatprep.subr.msk.bf16.mxu0 %vm6406_vm8, %v4969_v60  ;;  %v4975_v53 = vpack.c.bf16 %v2656_v38, %v2654_v10  ;;  %v4978_v57 = vpack.c.bf16 %v2655_v6, %v2653_v42 }
 0x53b   : > { %v5762_v44 = vunpack.i.h.bf16 %v5760_v40  ;;  %v5761_v48 = vunpack.i.l.bf16 %v5760_v40  ;;  %v5792_v18 = vunpack.i.h.bf16 %v7104_v41  ;;  %v5791_v32 = vunpack.i.l.bf16 %v7104_v41 }
 0x53d   : > { %v2732_v54 = vsel %vm719_vm11, %v5761_v48, %v5762_v44  ;;  %4974 = vmatpush1.bf16.msk.msra.mxu0 %vm6416_vm10, %v4972_v35  ;;  %v2731_v61 = vsel %vm719_vm11, %v5772_v51, %v5761_v48  ;;  %v2826_v38 = vsel %vm816_vm12, %v5791_v32, %v5792_v18 }
 0x53e   : > { %v5775_v17 = vpop.permute.xlu1 %5774  ;;  %v5800_v43 = vpop.permute.xlu0 %5799  ;;  %4977 = vmatprep.subr.msk.bf16.mxu0 %vm6406_vm8, %v4975_v53  ;;  %v4981_v63 = vpack.c.bf16 %v2732_v54, %v2730_v20  ;;  %v4984_v14 = vpack.c.bf16 %v2731_v61, %v2729_v56 }
 0x53f   : > { %v5777_v29 = vunpack.i.h.bf16 %v5775_v17  ;;  %v5776_v15 = vunpack.i.l.bf16 %v5775_v17  ;;  %v5802_v23 = vunpack.i.h.bf16 %v5800_v43  ;;  %v5801_v58 = vunpack.i.l.bf16 %v5800_v43 }
 0x541   : > { %v2734_v4 = vsel %vm719_vm11, %v5776_v15, %v5777_v29  ;;  %v2736_v25 = vsel %vm719_vm11, %v5801_v58, %v5802_v23  ;;  %4980 = vmatpush1.bf16.msk.msra.mxu0 %vm6416_vm10, %v4978_v57 }
 0x542   : > { %v5780_v31 = vpop.permute.xlu1 %5779  ;;  %v5805_v9 = vpop.permute.xlu0 %5804  ;;  %4983 = vmatprep.subr.msk.bf16.mxu0 %vm6373_vm3, %v4981_v63  ;;  %v4987_v46 = vpack.c.bf16 %v2736_v25, %v2734_v4 }
 0x543   : > { %v5782_v37 = vunpack.i.h.bf16 %v5780_v31  ;;  %v5781_v21 = vunpack.i.l.bf16 %v5780_v31  ;;  %v5807_v22 = vunpack.i.h.bf16 %v5805_v9  ;;  %v5806_v3 = vunpack.i.l.bf16 %v5805_v9 }
 0x545   : > { %v2733_v1 = vsel %vm719_vm11, %v5781_v21, %v5776_v15  ;;  %v2735_v5 = vsel %vm719_vm11, %v5782_v37, %v5801_v58  ;;  %4986 = vmatpush1.bf16.msk.msra.mxu0 %vm6378_vm4, %v4984_v14  ;;  %v2825_v33 = vsel %vm816_vm12, %v5806_v3, %v5791_v32 }
 0x546   : > { %v4990_v30 = vpack.c.bf16 %v2735_v5, %v2733_v1  ;;  %v5795_v26 = vpop.permute.xlu1 %5794  ;;  %v5820_v50 = vpop.permute.xlu0 %5819  ;;  %4989 = vmatprep.subr.msk.bf16.mxu0 %vm6373_vm3, %v4987_v46 }
 0x547   : > { %v5797_v45 = vunpack.i.h.bf16 %v5795_v26  ;;  %v5796_v11 = vunpack.i.l.bf16 %v5795_v26  ;;  %v5822_v44 = vunpack.i.h.bf16 %v5820_v50  ;;  %v5821_v48 = vunpack.i.l.bf16 %v5820_v50 }
 0x549   : > { %4992 = vmatpush1.bf16.msk.msra.mxu0 %vm6378_vm4, %v4990_v30  ;;  %v2828_v10 = vsel %vm816_vm12, %v5796_v11, %v5797_v45  ;;  %v2827_v35 = vsel %vm816_vm12, %v5807_v22, %v5796_v11  ;;  %v2906_v62 = vsel %vm897_vm13, %v5821_v48, %v5822_v44 }
 0x54a   : > { %v5810_v49 = vpop.permute.xlu1 %5809  ;;  %v5830_v60 = vpop.permute.xlu0 %5829  ;;  %4994 = vmatprep.subr.bf16.mxu0 %v4993_v13  ;;  %v5001_v6 = vpack.c.bf16 %v2828_v10, %v2826_v38 }
 0x54b   : > { %v5812_v24 = vunpack.i.h.bf16 %v5810_v49  ;;  %v5811_v39 = vunpack.i.l.bf16 %v5810_v49  ;;  %v5831_v57 = vunpack.i.l.bf16 %v5830_v60 }
 0x54d   : > { %4996 = vmatpush1.bf16.msra.mxu0 %v4995_v7  ;;  %v5004_v7 = vpack.c.bf16 %v2827_v35, %v2825_v33  ;;  %v2830_v51 = vsel %vm816_vm12, %v5811_v39, %v5812_v24  ;;  %v2905_v31 = vsel %vm897_vm13, %v5831_v57, %v5821_v48 }
 0x54e   : > { %v5815_v40 = vpop.permute.xlu1 %5814  ;;  %v5845_v41 = vpop.permute.xlu0 %5844  ;;  %4998 = vmatprep.subr.bf16.mxu0 %v4997_v12 }
 0x54f   : > { %v5817_v28 = vunpack.i.h.bf16 %v5815_v40  ;;  %v5816_v16 = vunpack.i.l.bf16 %v5815_v40  ;;  %v5847_v13 = vunpack.i.h.bf16 %v5845_v41  ;;  %v5846_v42 = vunpack.i.l.bf16 %v5845_v41 }
 0x551   : > { %v2832_v59 = vsel %vm816_vm12, %v5846_v42, %v5847_v13  ;;  %5000 = vmatpush1.bf16.msra.mxu0 %v4999_v2  ;;  %v2829_v12 = vsel %vm816_vm12, %v5816_v16, %v5811_v39  ;;  %v2831_v53 = vsel %vm816_vm12, %v5817_v28, %v5846_v42  ;;  %v5832_v2 = vunpack.i.h.bf16 %v5830_v60 }
 0x552   : > { %v5825_v36 = vpop.permute.xlu1 %5824  ;;  %v5850_v19 = vpop.permute.xlu0 %5849  ;;  %5003 = vmatprep.subr.msk.bf16.mxu0 %vm6406_vm8, %v5001_v6  ;;  %v5007_v34 = vpack.c.bf16 %v2832_v59, %v2830_v51  ;;  %v5010_v17 = vpack.c.bf16 %v2831_v53, %v2829_v12 }
 0x553   : > { %v5827_v54 = vunpack.i.h.bf16 %v5825_v36  ;;  %v5826_v20 = vunpack.i.l.bf16 %v5825_v36  ;;  %v5852_v1 = vunpack.i.h.bf16 %v5850_v19  ;;  %v5851_v5 = vunpack.i.l.bf16 %v5850_v19 }
 0x555   : > { %v2908_v27 = vsel %vm897_vm13, %v5826_v20, %v5827_v54  ;;  %5006 = vmatpush1.bf16.msk.msra.mxu0 %vm6416_vm10, %v5004_v7  ;;  %v2907_v63 = vsel %vm897_vm13, %v5832_v2, %v5826_v20  ;;  %v2986_v10 = vsel %vm978_vm14, %v5851_v5, %v5852_v1 }
 0x556   : > { %v5835_v43 = vpop.permute.xlu1 %5834  ;;  %v5860_v29 = vpop.permute.xlu0 %5859  ;;  %5009 = vmatprep.subr.msk.bf16.mxu0 %vm6406_vm8, %v5007_v34  ;;  %v5013_v4 = vpack.c.bf16 %v2908_v27, %v2906_v62  ;;  %v5016_v37 = vpack.c.bf16 %v2907_v63, %v2905_v31  ;;  %v3093_v63 = vld [vmem:[%s7621_s5 + $0x20] sm:$0xff] }
 0x557   : > { %v5837_v15 = vunpack.i.h.bf16 %v5835_v43  ;;  %v5836_v23 = vunpack.i.l.bf16 %v5835_v43  ;;  %v5862_v58 = vunpack.i.h.bf16 %v5860_v29  ;;  %v5861_v61 = vunpack.i.l.bf16 %v5860_v29  ;;  %v3089_v29 = vld [vmem:[%s7621_s5] sm:$0xff] }
 0x559   : > { %v2910_v25 = vsel %vm897_vm13, %v5836_v23, %v5837_v15  ;;  %v2912_v56 = vsel %vm897_vm13, %v5861_v61, %v5862_v58  ;;  %5012 = vmatpush1.bf16.msk.msra.mxu0 %vm6416_vm10, %v5010_v17 }
 0x55a   : > { %v5840_v9 = vpop.permute.xlu1 %5839  ;;  %v5865_v14 = vpop.permute.xlu0 %5864  ;;  %5015 = vmatprep.subr.msk.bf16.mxu0 %vm6373_vm3, %v5013_v4  ;;  %v5019_v30 = vpack.c.bf16 %v2912_v56, %v2910_v25 }
 0x55b   : > { %v5842_v21 = vunpack.i.h.bf16 %v5840_v9  ;;  %v5841_v46 = vunpack.i.l.bf16 %v5840_v9  ;;  %v5866_v26 = vunpack.i.l.bf16 %v5865_v14  ;;  %v5867_v49 = vunpack.i.h.bf16 %v5865_v14  ;;  %v3092_v14 = vld [vmem:[%s7621_s5 + $0x18] sm:$0xff] }
 0x55d   : > { %v2909_v50 = vsel %vm897_vm13, %v5841_v46, %v5836_v23  ;;  %v2911_v45 = vsel %vm897_vm13, %v5842_v21, %v5861_v61  ;;  %5018 = vmatpush1.bf16.msk.msra.mxu0 %vm6378_vm4, %v5016_v37  ;;  %v2985_v3 = vsel %vm978_vm14, %v5866_v26, %v5851_v5  ;;  %v3096_v46 = vld [vmem:[%s7621_s5 + $0x38] sm:$0xff] }
 0x55e   : > { %v5022_v11 = vpack.c.bf16 %v2911_v45, %v2909_v50  ;;  %v5855_v18 = vpop.permute.xlu1 %5854  ;;  %v5875_v32 = vpop.permute.xlu0 %5874  ;;  %5021 = vmatprep.subr.msk.bf16.mxu0 %vm6373_vm3, %v5019_v30  ;;  %v3095_v50 = vld [vmem:[%s7621_s5 + $0x30] sm:$0xff] }
 0x55f   : > { %v5857_v60 = vunpack.i.h.bf16 %v5855_v18  ;;  %v5856_v22 = vunpack.i.l.bf16 %v5855_v18  ;;  %v5877_v35 = vunpack.i.h.bf16 %v5875_v32  ;;  %v5876_v24 = vunpack.i.l.bf16 %v5875_v32  ;;  %v3099_v18 = vld [vmem:[%s7621_s5 + $0x50] sm:$0xff] }
 0x561   : > { %v2987_v38 = vsel %vm978_vm14, %v5867_v49, %v5856_v22  ;;  %5024 = vmatpush1.bf16.msk.msra.mxu0 %vm6378_vm4, %v5022_v11  ;;  %v2988_v39 = vsel %vm978_vm14, %v5856_v22, %v5857_v60  ;;  %v2992_v33 = vsel %vm978_vm14, %v5876_v24, %v5877_v35  ;;  %v3098_v49 = vld [vmem:[%s7621_s5 + $0x48] sm:$0xff]  ;;  %v3091_v60 = vld [vmem:[%s7621_s5 + $0x10] sm:$0xff] }
 0x562   : > { %v5027_v40 = vpack.c.bf16 %v2987_v38, %v2985_v3  ;;  %v5870_v41 = vpop.permute.xlu1 %5869  ;;  %v5885_v28 = vpop.permute.xlu0 %5884  ;;  %v5025_v16 = vpack.c.bf16 %v2988_v39, %v2986_v10  ;;  %v3094_v22 = vld [vmem:[%s7621_s5 + $0x28] sm:$0xff]  ;;  %v3097_v3 = vld [vmem:[%s7621_s5 + $0x40] sm:$0xff]  ;;  %v3100_v10 = vld [vmem:[%s7621_s5 + $0x58] sm:$0xff] }
 0x563   : > { %v5872_v13 = vunpack.i.h.bf16 %v5870_v41  ;;  %v5871_v42 = vunpack.i.l.bf16 %v5870_v41  ;;  %v5887_v36 = vunpack.i.h.bf16 %v5885_v28  ;;  %v5886_v19 = vunpack.i.l.bf16 %v5885_v28 }
 0x564   : > { %5026 = vmatprep.subr.bf16.mxu0 %v5025_v16 }
 0x565   : > { %5028 = vmatpush1.bf16.msra.mxu0 %v5027_v40  ;;  %v2990_v6 = vsel %vm978_vm14, %v5871_v42, %v5872_v13  ;;  %v3058_v17 = vsel %vm1051_vm15, %v5886_v19, %v5887_v36 }
 0x566   : > { %v5880_v59 = vpop.permute.xlu1 %5879  ;;  %v5895_v7 = vpop.permute.xlu0 %5894  ;;  %v5029_v44 = vpack.c.bf16 %v2992_v33, %v2990_v6 }
 0x567   : > { %v5882_v48 = vunpack.i.h.bf16 %v5880_v59  ;;  %v5881_v51 = vunpack.i.l.bf16 %v5880_v59  ;;  %v5896_v12 = vunpack.i.l.bf16 %v5895_v7  ;;  %v5897_v62 = vunpack.i.h.bf16 %v5895_v7 }
 0x568   : > { %5030 = vmatprep.subr.bf16.mxu0 %v5029_v44 }
 0x569   : > { %v2989_v53 = vsel %vm978_vm14, %v5881_v51, %v5871_v42  ;;  %v2991_v54 = vsel %vm978_vm14, %v5882_v48, %v5876_v24  ;;  %v3057_v43 = vsel %vm1051_vm15, %v5896_v12, %v5886_v19 }
 0x56a   : > { %v5031_v20 = vpack.c.bf16 %v2991_v54, %v2989_v53  ;;  %v5890_v34 = vpop.permute.xlu1 %5889  ;;  %v5905_v27 = vpop.permute.xlu0 %5904 }
 0x56b   : > { %v5892_v2 = vunpack.i.h.bf16 %v5890_v34  ;;  %v5891_v57 = vunpack.i.l.bf16 %v5890_v34  ;;  %v5907_v58 = vunpack.i.h.bf16 %v5905_v27  ;;  %v5906_v61 = vunpack.i.l.bf16 %v5905_v27 }
 0x56c   : > { %5032 = vmatpush1.bf16.msra.mxu0 %v5031_v20 }
 0x56d   : > { %v3059_v15 = vsel %vm1051_vm15, %v5897_v62, %v5891_v57  ;;  %v3060_v23 = vsel %vm1051_vm15, %v5891_v57, %v5892_v2  ;;  %v3064_v37 = vsel %vm1051_vm15, %v5906_v61, %v5907_v58 }
 0x56e   : > { %v5033_v4 = vpack.c.bf16 %v3060_v23, %v3058_v17  ;;  %v5036_v25 = vpack.c.bf16 %v3059_v15, %v3057_v43  ;;  %v5900_v56 = vpop.permute.xlu1 %5899 }
 0x56f   : > { %v5902_v31 = vunpack.i.h.bf16 %v5900_v56  ;;  %v5901_v9 = vunpack.i.l.bf16 %v5900_v56  ;;  %3250 = vmatmul.mubr.f32.vlgmr.msra.gmra.mrb[8].mxu0 %v3089_v29 }
 0x570   : > { %5035 = vmatprep.subr.msk.bf16.mxu0 %vm6406_vm8, %v5033_v4  ;;  %3255 = vmatprep.mubr.f32.mxu0 %v3093_v63 }
 0x571   : > { %v3062_v21 = vsel %vm1051_vm15, %v5901_v9, %v5902_v31  ;;  %5038 = vmatpush1.bf16.msk.msra.mxu0 %vm6416_vm10, %v5036_v25 }
 0x572   : > { %v5039_v1 = vpack.c.bf16 %v3064_v37, %v3062_v21  ;;  %v5910_v5 = vpop.permute.xlu1 %5909 }
 0x573   : > { %v5912_v30 = vunpack.i.h.bf16 %v5910_v5  ;;  %v5911_v26 = vunpack.i.l.bf16 %v5910_v5  ;;  %3256 = vmatmul.mubr.f32.gmra.mrb[10].mxu0 %v3092_v14 }
 0x574   : > { %5041 = vmatprep.subr.msk.bf16.mxu0 %vm6406_vm8, %v5039_v1  ;;  %3261 = vmatprep.mubr.f32.mxu0 %v3096_v46 }
 0x575   : > { %v3061_v45 = vsel %vm1051_vm15, %v5911_v26, %v5901_v9  ;;  %v3063_v11 = vsel %vm1051_vm15, %v5912_v30, %v5906_v61 }
 0x576   : > { %v5042_v32 = vpack.c.bf16 %v3063_v11, %v3061_v45 }
 0x577   : > { %3262 = vmatmul.mubr.f32.gmra.mrb[12].mxu0 %v3095_v50 }
 0x578   : > { %5044 = vmatpush1.bf16.msk.msra.mxu0 %vm6416_vm10, %v5042_v32  ;;  %3267 = vmatprep.mubr.f32.mxu0 %v3099_v18 }
 0x57b   : > { %3268 = vmatmul.mubr.f32.gmra.mrb[14].mxu0 %v3098_v49 }
 0x57c   : > { %3338 = vmatprep.mubr.f32.mxu0 %v6177_v0 }
 0x57f   : > { %4552 = vmatmul.mubr.msk.f32.vlgmr.msra.gmra.mrb[8].mxu0 %vm1168_vm1, %v3091_v60  ;;  %v3415_v60 = vld [vmem:[%s7622_s6] sm:$0xff] }
 0x580   : > { %3344 = vmatprep.mubr.f32.mxu0 %v6177_v0 }
 0x583   : > { %4553 = vmatmul.mubr.msk.f32.gmra.mrb[10].mxu0 %vm1168_vm1, %v3094_v22 }
 0x584   : > { %3350 = vmatprep.mubr.f32.mxu0 %v6177_v0 }
 0x587   : > { %4554 = vmatmul.mubr.msk.f32.gmra.mrb[12].mxu0 %vm1168_vm1, %v3097_v3 }
 0x588   : > { %3356 = vmatprep.mubr.f32.mxu0 %v6177_v0 }
 0x58b   : > { %4555 = vmatmul.mubr.msk.f32.gmra.mrb[14].mxu0 %vm1168_vm1, %v3100_v10 }
 0x652   : > { %v7245_v38 = vpop.f32.mrb[8].mxu0 }
 0x653   : > { %v3379_v35 = vmul.f32 %v7245_v38, %v7245_v38  ;;  %v7249_v24 = vpop.f32.mrb[9].mxu0 }
 0x654   : > { %v3363_v39 = vadd.f32 %v7249_v24, %v7245_v38  ;;  %v3380_v40 = vmul.f32 %v7249_v24, %v7249_v24 }
 0x656   : > { %3364 = vadd.xlane.f32.xlu0 %v3363_v39  ;;  %v7255_v41 = vpop.f32.mrb[10].mxu0  ;;  %v3387_v28 = vadd.f32 %v3380_v40, %v3379_v35  ;;  %v3431_v35 = vld [vmem:[%s7623_s7] sm:$0xff]  ;;  %v3416_v39 = vld [vmem:[%s7622_s6 + $0x8] sm:$0xff] }
 0x657   : > { %v3381_v16 = vmul.f32 %v7255_v41, %v7255_v41  ;;  %v7259_v13 = vpop.f32.mrb[11].mxu0 }
 0x658   : > { %v3366_v42 = vadd.f32 %v7259_v13, %v7255_v41  ;;  %v3382_v6 = vmul.f32 %v7259_v13, %v7259_v13 }
 0x65a   : > { %3388 = vadd.xlane.f32.xlu0 %v3387_v28  ;;  %3367 = vadd.xlane.f32.xlu1 %v3366_v42  ;;  %v7265_v33 = vpop.f32.mrb[12].mxu0  ;;  %v3390_v59 = vadd.f32 %v3382_v6, %v3381_v16  ;;  %v3432_v6 = vld [vmem:[%s7623_s7 + $0x8] sm:$0xff] }
 0x65b   : > { %v3383_v7 = vmul.f32 %v7265_v33, %v7265_v33  ;;  %v7269_v44 = vpop.f32.mrb[13].mxu0 }
 0x65c   : > { %v3369_v48 = vadd.f32 %v7269_v44, %v7265_v33  ;;  %v3384_v51 = vmul.f32 %v7269_v44, %v7269_v44 }
 0x65e   : > { %3391 = vadd.xlane.f32.xlu0 %v3390_v59  ;;  %3370 = vadd.xlane.f32.xlu1 %v3369_v48  ;;  %v7275_v36 = vpop.f32.mrb[14].mxu0  ;;  %v3393_v19 = vadd.f32 %v3384_v51, %v3383_v7  ;;  %v3417_v59 = vld [vmem:[%s7622_s6 + $0x10] sm:$0xff] }
 0x65f   : > { %v3385_v12 = vmul.f32 %v7275_v36, %v7275_v36  ;;  %v7279_v53 = vpop.f32.mrb[15].mxu0 }
 0x660   : > { %v3372_v54 = vadd.f32 %v7279_v53, %v7275_v36  ;;  %v3386_v20 = vmul.f32 %v7279_v53, %v7279_v53 }
 0x662   : > { %v3396_v34 = vadd.f32 %v3386_v20, %v3385_v12  ;;  %3394 = vadd.xlane.f32.xlu1 %v3393_v19  ;;  %3373 = vadd.xlane.f32.xlu0 %v3372_v54  ;;  %v3433_v12 = vld [vmem:[%s7623_s7 + $0x10] sm:$0xff]  ;;  %v3418_v54 = vld [vmem:[%s7622_s6 + $0x18] sm:$0xff] }
 0x666   : > { %3397 = vadd.xlane.f32.xlu0 %v3396_v34 }
 0x6e3   : > { %v3365_v27 = vpop.xlane.xlu0 %3364 }
 0x6e4   : > { %v3375_v62 = vmul.f32 0.00390625, %v3365_v27 }
 0x6e6   : > { %v3403_v17 = vmul.f32 %v3375_v62, %v3375_v62 }
 0x6e7   : > { %v3389_v2 = vpop.xlane.xlu0 %3388  ;;  %v3368_v57 = vpop.xlane.xlu1 %3367 }
 0x6e8   : > { %v3399_v43 = vmul.f32 0.00390625, %v3389_v2  ;;  %v3376_v29 = vmul.f32 0.00390625, %v3368_v57  ;;  %v3434_v2 = vld [vmem:[%s7623_s7 + $0x18] sm:$0xff] }
 0x6ea   : > { %v3407_v15 = vsub.f32 %v3399_v43, %v3403_v17  ;;  %v3404_v63 = vmul.f32 %v3376_v29, %v3376_v29 }
 0x6eb   : > { %v3392_v23 = vpop.xlane.xlu0 %3391  ;;  %v3371_v58 = vpop.xlane.xlu1 %3370 }
 0x6ec   : > { %v3411_v61 = vmax.f32 %v3407_v15, 0.0  ;;  %v3400_v4 = vmul.f32 0.00390625, %v3392_v23  ;;  %v3377_v25 = vmul.f32 0.00390625, %v3371_v58 }
 0x6ee   : > { %v3419_v56 = vadd.f32 1e-05, %v3411_v61  ;;  %v3408_v31 = vsub.f32 %v3400_v4, %v3404_v63  ;;  %v3405_v9 = vmul.f32 %v3377_v25, %v3377_v25 }
 0x6ef   : > { %v3395_v14 = vpop.xlane.xlu1 %3394  ;;  %v3374_v37 = vpop.xlane.xlu0 %3373 }
 0x6f0   : > { %6161 = vrsqrt.f32 %v3419_v56  ;;  %v3412_v21 = vmax.f32 %v3408_v31, 0.0  ;;  %v3401_v46 = vmul.f32 0.00390625, %v3395_v14  ;;  %v3378_v1 = vmul.f32 0.00390625, %v3374_v37 }
 0x6f2   : > { %v3420_v5 = vadd.f32 1e-05, %v3412_v21  ;;  %v3409_v30 = vsub.f32 %v3401_v46, %v3405_v9  ;;  %v3406_v45 = vmul.f32 %v3378_v1, %v3378_v1 }
 0x6f3   : > { %v3398_v26 = vpop.xlane.xlu0 %3397 }
 0x6f4   : > { %6163 = vrsqrt.f32 %v3420_v5  ;;  %v3413_v50 = vmax.f32 %v3409_v30, 0.0  ;;  %v3402_v11 = vmul.f32 0.00390625, %v3398_v26 }
 0x6f6   : > { %v3421_v18 = vadd.f32 1e-05, %v3413_v50  ;;  %v3410_v32 = vsub.f32 %v3402_v11, %v3406_v45 }
 0x6f8   : > { %6165 = vrsqrt.f32 %v3421_v18  ;;  %v3414_v49 = vmax.f32 %v3410_v32, 0.0 }
 0x6fa   : > { %v6162_v22 = vpop.eup %6161  ;;  %v3422_v3 = vadd.f32 1e-05, %v3414_v49 }
 0x6fb   : > { %v3427_v10 = vmul.f32 %v6162_v22, %v3415_v60 }
 0x6fc   : > { %6167 = vrsqrt.f32 %v3422_v3 }
 0x6fd   : > { %3445 = vperm.xlu1 %5431, %v3427_v10   ;;  %v3435_v40 = vmul.f32 %v3427_v10, %v3375_v62 }
 0x6fe   : > { %v6164_v28 = vpop.eup %6163 }
 0x6ff   : > { %v3439_v16 = vsub.f32 %v3431_v35, %v3435_v40  ;;  %v3428_v42 = vmul.f32 %v6164_v28, %v3416_v39 }
 0x701   : > { %3473 = vperm.xlu1 %5431, %v3439_v16   ;;  %3450 = vperm.xlu0 %5432, %v3428_v42   ;;  %v3436_v7 = vmul.f32 %v3428_v42, %v3376_v29 }
 0x702   : > { %v6166_v48 = vpop.eup %6165 }
 0x703   : > { %v3440_v51 = vsub.f32 %v3432_v6, %v3436_v7  ;;  %v3429_v19 = vmul.f32 %v6166_v48, %v3417_v59  ;;  %v4156_v7 = vld [vmem:[%s7624_s8 + $0x8] sm:$0xff] }
 0x704   : > { %4315 = vmatprep.mubr.f32.mxu1 %v4156_v7 }
 0x705   : > { %3478 = vperm.xlu1 %5431, %v3440_v51   ;;  %3455 = vperm.xlu0 %5432, %v3429_v19   ;;  %v3437_v20 = vmul.f32 %v3429_v19, %v3377_v25 }
 0x706   : > { %v6168_v34 = vpop.eup %6167 }
 0x707   : > { %v3441_v27 = vsub.f32 %v3433_v12, %v3437_v20  ;;  %v3430_v62 = vmul.f32 %v6168_v34, %v3418_v54 }
 0x709   : > { %3483 = vperm.xlu0 %5432, %v3441_v27   ;;  %3460 = vperm.xlu1 %5431, %v3430_v62   ;;  %v3438_v57 = vmul.f32 %v3430_v62, %v3378_v1 }
 0x70b   : > { %v3442_v17 = vsub.f32 %v3434_v2, %v3438_v57 }
 0x70d   : > { %3488 = vperm.xlu1 %5431, %v3442_v17   ;;  %5914 = vrot.lane.b32.xlu0 %v6177_v0, %s6178_s15 }
 0x711   : > { %5924 = vrot.lane.b32.xlu0 %v6177_v0, %s6179_s20  ;;  %5919 = vrot.lane.b32.xlu1 %v6177_v0, %s6178_s15 }
 0x715   : > { %5934 = vrot.lane.b32.xlu0 %v6177_v0, %s6180_s21  ;;  %5929 = vrot.lane.b32.xlu1 %v6177_v0, %s6179_s20 }
 0x77c   : > { %v3446_v43 = vpop.permute.xlu1 %3445 }
 0x77d   : > { %v3463_v29 = vmul.f32 %v3446_v43, %v7245_v38  ;;  %v3464_v15 = vmul.f32 %v3446_v43, %v7249_v24 }
 0x780   : > { %v3474_v23 = vpop.permute.xlu1 %3473  ;;  %v3451_v58 = vpop.permute.xlu0 %3450 }
 0x781   : > { %v3491_v61 = vadd.f32 %v3474_v23, %v3463_v29  ;;  %v3492_v63 = vadd.f32 %v3474_v23, %v3464_v15  ;;  %v3465_v56 = vmul.f32 %v3451_v58, %v7255_v41  ;;  %v3466_v31 = vmul.f32 %v3451_v58, %v7259_v13 }
 0x783   : > { %v7321_v4 = vmax.f32 %v3491_v61, 0.0  ;;  %v7323_v25 = vmax.f32 %v3492_v63, 0.0 }
 0x784   : > { %v3479_v9 = vpop.permute.xlu1 %3478  ;;  %v3456_v14 = vpop.permute.xlu0 %3455 }
 0x785   : > { %v3493_v37 = vadd.f32 %v3479_v9, %v3465_v56  ;;  %v3494_v21 = vadd.f32 %v3479_v9, %v3466_v31  ;;  %v5938_v38 = vpack.i.bf16 %v7323_v25, %v7321_v4  ;;  %v3467_v1 = vmul.f32 %v3456_v14, %v7265_v33 }
 0x786   : > { %v3468_v5 = vmul.f32 %v3456_v14, %v7269_v44  ;;  %v6028_v16 = vpack.i.bf16 %v6177_v0, %v7323_v25 }
 0x787   : > { %v7329_v24 = vmax.f32 %v3493_v37, 0.0  ;;  %v7331_v46 = vmax.f32 %v3494_v21, 0.0  ;;  %5939 = vrot.lane.b32.xlu0 %v5938_v38, %s6178_s15 }
 0x788   : > { %v3461_v41 = vpop.permute.xlu1 %3460  ;;  %v3484_v30 = vpop.permute.xlu0 %3483 }
 0x789   : > { %v3469_v13 = vmul.f32 %v3461_v41, %v7275_v36  ;;  %v3495_v26 = vadd.f32 %v3484_v30, %v3467_v1  ;;  %v3496_v50 = vadd.f32 %v3484_v30, %v3468_v5  ;;  %v5953_v45 = vpack.i.bf16 %v7331_v46, %v7329_v24 }
 0x78a   : > { %v3470_v11 = vmul.f32 %v3461_v41, %v7279_v53  ;;  %v6043_v33 = vpack.i.bf16 %v7329_v24, %v7321_v4  ;;  %v5089_v35 = vpack.c.bf16 %v7331_v46, %v7323_v25  ;;  %v5091_v39 = vpack.c.bf16 %v7329_v24, %v7321_v4 }
 0x78b   : > { %v7340_v18 = vmax.f32 %v3495_v26, 0.0  ;;  %v7342_v32 = vmax.f32 %v3496_v50, 0.0  ;;  %5944 = vrot.lane.b32.xlu0 %v5938_v38, %s6179_s20  ;;  %5954 = vrot.lane.b32.xlu1 %v5953_v45, %s6178_s15  ;;  %v6033_v42 = vpack.i.bf16 %v6177_v0, %v7331_v46 }
 0x78c   : > { %v3489_v44 = vpop.permute.xlu1 %3488  ;;  %v5915_v48 = vpop.permute.xlu0 %5914 }
 0x78d   : > { %v3497_v36 = vadd.f32 %v3489_v44, %v3469_v13  ;;  %v3498_v49 = vadd.f32 %v3489_v44, %v3470_v11  ;;  %v5968_v60 = vpack.i.bf16 %v7342_v32, %v7340_v18  ;;  %v6048_v6 = vpack.i.bf16 %v6177_v0, %v7342_v32 }
 0x78e   : > { %v5917_v57 = vunpack.i.h.bf16 %v5915_v48  ;;  %v5916_v17 = vunpack.i.l.bf16 %v5915_v48 }
 0x78f   : > { %v7350_v22 = vmax.f32 %v3497_v36, 0.0  ;;  %v7352_v53 = vmax.f32 %v3498_v49, 0.0  ;;  %5949 = vrot.lane.b32.xlu0 %v5938_v38, %s6180_s21  ;;  %5959 = vrot.lane.b32.xlu1 %v5953_v45, %s6179_s20 }
 0x790   : > { %v5925_v51 = vpop.permute.xlu0 %5924  ;;  %v5920_v19 = vpop.permute.xlu1 %5919 }
 0x791   : > { %v5988_v3 = vpack.i.bf16 %v7352_v53, %v7350_v22  ;;  %v6083_v10 = vpack.i.bf16 %v7350_v22, %v7340_v18  ;;  %v5093_v40 = vpack.c.bf16 %v7352_v53, %v7342_v32  ;;  %v5095_v28 = vpack.c.bf16 %v7350_v22, %v7340_v18 }
 0x792   : > { %v6073_v59 = vpack.i.bf16 %v6177_v0, %v7352_v53  ;;  %v5922_v41 = vunpack.i.h.bf16 %v5920_v19  ;;  %v5921_v30 = vunpack.i.l.bf16 %v5920_v19  ;;  %v5926_v7 = vunpack.i.l.bf16 %v5925_v51 }
 0x793   : > { %5989 = vrot.lane.b32.xlu0 %v5988_v3, %s6178_s15  ;;  %5964 = vrot.lane.b32.xlu1 %v5953_v45, %s6180_s21 }
 0x794   : > { %v7420_v12 = vpop.permute.xlu0 %5934  ;;  %v7422_v54 = vpop.permute.xlu1 %5929 }
 0x797   : > { %5994 = vrot.lane.b32.xlu0 %v5938_v38, %s6181_s22  ;;  %5969 = vrot.lane.b32.xlu1 %v5968_v60, %s6178_s15 }
 0x79b   : > { %6004 = vrot.lane.b32.xlu0 %v5988_v3, %s6179_s20  ;;  %5974 = vrot.lane.b32.xlu1 %v6177_v0, %s6180_s21 }
 0x79f   : > { %6009 = vrot.lane.b32.xlu0 %v6177_v0, %s6181_s22  ;;  %5979 = vrot.lane.b32.xlu1 %v5968_v60, %s6179_s20 }
 0x7a3   : > { %6024 = vrot.lane.b32.xlu0 %v5988_v3, %s6180_s21  ;;  %5984 = vrot.lane.b32.xlu1 %v5968_v60, %s6180_s21 }
 0x7a7   : > { %6029 = vrot.lane.b32.xlu0 %v6028_v16, %s6182_s23  ;;  %5999 = vrot.lane.b32.xlu1 %v5953_v45, %s6181_s22 }
 0x7ab   : > { %6039 = vrot.lane.b32.xlu0 %v5988_v3, %s6181_s22  ;;  %6014 = vrot.lane.b32.xlu1 %v5968_v60, %s6181_s22 }
 0x7af   : > { %6044 = vrot.lane.b32.xlu0 %v6043_v33, %s6182_s23  ;;  %6019 = vrot.lane.b32.xlu1 %v6177_v0, %s6181_s22 }
 0x7b3   : > { %6054 = vrot.lane.b32.xlu0 %v6028_v16, %s6183_s24  ;;  %6034 = vrot.lane.b32.xlu1 %v6033_v42, %s6182_s23 }
 0x7b7   : > { %6064 = vrot.lane.b32.xlu0 %v6043_v33, %s6183_s24  ;;  %6049 = vrot.lane.b32.xlu1 %v6048_v6, %s6182_s23 }
 0x7bb   : > { %6074 = vrot.lane.b32.xlu0 %v6073_v59, %s6182_s23  ;;  %6059 = vrot.lane.b32.xlu1 %v6033_v42, %s6183_s24 }
 0x7bf   : > { %6079 = vrot.lane.b32.xlu0 %v6028_v16, %s6184_s25  ;;  %6069 = vrot.lane.b32.xlu1 %v6048_v6, %s6183_s24 }
 0x7c3   : > { %6094 = vrot.lane.b32.xlu0 %v6073_v59, %s6183_s24  ;;  %6084 = vrot.lane.b32.xlu1 %v6083_v10, %s6182_s23 }
 0x7c7   : > { %6099 = vrot.lane.b32.xlu0 %v6043_v33, %s6184_s25  ;;  %6089 = vrot.lane.b32.xlu1 %v6033_v42, %s6184_s25 }
 0x7cb   : > { %6114 = vrot.lane.b32.xlu0 %v6073_v59, %s6184_s25  ;;  %6104 = vrot.lane.b32.xlu1 %v6083_v10, %s6183_s24 }
 0x7cf   : > { %6124 = vrot.lane.b32.xlu0 %v6028_v16, %s6185_s28  ;;  %6109 = vrot.lane.b32.xlu1 %v6048_v6, %s6184_s25 }
 0x7d3   : > { %6134 = vrot.lane.b32.xlu0 %v6043_v33, %s6185_s28  ;;  %6119 = vrot.lane.b32.xlu1 %v6083_v10, %s6184_s25 }
 0x7d7   : > { %6144 = vrot.lane.b32.xlu0 %v6073_v59, %s6185_s28  ;;  %6129 = vrot.lane.b32.xlu1 %v6033_v42, %s6185_s28 }
 0x7db   : > { %6139 = vrot.lane.b32.xlu1 %v6048_v6, %s6185_s28 }
 0x7df   : > { %6149 = vrot.lane.b32.xlu1 %v6083_v10, %s6185_s28  ;;  %v5927_v10 = vunpack.i.h.bf16 %v5925_v51 }
 0x7f9   : > { %v5940_v20 = vpop.permute.xlu0 %5939 }
 0x7fa   : > { %v5942_v34 = vunpack.i.h.bf16 %v5940_v20  ;;  %v5941_v27 = vunpack.i.l.bf16 %v5940_v20 }
 0x7fc   : > { %v3563_v15 = vsel %vm484_vm0, %v5916_v17, %v5941_v27  ;;  %v3564_v23 = vsel %vm484_vm0, %v5941_v27, %v5942_v34 }
 0x7fd   : > { %v5955_v62 = vpop.permute.xlu1 %5954  ;;  %v5945_v2 = vpop.permute.xlu0 %5944 }
 0x7fe   : > { %v5957_v43 = vunpack.i.h.bf16 %v5955_v62  ;;  %v5956_v29 = vunpack.i.l.bf16 %v5955_v62  ;;  %v5947_v50 = vunpack.i.h.bf16 %v5945_v2  ;;  %v5946_v45 = vunpack.i.l.bf16 %v5945_v2 }
 0x800   : > { %v3565_v58 = vsel %vm484_vm0, %v5917_v57, %v5956_v29  ;;  %v3566_v61 = vsel %vm484_vm0, %v5956_v29, %v5957_v43  ;;  %v3644_v48 = vsel %vm565_vm5, %v5946_v45, %v5947_v50  ;;  %v5932_v57 = vunpack.i.h.bf16 %v7422_v54 }
 0x801   : > { %v5045_v63 = vpack.c.bf16 %v3566_v61, %v3564_v23  ;;  %v5048_v56 = vpack.c.bf16 %v3565_v58, %v3563_v15  ;;  %v5960_v31 = vpop.permute.xlu1 %5959  ;;  %v7428_v9 = vpop.permute.xlu0 %5949  ;;  %v3643_v17 = vsel %vm565_vm5, %v5926_v7, %v5946_v45  ;;  %v5931_v23 = vunpack.i.l.bf16 %v7422_v54 }
 0x802   : > { %v5962_v21 = vunpack.i.h.bf16 %v5960_v31  ;;  %v5961_v38 = vunpack.i.l.bf16 %v5960_v31  ;;  %v5952_v51 = vunpack.i.h.bf16 %v7428_v9  ;;  %v5951_v43 = vunpack.i.l.bf16 %v7428_v9 }
 0x803   : > { %5047 = vmatprep.subr.msk.bf16.mxu1 %vm6373_vm3, %v5045_v63  ;;  %v5936_v31 = vunpack.i.l.bf16 %v7420_v12 }
 0x804   : > { %5050 = vmatpush1.bf16.msk.msra.mxu1 %vm6378_vm4, %v5048_v56  ;;  %v3646_v44 = vsel %vm565_vm5, %v5961_v38, %v5962_v21  ;;  %v3645_v19 = vsel %vm565_vm5, %v5927_v10, %v5961_v38  ;;  %v5937_v56 = vunpack.i.h.bf16 %v7420_v12  ;;  %v3716_v54 = vsel %vm638_vm6, %v5951_v43, %v5952_v51 }
 0x805   : > { %v5965_v14 = vpop.permute.xlu1 %5964  ;;  %v5990_v37 = vpop.permute.xlu0 %5989  ;;  %v5057_v27 = vpack.c.bf16 %v3646_v44, %v3644_v48  ;;  %v5059_v58 = vpack.c.bf16 %v3645_v19, %v3643_v17 }
 0x806   : > { %v5992_v1 = vunpack.i.h.bf16 %v5990_v37  ;;  %v5991_v5 = vunpack.i.l.bf16 %v5990_v37  ;;  %v5967_v20 = vunpack.i.h.bf16 %v5965_v14  ;;  %v5966_v34 = vunpack.i.l.bf16 %v5965_v14 }
 0x808   : > { %v3569_v36 = vsel %vm484_vm0, %v5922_v41, %v5991_v5  ;;  %v3570_v49 = vsel %vm484_vm0, %v5991_v5, %v5992_v1  ;;  %v3718_v14 = vsel %vm638_vm6, %v5966_v34, %v5967_v20  ;;  %v3717_v1 = vsel %vm638_vm6, %v5937_v56, %v5966_v34 }
 0x809   : > { %v5970_v13 = vpop.permute.xlu1 %5969  ;;  %v7434_v26 = vpop.permute.xlu0 %5994  ;;  %v5065_v44 = vpack.c.bf16 %v3718_v14, %v3716_v54 }
 0x80a   : > { %v5972_v11 = vunpack.i.h.bf16 %v5970_v13  ;;  %v5971_v33 = vunpack.i.l.bf16 %v5970_v13 }
 0x80c   : > { %v3567_v60 = vsel %vm484_vm0, %v5921_v30, %v5971_v33  ;;  %v3568_v3 = vsel %vm484_vm0, %v5971_v33, %v5972_v11  ;;  %v3715_v33 = vsel %vm638_vm6, %v5936_v31, %v5951_v43 }
 0x80d   : > { %v5051_v16 = vpack.c.bf16 %v3570_v49, %v3568_v3  ;;  %v5054_v42 = vpack.c.bf16 %v3569_v36, %v3567_v60  ;;  %v5975_v6 = vpop.permute.xlu1 %5974  ;;  %v6005_v59 = vpop.permute.xlu0 %6004  ;;  %v5068_v10 = vpack.c.bf16 %v3717_v1, %v3715_v33 }
 0x80e   : > { %v6007_v62 = vunpack.i.h.bf16 %v6005_v59  ;;  %v6006_v2 = vunpack.i.l.bf16 %v6005_v59  ;;  %v5977_v36 = vunpack.i.h.bf16 %v5975_v6  ;;  %v5976_v49 = vunpack.i.l.bf16 %v5975_v6 }
 0x80f   : > { %5053 = vmatprep.subr.msk.bf16.mxu1 %vm6373_vm3, %v5051_v16  ;;  %v5997_v16 = vunpack.i.h.bf16 %v7434_v26 }
 0x810   : > { %5056 = vmatpush1.bf16.msk.msra.mxu1 %vm6378_vm4, %v5054_v42  ;;  %v3649_v37 = vsel %vm565_vm5, %v5932_v57, %v6006_v2  ;;  %v3650_v38 = vsel %vm565_vm5, %v6006_v2, %v6007_v62  ;;  %v5996_v42 = vunpack.i.l.bf16 %v7434_v26 }
 0x811   : > { %v5980_v29 = vpop.permute.xlu1 %5979  ;;  %v7451_v15 = vpop.permute.xlu0 %6009  ;;  %5058 = vmatprep.subr.bf16.mxu1 %v5057_v27 }
 0x812   : > { %v5982_v61 = vunpack.i.h.bf16 %v5980_v29  ;;  %v5981_v63 = vunpack.i.l.bf16 %v5980_v29  ;;  %v6012_v34 = vunpack.i.h.bf16 %v7451_v15  ;;  %v3796_v26 = vsel %vm719_vm11, %v5996_v42, %v5997_v16 }
 0x813   : > { %v6011_v2 = vunpack.i.l.bf16 %v7451_v15 }
 0x814   : > { %v3647_v21 = vsel %vm565_vm5, %v5931_v23, %v5981_v63  ;;  %5060 = vmatpush1.bf16.msra.mxu1 %v5059_v58  ;;  %v3648_v9 = vsel %vm565_vm5, %v5981_v63, %v5982_v61 }
 0x815   : > { %v5063_v5 = vpack.c.bf16 %v3649_v37, %v3647_v21  ;;  %v5985_v41 = vpop.permute.xlu1 %5984  ;;  %v6025_v30 = vpop.permute.xlu0 %6024  ;;  %v5061_v13 = vpack.c.bf16 %v3650_v38, %v3648_v9  ;;  %v3795_v15 = vsel %vm719_vm11, %v6011_v2, %v5996_v42 }
 0x816   : > { %v5987_v12 = vunpack.i.h.bf16 %v5985_v41  ;;  %v5986_v50 = vunpack.i.l.bf16 %v5985_v41  ;;  %v6027_v45 = vunpack.i.h.bf16 %v6025_v30  ;;  %v6026_v11 = vunpack.i.l.bf16 %v6025_v30 }
 0x817   : > { %5062 = vmatprep.subr.bf16.mxu1 %v5061_v13 }
 0x818   : > { %v3720_v60 = vsel %vm638_vm6, %v5986_v50, %v5987_v12  ;;  %v3722_v3 = vsel %vm638_vm6, %v6026_v11, %v6027_v45  ;;  %5064 = vmatpush1.bf16.msra.mxu1 %v5063_v5  ;;  %v3719_v48 = vsel %vm638_vm6, %v5976_v49, %v5986_v50  ;;  %v3721_v6 = vsel %vm638_vm6, %v5977_v36, %v6026_v11 }
 0x819   : > { %v6000_v59 = vpop.permute.xlu1 %5999  ;;  %v7468_v7 = vpop.permute.xlu0 %6029  ;;  %5067 = vmatprep.subr.msk.bf16.mxu1 %vm6406_vm8, %v5065_v44  ;;  %v5071_v27 = vpack.c.bf16 %v3722_v3, %v3720_v60  ;;  %v5074_v57 = vpack.c.bf16 %v3721_v6, %v3719_v48 }
 0x81a   : > { %v6002_v19 = vunpack.i.h.bf16 %v6000_v59  ;;  %v6001_v20 = vunpack.i.l.bf16 %v6000_v59  ;;  %v6032_v45 = vunpack.i.h.bf16 %v7468_v7  ;;  %v6031_v11 = vunpack.i.l.bf16 %v7468_v7 }
 0x81c   : > { %v3798_v62 = vsel %vm719_vm11, %v6001_v20, %v6002_v19  ;;  %5070 = vmatpush1.bf16.msk.msra.mxu1 %vm6416_vm10, %v5068_v10  ;;  %v3797_v61 = vsel %vm719_vm11, %v6012_v34, %v6001_v20  ;;  %v3892_v49 = vsel %vm816_vm12, %v6031_v11, %v6032_v45 }
 0x81d   : > { %v6015_v17 = vpop.permute.xlu1 %6014  ;;  %v6040_v51 = vpop.permute.xlu0 %6039  ;;  %5073 = vmatprep.subr.msk.bf16.mxu1 %vm6406_vm8, %v5071_v27  ;;  %v5077_v63 = vpack.c.bf16 %v3798_v62, %v3796_v26  ;;  %v5080_v21 = vpack.c.bf16 %v3797_v61, %v3795_v15 }
 0x81e   : > { %v6017_v43 = vunpack.i.h.bf16 %v6015_v17  ;;  %v6016_v29 = vunpack.i.l.bf16 %v6015_v17  ;;  %v6042_v23 = vunpack.i.h.bf16 %v6040_v51  ;;  %v6041_v58 = vunpack.i.l.bf16 %v6040_v51 }
 0x820   : > { %v3800_v56 = vsel %vm719_vm11, %v6016_v29, %v6017_v43  ;;  %v3802_v31 = vsel %vm719_vm11, %v6041_v58, %v6042_v23  ;;  %5076 = vmatpush1.bf16.msk.msra.mxu1 %vm6416_vm10, %v5074_v57 }
 0x821   : > { %v6020_v14 = vpop.permute.xlu1 %6019  ;;  %v6045_v37 = vpop.permute.xlu0 %6044  ;;  %5079 = vmatprep.subr.msk.bf16.mxu1 %vm6373_vm3, %v5077_v63  ;;  %v5083_v54 = vpack.c.bf16 %v3802_v31, %v3800_v56 }
 0x822   : > { %v6022_v9 = vunpack.i.h.bf16 %v6020_v14  ;;  %v6021_v38 = vunpack.i.l.bf16 %v6020_v14  ;;  %v6047_v60 = vunpack.i.h.bf16 %v6045_v37  ;;  %v6046_v3 = vunpack.i.l.bf16 %v6045_v37 }
 0x824   : > { %v3799_v1 = vsel %vm719_vm11, %v6021_v38, %v6016_v29  ;;  %v3801_v5 = vsel %vm719_vm11, %v6022_v9, %v6041_v58  ;;  %5082 = vmatpush1.bf16.msk.msra.mxu1 %vm6378_vm4, %v5080_v21  ;;  %v3891_v24 = vsel %vm816_vm12, %v6046_v3, %v6031_v11 }
 0x825   : > { %v5086_v41 = vpack.c.bf16 %v3801_v5, %v3799_v1  ;;  %v6035_v30 = vpop.permute.xlu1 %6034  ;;  %v6055_v13 = vpop.permute.xlu0 %6054  ;;  %5085 = vmatprep.subr.msk.bf16.mxu1 %vm6373_vm3, %v5083_v54 }
 0x826   : > { %v6037_v12 = vunpack.i.h.bf16 %v6035_v30  ;;  %v6036_v50 = vunpack.i.l.bf16 %v6035_v30  ;;  %v6057_v20 = vunpack.i.h.bf16 %v6055_v13  ;;  %v6056_v34 = vunpack.i.l.bf16 %v6055_v13 }
 0x828   : > { %5088 = vmatpush1.bf16.msk.msra.mxu1 %vm6378_vm4, %v5086_v41  ;;  %v3894_v36 = vsel %vm816_vm12, %v6036_v50, %v6037_v12  ;;  %v3972_v51 = vsel %vm897_vm13, %v6056_v34, %v6057_v20 }
 0x829   : > { %v6050_v33 = vpop.permute.xlu1 %6049  ;;  %v6065_v44 = vpop.permute.xlu0 %6064  ;;  %5090 = vmatprep.subr.bf16.mxu1 %v5089_v35  ;;  %v3893_v35 = vsel %vm816_vm12, %v6047_v60, %v6036_v50  ;;  %v5097_v7 = vpack.c.bf16 %v3894_v36, %v3892_v49 }
 0x82a   : > { %v6052_v42 = vunpack.i.h.bf16 %v6050_v33  ;;  %v6051_v59 = vunpack.i.l.bf16 %v6050_v33  ;;  %v5100_v32 = vpack.c.bf16 %v3893_v35, %v3891_v24  ;;  %v6066_v26 = vunpack.i.l.bf16 %v6065_v44 }
 0x82c   : > { %5092 = vmatpush1.bf16.msra.mxu1 %v5091_v39  ;;  %v3896_v53 = vsel %vm816_vm12, %v6051_v59, %v6052_v42  ;;  %v3971_v14 = vsel %vm897_vm13, %v6066_v26, %v6056_v34 }
 0x82d   : > { %v6060_v10 = vpop.permute.xlu1 %6059  ;;  %v6075_v16 = vpop.permute.xlu0 %6074  ;;  %5094 = vmatprep.subr.bf16.mxu1 %v5093_v40 }
 0x82e   : > { %v6077_v25 = vunpack.i.h.bf16 %v6075_v16  ;;  %v6076_v46 = vunpack.i.l.bf16 %v6075_v16  ;;  %v6062_v40 = vunpack.i.h.bf16 %v6060_v10  ;;  %v6061_v6 = vunpack.i.l.bf16 %v6060_v10 }
 0x830   : > { %v3898_v4 = vsel %vm816_vm12, %v6076_v46, %v6077_v25  ;;  %5096 = vmatpush1.bf16.msra.mxu1 %v5095_v28  ;;  %v6067_v28 = vunpack.i.h.bf16 %v6065_v44  ;;  %v3974_v2 = vsel %vm897_vm13, %v6061_v6, %v6062_v40 }
 0x831   : > { %v6070_v39 = vpop.permute.xlu1 %6069  ;;  %v6080_v48 = vpop.permute.xlu0 %6079  ;;  %5099 = vmatprep.subr.msk.bf16.mxu1 %vm6406_vm8, %v5097_v7  ;;  %v5103_v19 = vpack.c.bf16 %v3898_v4, %v3896_v53  ;;  %v5109_v15 = vpack.c.bf16 %v3974_v2, %v3972_v51 }
 0x832   : > { %v3973_v23 = vsel %vm897_vm13, %v6067_v28, %v6061_v6  ;;  %v6072_v58 = vunpack.i.h.bf16 %v6070_v39  ;;  %v6071_v61 = vunpack.i.l.bf16 %v6070_v39  ;;  %v6082_v1 = vunpack.i.h.bf16 %v6080_v48 }
 0x833   : > { %v5112_v38 = vpack.c.bf16 %v3973_v23, %v3971_v14  ;;  %v6081_v5 = vunpack.i.l.bf16 %v6080_v48  ;;  %v4158_v14 = vld [vmem:[%s7624_s8 + $0x18] sm:$0xff] }
 0x834   : > { %5102 = vmatpush1.bf16.msk.msra.mxu1 %vm6416_vm10, %v5100_v32  ;;  %v3976_v54 = vsel %vm897_vm13, %v6071_v61, %v6072_v58  ;;  %v4159_v58 = vld [vmem:[%s7624_s8 + $0x20] sm:$0xff] }
 0x835   : > { %v6085_v18 = vpop.permute.xlu1 %6084  ;;  %v6095_v22 = vpop.permute.xlu0 %6094  ;;  %5105 = vmatprep.subr.msk.bf16.mxu1 %vm6406_vm8, %v5103_v19 }
 0x836   : > { %v6087_v27 = vunpack.i.h.bf16 %v6085_v18  ;;  %v6086_v62 = vunpack.i.l.bf16 %v6085_v18  ;;  %v6097_v57 = vunpack.i.h.bf16 %v6095_v22  ;;  %v6096_v17 = vunpack.i.l.bf16 %v6095_v22 }
 0x838   : > { %v3895_v43 = vsel %vm816_vm12, %v6086_v62, %v6051_v59  ;;  %v3897_v29 = vsel %vm816_vm12, %v6087_v27, %v6076_v46  ;;  %v3978_v37 = vsel %vm897_vm13, %v6096_v17, %v6097_v57  ;;  %v4052_v59 = vsel %vm978_vm14, %v6081_v5, %v6082_v1 }
 0x839   : > { %v5106_v63 = vpack.c.bf16 %v3897_v29, %v3895_v43  ;;  %v6090_v56 = vpop.permute.xlu1 %6089  ;;  %v6100_v31 = vpop.permute.xlu0 %6099  ;;  %v5115_v12 = vpack.c.bf16 %v3978_v37, %v3976_v54 }
 0x83a   : > { %v6092_v21 = vunpack.i.h.bf16 %v6090_v56  ;;  %v6091_v9 = vunpack.i.l.bf16 %v6090_v56  ;;  %v6102_v41 = vunpack.i.h.bf16 %v6100_v31  ;;  %v6101_v50 = vunpack.i.l.bf16 %v6100_v31 }
 0x83b   : > { %5108 = vmatpush1.bf16.msk.msra.mxu1 %vm6416_vm10, %v5106_v63 }
 0x83c   : > { %5111 = vmatprep.subr.msk.bf16.mxu1 %vm6373_vm3, %v5109_v15  ;;  %v4054_v33 = vsel %vm978_vm14, %v6091_v9, %v6092_v21  ;;  %v4053_v3 = vsel %vm978_vm14, %v6102_v41, %v6091_v9  ;;  %v4051_v25 = vsel %vm978_vm14, %v6101_v50, %v6081_v5  ;;  %v4162_v9 = vld [vmem:[%s7624_s8 + $0x38] sm:$0xff]  ;;  %v4161_v41 = vld [vmem:[%s7624_s8 + $0x30] sm:$0xff] }
 0x83d   : > { %v6105_v30 = vpop.permute.xlu1 %6104  ;;  %v6115_v13 = vpop.permute.xlu0 %6114  ;;  %v5121_v7 = vpack.c.bf16 %v4054_v33, %v4052_v59  ;;  %v5123_v24 = vpack.c.bf16 %v4053_v3, %v4051_v25  ;;  %v4166_v33 = vld [vmem:[%s7624_s8 + $0x58] sm:$0xff] }
 0x83e   : > { %v6107_v45 = vunpack.i.h.bf16 %v6105_v30  ;;  %v6106_v11 = vunpack.i.l.bf16 %v6105_v30  ;;  %v6117_v49 = vunpack.i.h.bf16 %v6115_v13  ;;  %v6116_v60 = vunpack.i.l.bf16 %v6115_v13 }
 0x83f   : > { %5114 = vmatpush1.bf16.msk.msra.mxu1 %vm6378_vm4, %v5112_v38 }
 0x840   : > { %v3975_v44 = vsel %vm897_vm13, %v6106_v11, %v6071_v61  ;;  %v3977_v36 = vsel %vm897_vm13, %v6107_v45, %v6096_v17  ;;  %5117 = vmatprep.subr.msk.bf16.mxu1 %vm6373_vm3, %v5115_v12  ;;  %v4058_v47 = vsel %vm978_vm14, %v6116_v60, %v6117_v49  ;;  %v4155_v17 = vld [vmem:[%s7624_s8] sm:$0xff]  ;;  %v4165_v12 = vld [vmem:[%s7624_s8 + $0x50] sm:$0xff] }
 0x841   : > { %v5118_v10 = vpack.c.bf16 %v3977_v36, %v3975_v44  ;;  %v6110_v16 = vpop.permute.xlu1 %6109  ;;  %v6125_v42 = vpop.permute.xlu0 %6124  ;;  %v4157_v45 = vld [vmem:[%s7624_s8 + $0x10] sm:$0xff]  ;;  %v4163_v11 = vld [vmem:[%s7624_s8 + $0x40] sm:$0xff] }
 0x842   : > { %v6112_v46 = vunpack.i.h.bf16 %v6110_v16  ;;  %v6111_v35 = vunpack.i.l.bf16 %v6110_v16  ;;  %v6127_v6 = vunpack.i.h.bf16 %v6125_v42  ;;  %v6126_v19 = vunpack.i.l.bf16 %v6125_v42 }
 0x843   : > { %5120 = vmatpush1.bf16.msk.msra.mxu1 %vm6378_vm4, %v5118_v10 }
 0x844   : > { %5122 = vmatprep.subr.bf16.mxu1 %v5121_v7  ;;  %v4056_v4 = vsel %vm978_vm14, %v6111_v35, %v6112_v46  ;;  %v4124_v2 = vsel %vm1051_vm15, %v6126_v19, %v6127_v6 }
 0x845   : > { %v6120_v39 = vpop.permute.xlu1 %6119  ;;  %v6135_v48 = vpop.permute.xlu0 %6134  ;;  %v5125_v32 = vpack.c.bf16 %v4058_v47, %v4056_v4 }
 0x846   : > { %v6122_v53 = vunpack.i.h.bf16 %v6120_v39  ;;  %v6121_v40 = vunpack.i.l.bf16 %v6120_v39  ;;  %v6136_v20 = vunpack.i.l.bf16 %v6135_v48  ;;  %v6137_v27 = vunpack.i.h.bf16 %v6135_v48 }
 0x847   : > { %5124 = vmatpush1.bf16.msra.mxu1 %v5123_v24 }
 0x848   : > { %v4055_v34 = vsel %vm978_vm14, %v6121_v40, %v6111_v35  ;;  %v4057_v52 = vsel %vm978_vm14, %v6122_v53, %v6116_v60  ;;  %5126 = vmatprep.subr.bf16.mxu1 %v5125_v32  ;;  %v4123_v57 = vsel %vm1051_vm15, %v6136_v20, %v6126_v19 }
 0x849   : > { %v5127_v18 = vpack.c.bf16 %v4057_v52, %v4055_v34  ;;  %v6130_v22 = vpop.permute.xlu1 %6129  ;;  %v6145_v28 = vpop.permute.xlu0 %6144 }
 0x84a   : > { %v6132_v62 = vunpack.i.h.bf16 %v6130_v22  ;;  %v6131_v26 = vunpack.i.l.bf16 %v6130_v22  ;;  %v6147_v29 = vunpack.i.h.bf16 %v6145_v28  ;;  %v6146_v23 = vunpack.i.l.bf16 %v6145_v28 }
 0x84b   : > { %5128 = vmatpush1.bf16.msra.mxu1 %v5127_v18 }
 0x84c   : > { %v4125_v51 = vsel %vm1051_vm15, %v6137_v27, %v6131_v26  ;;  %v4126_v43 = vsel %vm1051_vm15, %v6131_v26, %v6132_v62  ;;  %v4130_v37 = vsel %vm1051_vm15, %v6146_v23, %v6147_v29 }
 0x84d   : > { %v5129_v61 = vpack.c.bf16 %v4126_v43, %v4124_v2  ;;  %v5132_v63 = vpack.c.bf16 %v4125_v51, %v4123_v57  ;;  %v6140_v56 = vpop.permute.xlu1 %6139 }
 0x84e   : > { %v6142_v31 = vunpack.i.h.bf16 %v6140_v56  ;;  %v6141_v15 = vunpack.i.l.bf16 %v6140_v56  ;;  %4316 = vmatmul.mubr.f32.vlgmr.msra.gmra.mrb[8].mxu1 %v4155_v17 }
 0x84f   : > { %5131 = vmatprep.subr.msk.bf16.mxu1 %vm6406_vm8, %v5129_v61  ;;  %4321 = vmatprep.mubr.f32.mxu1 %v4159_v58 }
 0x850   : > { %v4128_v21 = vsel %vm1051_vm15, %v6141_v15, %v6142_v31  ;;  %5134 = vmatpush1.bf16.msk.msra.mxu1 %vm6416_vm10, %v5132_v63 }
 0x851   : > { %v5135_v38 = vpack.c.bf16 %v4130_v37, %v4128_v21  ;;  %v6150_v54 = vpop.permute.xlu1 %6149 }
 0x852   : > { %v6152_v1 = vunpack.i.h.bf16 %v6150_v54  ;;  %v6151_v5 = vunpack.i.l.bf16 %v6150_v54  ;;  %4322 = vmatmul.mubr.f32.gmra.mrb[10].mxu1 %v4158_v14 }
 0x853   : > { %5137 = vmatprep.subr.msk.bf16.mxu1 %vm6406_vm8, %v5135_v38  ;;  %4327 = vmatprep.mubr.f32.mxu1 %v4162_v9 }
 0x854   : > { %v4127_v30 = vsel %vm1051_vm15, %v6151_v5, %v6141_v15  ;;  %v4129_v13 = vsel %vm1051_vm15, %v6152_v1, %v6146_v23 }
 0x855   : > { %v5138_v50 = vpack.c.bf16 %v4129_v13, %v4127_v30 }
 0x856   : > { %4328 = vmatmul.mubr.f32.gmra.mrb[12].mxu1 %v4161_v41 }
 0x857   : > { %5140 = vmatpush1.bf16.msk.msra.mxu1 %vm6416_vm10, %v5138_v50  ;;  %4333 = vmatprep.mubr.f32.mxu1 %v4165_v12 }
 0x85a   : > { %4334 = vmatmul.mubr.f32.gmra.mrb[14].mxu1 %v4164_v55 }
 0x85b   : > { %4404 = vmatprep.mubr.f32.mxu1 %v6177_v0 }
 0x85e   : > { %4556 = vmatmul.mubr.msk.f32.vlgmr.msra.gmra.mrb[8].mxu1 %vm1168_vm1, %v4157_v45 }
 0x85f   : > { %4410 = vmatprep.mubr.f32.mxu1 %v6177_v0 }
 0x862   : > { %4557 = vmatmul.mubr.msk.f32.gmra.mrb[10].mxu1 %vm1168_vm1, %v4160_v8 }
 0x863   : > { %4416 = vmatprep.mubr.f32.mxu1 %v6177_v0 }
 0x866   : > { %4558 = vmatmul.mubr.msk.f32.gmra.mrb[12].mxu1 %vm1168_vm1, %v4163_v11 }
 0x867   : > { %4422 = vmatprep.mubr.f32.mxu1 %v6177_v0 }
 0x86a   : > { %4559 = vmatmul.mubr.msk.f32.gmra.mrb[14].mxu1 %vm1168_vm1, %v4166_v33 }
 0x931   : > { %v4406_v44 = vpop.f32.mrb[8].mxu1 }
 0x932   : > { %v4429_v36 = vmax.f32 %v4406_v44, 0.0  ;;  %v4408_v49 = vpop.f32.mrb[9].mxu1 }
 0x933   : > { %v4430_v60 = vmax.f32 %v4408_v49, 0.0 }
 0x934   : > { %4437 = vst [vmem:[%s367_s17] sm:$0xff] %v4429_v36 }
 0x935   : > { %4438 = vst [vmem:[%s367_s17 + $0x8] sm:$0xff] %v4430_v60  ;;  %v4412_v3 = vpop.f32.mrb[10].mxu1 }
 0x936   : > { %v4431_v10 = vmax.f32 %v4412_v3, 0.0  ;;  %v4414_v16 = vpop.f32.mrb[11].mxu1 }
 0x937   : > { %v4432_v0 = vmax.f32 %v4414_v16, 0.0 }
 0x938   : > { %4439 = vst [vmem:[%s367_s17 + $0x10] sm:$0xff] %v4431_v10 }
 0x939   : > { %4440 = vst [vmem:[%s367_s17 + $0x18] sm:$0xff] %v4432_v0  ;;  %v4418_v42 = vpop.f32.mrb[12].mxu1 }
 0x93a   : > { %v4433_v59 = vmax.f32 %v4418_v42, 0.0  ;;  %v4420_v25 = vpop.f32.mrb[13].mxu1 }
 0x93b   : > { %v4434_v46 = vmax.f32 %v4420_v25, 0.0 }
 0x93c   : > { %4441 = vst [vmem:[%s367_s17 + $0x20] sm:$0xff] %v4433_v59 }
 0x93d   : > { %4442 = vst [vmem:[%s367_s17 + $0x28] sm:$0xff] %v4434_v46  ;;  %v4424_v35 = vpop.f32.mrb[14].mxu1 }
 0x93e   : > { %v4435_v7 = vmax.f32 %v4424_v35, 0.0  ;;  %v4426_v4 = vpop.f32.mrb[15].mxu1 }
 0x93f   : > { %v4436_v47 = vmax.f32 %v4426_v4, 0.0 }
 0x940   : > { %4443 = vst [vmem:[%s367_s17 + $0x30] sm:$0xff] %v4435_v7 }
 0x941   : > { %4444 = vst [vmem:[%s367_s17 + $0x38] sm:$0xff] %v4436_v47 }
 0x942 PF: > { %s21_s13 = sadd.s32 1, %s6175_s13  }
 0x943   : > { %p18_p4 = scmp.ge.s32.totalorder %s21_s13, 4  }
 0x945   :  { %20 = sbr.rel (!%p18_p4) target bundleno = 1 (0x1), region = 98 }

</bundles_post_ra>
